<compile_context>
chip_gen: v7x
topology: tpu7x:2x2x1
jax: 0.10.0
libtpu: 0.0.40
codegen_flags: <defaults>
</compile_context>

<pallas_src>
import numpy as np
import jax
import jax.numpy as jnp
from jax.experimental import pallas as pl
from jax.experimental.pallas import tpu as pltpu

NUM_AA_TYPES = 21     # 20 standard amino acids + 1 "unknown"
AA_PAD = 32           # padded type axis for the in-kernel one-hot matmul
NUM_ATOMS = 14        # atom14 representation
NUM_CHI = 4
NUM_GROUPS = 5        # group 0 = backbone frame, groups 1..4 = chi1..chi4
EPS = 1e-8
DEFAULT_TILE_M = 1024  # residues per grid step (lane axis)

# --- packed per-residue input slab (rows = features, lanes = residues) ------
ROW_CHI_PTS = 0       # 4 dihedral points x 3 coords x 4 chis = 48 rows
ROW_BB = 48           # 3 coords x 4 backbone atoms = 12 rows
ROW_VALID = 60        # 1 row (valid-residue mask)
ROW_TYPE = 61         # 1 row (residue type index, stored as f32)
NC_ROWS = 64          # padded to a multiple of 8 sublanes

# --- packed residue-type table (rows = features, cols = types, 8-aligned) ---
ROW_CHIM = 0          # chi mask: 4 rows           (slot 0..7)
ROW_AEX = 8           # atom exists: 14 rows       (slot 8..23)
ROW_GH = 24           # group one-hot: 5 x 16-row slots, 14 used each (24..103)
ROW_DEFR = 104        # default rotations: 4 x 9 rows (slot 104..143)
ROW_DEFT = 144        # default translations: 4 x 3 rows (slot 144..159)
ROW_LIT = 160         # literature positions: 3 coords x 16-row slots (160..207)
TBL_ROWS = 208


# ----------------------------------------------------------------------------
# deterministic synthetic residue tables (stand-ins for the library constants)
# ----------------------------------------------------------------------------
def _rodrigues(axis, angle):
    axis = axis / (np.linalg.norm(axis) + 1e-12)
    K = np.array([[0.0, -axis[2], axis[1]],
                  [axis[2], 0.0, -axis[0]],
                  [-axis[1], axis[0], 0.0]])
    return np.eye(3) + np.sin(angle) * K + (1.0 - np.cos(angle)) * (K @ K)


def build_tables():
    rng = np.random.RandomState(0)
    chi_mask = np.zeros((NUM_AA_TYPES, NUM_CHI), np.float32)
    atom_exists = np.zeros((NUM_AA_TYPES, NUM_ATOMS), np.float32)
    group_idx = np.zeros((NUM_AA_TYPES, NUM_ATOMS), np.int64)
    for r in range(20):
        nchi = r % 5
        chi_mask[r, :nchi] = 1.0
        atom_exists[r, :4] = 1.0
        nside = min(10, 2 * nchi + 1)
        atom_exists[r, 4:4 + nside] = 1.0
        for a in range(4, NUM_ATOMS):
            g = min(NUM_CHI, (a - 4) // 2 + 1)
            group_idx[r, a] = min(g, nchi)
    atom_exists[20, :4] = 1.0  # unknown residue: backbone only, no chis

    # dihedral atom indices for chi1..chi4 (same pattern for every type)
    base = np.array([[0, 1, 4, 5], [1, 4, 5, 6], [4, 5, 6, 7], [5, 6, 7, 8]],
                    np.int64)
    chi_atom_idx = np.tile(base[None], (NUM_AA_TYPES, 1, 1))

    # synthetic rigid-group default frames + literature atom positions
    def_R = np.zeros((NUM_AA_TYPES, NUM_CHI, 3, 3), np.float32)
    def_t = rng.uniform(-1.5, 1.5, (NUM_AA_TYPES, NUM_CHI, 3)).astype(np.float32)
    for r in range(NUM_AA_TYPES):
        for g in range(NUM_CHI):
            def_R[r, g] = _rodrigues(rng.uniform(-1, 1, 3),
                                     rng.uniform(0, np.pi)).astype(np.float32)
    lit_pos = rng.uniform(-1.5, 1.5, (NUM_AA_TYPES, NUM_ATOMS, 3)).astype(np.float32)

    # aa_index_mapping: vocab indices 5..24 are the 20 amino acids
    aa_inverse = np.arange(5, 25, dtype=np.int64)
    aa_map = np.full(int(aa_inverse.max()) + 1, 20, dtype=np.int64)
    aa_map[aa_inverse] = np.arange(20)

    return dict(chi_mask=chi_mask, atom_exists=atom_exists, group_idx=group_idx,
                chi_atom_idx=chi_atom_idx, def_R=def_R, def_t=def_t,
                lit_pos=lit_pos, aa_index_mapping=aa_map)


def pack_tables(tables):
    """Pack all residue-type tables into one [TBL_ROWS, AA_PAD] f32 slab."""
    T = np.zeros((TBL_ROWS, AA_PAD), np.float32)
    T[ROW_CHIM:ROW_CHIM + NUM_CHI, :NUM_AA_TYPES] = tables["chi_mask"].T
    T[ROW_AEX:ROW_AEX + NUM_ATOMS, :NUM_AA_TYPES] = tables["atom_exists"].T
    gidx = tables["group_idx"]
    for g in range(NUM_GROUPS):
        T[ROW_GH + g * 16:ROW_GH + g * 16 + NUM_ATOMS, :NUM_AA_TYPES] = \
            (gidx == g).astype(np.float32).T
    T[ROW_DEFR:ROW_DEFR + 36, :NUM_AA_TYPES] = \
        tables["def_R"].reshape(NUM_AA_TYPES, 36).T
    T[ROW_DEFT:ROW_DEFT + 12, :NUM_AA_TYPES] = \
        tables["def_t"].reshape(NUM_AA_TYPES, 12).T
    for d in range(3):
        T[ROW_LIT + d * 16:ROW_LIT + d * 16 + NUM_ATOMS, :NUM_AA_TYPES] = \
            tables["lit_pos"][:, :, d].T
    return T


# ----------------------------------------------------------------------------
# fused Pallas kernel: in-kernel table gather + chi dihedrals + frame build
# ----------------------------------------------------------------------------
def sidechain_kernel(tbl_ref, coords_ref, out_ref, gat_ref):
    tm = coords_ref.shape[-1]

    # ---- gather residue-type constants: one-hot matmul on the MXU ----------
    type_row = coords_ref[ROW_TYPE:ROW_TYPE + 1, :]                  # [1, tm] f32
    aa_iota = jax.lax.broadcasted_iota(jnp.int32, (AA_PAD, tm), 0)
    onehot = (aa_iota.astype(jnp.float32) == type_row).astype(jnp.float32)
    gat_ref[...] = jnp.dot(tbl_ref[...], onehot,                     # [208, tm]
                           preferred_element_type=jnp.float32,
                           precision=jax.lax.Precision.HIGHEST)

    valid = coords_ref[ROW_VALID:ROW_VALID + 1, :]                   # [1, tm]

    def sub(a, b):
        return (a[0] - b[0], a[1] - b[1], a[2] - b[2])

    def dot3(a, b):
        return a[0] * b[0] + a[1] * b[1] + a[2] * b[2]

    def cross(a, b):
        return (a[1] * b[2] - a[2] * b[1],
                a[2] * b[0] - a[0] * b[2],
                a[0] * b[1] - a[1] * b[0])

    def scale(a, k):
        return (a[0] * k, a[1] * k, a[2] * k)

    # ---- chi dihedrals (all 4 chis vectorised along sublanes) --------------
    def pt(p):
        b = ROW_CHI_PTS + p * 12
        return (coords_ref[b:b + 4, :],
                coords_ref[b + 4:b + 8, :],
                coords_ref[b + 8:b + 12, :])                         # 3 x [4, tm]

    p0, p1, p2, p3 = pt(0), pt(1), pt(2), pt(3)
    b0 = sub(p1, p0); b1 = sub(p2, p1); b2 = sub(p3, p2)
    n1 = cross(b0, b1); n2 = cross(b1, b2); m_ = cross(n1, b1)
    x = dot3(n1, n2)
    y = dot3(m_, n2) * jax.lax.rsqrt(dot3(b1, b1) + EPS)
    inv_r = jax.lax.rsqrt(x * x + y * y + EPS)
    cm = gat_ref[ROW_CHIM:ROW_CHIM + NUM_CHI, :] * valid             # [4, tm]
    s_chi = (y * inv_r) * cm
    c_chi = (x * inv_r) * cm + (1.0 - cm)     # absent/padded chi -> angle 0

    # ---- backbone frame from N, CA, C via Gram-Schmidt ---------------------
    bb = (coords_ref[ROW_BB:ROW_BB + 4, :],
          coords_ref[ROW_BB + 4:ROW_BB + 8, :],
          coords_ref[ROW_BB + 8:ROW_BB + 12, :])                     # 3 x [4, tm]
    N_ = (bb[0][0:1], bb[1][0:1], bb[2][0:1])
    CA = (bb[0][1:2], bb[1][1:2], bb[2][1:2])
    C_ = (bb[0][2:3], bb[1][2:3], bb[2][2:3])
    v1 = sub(C_, CA)
    v2 = sub(N_, CA)
    e1 = scale(v1, jax.lax.rsqrt(dot3(v1, v1) + EPS))
    u2 = sub(v2, scale(e1, dot3(e1, v2)))
    e2 = scale(u2, jax.lax.rsqrt(dot3(u2, u2) + EPS))
    e3 = cross(e1, e2)
    Rc = [[e1[0], e2[0], e3[0]],
          [e1[1], e2[1], e3[1]],
          [e1[2], e2[2], e3[2]]]
    tc = [CA[0], CA[1], CA[2]]

    # ---- cumulative rigid groups fused with per-atom placement -------------
    litx = gat_ref[ROW_LIT + 0:ROW_LIT + NUM_ATOMS, :]               # [14, tm]
    lity = gat_ref[ROW_LIT + 16:ROW_LIT + 16 + NUM_ATOMS, :]
    litz = gat_ref[ROW_LIT + 32:ROW_LIT + 32 + NUM_ATOMS, :]
    am = gat_ref[ROW_AEX:ROW_AEX + NUM_ATOMS, :] * valid             # [14, tm]

    acc = [None, None, None]
    for g in range(NUM_GROUPS):
        if g > 0:
            k = g - 1
            cg = c_chi[k:k + 1, :]
            sg = s_chi[k:k + 1, :]
            Rd = [[gat_ref[ROW_DEFR + k * 9 + i * 3 + j:
                           ROW_DEFR + k * 9 + i * 3 + j + 1, :]
                   for j in range(3)] for i in range(3)]
            td = [gat_ref[ROW_DEFT + k * 3 + i:ROW_DEFT + k * 3 + i + 1, :]
                  for i in range(3)]
            # local frame = default_R @ Rx(chi_k)
            Rl = [[Rd[i][0],
                   Rd[i][1] * cg + Rd[i][2] * sg,
                   -Rd[i][1] * sg + Rd[i][2] * cg] for i in range(3)]
            Rn = [[Rc[i][0] * Rl[0][j] + Rc[i][1] * Rl[1][j] + Rc[i][2] * Rl[2][j]
                   for j in range(3)] for i in range(3)]
            tn = [Rc[i][0] * td[0] + Rc[i][1] * td[1] + Rc[i][2] * td[2] + tc[i]
                  for i in range(3)]
            Rc, tc = Rn, tn
        gh_g = gat_ref[ROW_GH + g * 16:ROW_GH + g * 16 + NUM_ATOMS, :]  # [14, tm]
        for i in range(3):
            contrib = Rc[i][0] * litx + Rc[i][1] * lity + Rc[i][2] * litz + tc[i]
            term = gh_g * contrib
            acc[i] = term if acc[i] is None else acc[i] + term

    # ---- mask non-existent atoms, blend input backbone in registers, and
    #      write each coordinate plane with one full-width store -------------
    for d in range(3):
        plane = acc[d] * am                                          # [14, tm]
        out_ref[d] = jnp.concatenate([bb[d], plane[4:NUM_ATOMS, :]], axis=0)


# ----------------------------------------------------------------------------
# device-side wrapper (all glue jitted; one fused pallas_call)
# ----------------------------------------------------------------------------
def make_forward(tables, tile_m_max=DEFAULT_TILE_M):
    tbl = jnp.asarray(pack_tables(tables))                               # [208, 32]
    chi_atom_idx = jnp.asarray(tables["chi_atom_idx"].astype(np.int32))  # [21, 4, 4]
    aa_map = jnp.asarray(tables["aa_index_mapping"].astype(np.int32))

    @jax.jit
    def forward(X, S, batch_ids):
        """X: [N,14,3] f32, S: [N] int vocab indices, batch_ids: [N] int."""
        X = X.astype(jnp.float32)
        n = X.shape[0]
        s_m = aa_map[S.astype(jnp.int32)]                             # [n] in [0, 21)

        # chi dihedral atom gather (type-dependent indices), on device
        cidx = chi_atom_idx[s_m]                                      # [n, 4, 4]
        chi_xyz = X[jnp.arange(n)[:, None, None], cidx]               # [n, chi, pt, 3]

        # pack per-residue streamed data: rows = features, lanes = residues
        chi_rows = jnp.transpose(chi_xyz, (2, 3, 1, 0)).reshape(48, n)  # p*12+d*4+k
        bb_rows = jnp.transpose(X[:, :4, :], (2, 1, 0)).reshape(12, n)  # d*4+atom
        valid_row = jnp.ones((1, n), jnp.float32)
        type_row = s_m[None, :].astype(jnp.float32)                     # exact 0..20
        pad_rows = jnp.zeros((NC_ROWS - ROW_TYPE - 1, n), jnp.float32)
        slab = jnp.concatenate(
            [chi_rows, bb_rows, valid_row, type_row, pad_rows], axis=0)  # [64, n]

        tile_m = min(tile_m_max, 128 * pl.cdiv(n, 128))
        m_pad = tile_m * pl.cdiv(n, tile_m)
        pad = m_pad - n
        # padded residues: coords 0, valid 0, type "unknown"
        slab = jnp.pad(slab, ((0, 0), (0, pad)))
        slab = slab.at[ROW_TYPE, n:].set(float(NUM_AA_TYPES - 1)) if pad else slab

        out = pl.pallas_call(
            sidechain_kernel,
            out_shape=jax.ShapeDtypeStruct((3, NUM_ATOMS, m_pad), jnp.float32),
            grid=(m_pad // tile_m,),
            in_specs=[
                pl.BlockSpec((TBL_ROWS, AA_PAD), lambda i: (0, 0)),   # resident table
                pl.BlockSpec((NC_ROWS, tile_m), lambda i: (0, i)),    # packed slab
            ],
            out_specs=pl.BlockSpec((3, NUM_ATOMS, tile_m), lambda i: (0, 0, i)),
            scratch_shapes=[pltpu.VMEM((TBL_ROWS, tile_m), jnp.float32)],
            compiler_params=pltpu.CompilerParams(
                dimension_semantics=("parallel",)),
        )(tbl, slab)

        x_built = jnp.transpose(out[:, :, :n], (2, 1, 0))             # [n, 14, 3]

        # TODO(synk): the original module refines chi with a data-dependent Adam
        # while-loop (autodiff through the builder); that host-side optimizer
        # loop is skipped here (equivalent to optimize=False).

        # replicate graph_to_batch(...) + X[mask] row ordering:
        # row-major (batch, in-batch position) == stable sort by batch id.
        order = jnp.argsort(batch_ids)
        return x_built[order]

    return forward


# ----------------------------------------------------------------------------
if __name__ == "__main__":
    tables = build_tables()
    forward = make_forward(tables)

    key = jax.random.PRNGKey(0)
    kx, ks = jax.random.split(key)
    N = 8
    batch_ids = jnp.array([0, 0, 0, 0, 0, 1, 1, 1], dtype=jnp.int32)   # B=2, lens 5 & 3
    X = jax.random.normal(kx, (N, NUM_ATOMS, 3), dtype=jnp.float32) * 3.0
    S = jax.random.randint(ks, (N,), 0, 25)                            # vocab indices

    out = forward(X, S, batch_ids)
    out = jax.block_until_ready(out)
    assert out.shape == (N, NUM_ATOMS, 3)
    assert bool(jnp.all(jnp.isfinite(out)))
    print("KERNEL_OK")
</pallas_src>

<mosaic_0001>
module attributes {stable_mosaic.version = 11 : i64} {
  func.func @sidechain_kernel(%arg0: i32, %arg1: memref<208x32xf32, #tpu.memory_space<vmem>>, %arg2: memref<64x128xf32, #tpu.memory_space<vmem>>, %arg3: memref<3x14x128xf32, #tpu.memory_space<vmem>>, %arg4: memref<208x128xf32, #tpu.memory_space<vmem>>) attributes {dimension_semantics = [#tpu.dimension_semantics<parallel>], iteration_bounds = array<i64: 1>, scalar_prefetch = 0 : i64, scratch_operands = 1 : i64, tpu.core_type = #tpu.core_type<tc>, window_params = [{pipeline_mode = #tpu.pipeline_mode<synchronous>, transform_indices = @transform_0, window_bounds = array<i64: 208, 32>}, {transform_indices = @transform_1, window_bounds = array<i64: 64, 128>}, {transform_indices = @transform_2, window_bounds = array<i64: 3, 14, 128>}]} {
    %c61 = arith.constant 61 : index
    %c0 = arith.constant 0 : index
    %0 = vector.load %arg2[%c61, %c0] : memref<64x128xf32, #tpu.memory_space<vmem>>, vector<1x128xf32>
    %1 = tpu.iota {dimensions = array<i32: 0>} : vector<32x128xi32>
    %2 = arith.sitofp %1 : vector<32x128xi32> to vector<32x128xf32>
    %3 = vector.broadcast %0 : vector<1x128xf32> to vector<32x128xf32>
    %4 = arith.cmpf oeq, %2, %3 : vector<32x128xf32>
    %5 = arith.extui %4 : vector<32x128xi1> to vector<32x128xi32>
    %6 = arith.sitofp %5 : vector<32x128xi32> to vector<32x128xf32>
    %c0_0 = arith.constant 0 : index
    %c0_1 = arith.constant 0 : index
    %7 = vector.load %arg1[%c0_0, %c0_1] : memref<208x32xf32, #tpu.memory_space<vmem>>, vector<208x32xf32>
    %cst = arith.constant dense<0.000000e+00> : vector<208x128xf32>
    %8 = tpu.matmul %7, %6, %cst {dimension_numbers = #tpu.dot_dimension_numbers<[1], [0], [0], [1], [0, 0, 1, 1], [], []>, precision = #tpu.contract_precision<fp32>} : vector<208x32xf32>, vector<32x128xf32>, vector<208x128xf32> -> vector<208x128xf32>
    %c0_2 = arith.constant 0 : index
    %c0_3 = arith.constant 0 : index
    %9 = vector.load %arg4[%c0_2, %c0_3] : memref<208x128xf32, #tpu.memory_space<vmem>>, vector<208x128xf32>
    tpu.vector_store %arg4[%c0_2, %c0_3], %8 {strides = array<i32>} : memref<208x128xf32, #tpu.memory_space<vmem>>, vector<208x128xf32>,
    %c60 = arith.constant 60 : index
    %c0_4 = arith.constant 0 : index
    %10 = vector.load %arg2[%c60, %c0_4] : memref<64x128xf32, #tpu.memory_space<vmem>>, vector<1x128xf32>
    %c0_5 = arith.constant 0 : index
    %c0_6 = arith.constant 0 : index
    %11 = vector.load %arg2[%c0_5, %c0_6] : memref<64x128xf32, #tpu.memory_space<vmem>>, vector<4x128xf32>
    %c4 = arith.constant 4 : index
    %c0_7 = arith.constant 0 : index
    %12 = vector.load %arg2[%c4, %c0_7] : memref<64x128xf32, #tpu.memory_space<vmem>>, vector<4x128xf32>
    %c8 = arith.constant 8 : index
    %c0_8 = arith.constant 0 : index
    %13 = vector.load %arg2[%c8, %c0_8] : memref<64x128xf32, #tpu.memory_space<vmem>>, vector<4x128xf32>
    %c12 = arith.constant 12 : index
    %c0_9 = arith.constant 0 : index
    %14 = vector.load %arg2[%c12, %c0_9] : memref<64x128xf32, #tpu.memory_space<vmem>>, vector<4x128xf32>
    %c16 = arith.constant 16 : index
    %c0_10 = arith.constant 0 : index
    %15 = vector.load %arg2[%c16, %c0_10] : memref<64x128xf32, #tpu.memory_space<vmem>>, vector<4x128xf32>
    %c20 = arith.constant 20 : index
    %c0_11 = arith.constant 0 : index
    %16 = vector.load %arg2[%c20, %c0_11] : memref<64x128xf32, #tpu.memory_space<vmem>>, vector<4x128xf32>
    %c24 = arith.constant 24 : index
    %c0_12 = arith.constant 0 : index
    %17 = vector.load %arg2[%c24, %c0_12] : memref<64x128xf32, #tpu.memory_space<vmem>>, vector<4x128xf32>
    %c28 = arith.constant 28 : index
    %c0_13 = arith.constant 0 : index
    %18 = vector.load %arg2[%c28, %c0_13] : memref<64x128xf32, #tpu.memory_space<vmem>>, vector<4x128xf32>
    %c32 = arith.constant 32 : index
    %c0_14 = arith.constant 0 : index
    %19 = vector.load %arg2[%c32, %c0_14] : memref<64x128xf32, #tpu.memory_space<vmem>>, vector<4x128xf32>
    %c36 = arith.constant 36 : index
    %c0_15 = arith.constant 0 : index
    %20 = vector.load %arg2[%c36, %c0_15] : memref<64x128xf32, #tpu.memory_space<vmem>>, vector<4x128xf32>
    %c40 = arith.constant 40 : index
    %c0_16 = arith.constant 0 : index
    %21 = vector.load %arg2[%c40, %c0_16] : memref<64x128xf32, #tpu.memory_space<vmem>>, vector<4x128xf32>
    %c44 = arith.constant 44 : index
    %c0_17 = arith.constant 0 : index
    %22 = vector.load %arg2[%c44, %c0_17] : memref<64x128xf32, #tpu.memory_space<vmem>>, vector<4x128xf32>
    %23 = arith.subf %14, %11 : vector<4x128xf32>
    %24 = arith.subf %15, %12 : vector<4x128xf32>
    %25 = arith.subf %16, %13 : vector<4x128xf32>
    %26 = arith.subf %17, %14 : vector<4x128xf32>
    %27 = arith.subf %18, %15 : vector<4x128xf32>
    %28 = arith.subf %19, %16 : vector<4x128xf32>
    %29 = arith.subf %20, %17 : vector<4x128xf32>
    %30 = arith.subf %21, %18 : vector<4x128xf32>
    %31 = arith.subf %22, %19 : vector<4x128xf32>
    %32 = arith.mulf %24, %28 : vector<4x128xf32>
    %33 = arith.mulf %25, %27 : vector<4x128xf32>
    %34 = arith.subf %32, %33 : vector<4x128xf32>
    %35 = arith.mulf %25, %26 : vector<4x128xf32>
    %36 = arith.mulf %23, %28 : vector<4x128xf32>
    %37 = arith.subf %35, %36 : vector<4x128xf32>
    %38 = arith.mulf %23, %27 : vector<4x128xf32>
    %39 = arith.mulf %24, %26 : vector<4x128xf32>
    %40 = arith.subf %38, %39 : vector<4x128xf32>
    %41 = arith.mulf %27, %31 : vector<4x128xf32>
    %42 = arith.mulf %28, %30 : vector<4x128xf32>
    %43 = arith.subf %41, %42 : vector<4x128xf32>
    %44 = arith.mulf %28, %29 : vector<4x128xf32>
    %45 = arith.mulf %26, %31 : vector<4x128xf32>
    %46 = arith.subf %44, %45 : vector<4x128xf32>
    %47 = arith.mulf %26, %30 : vector<4x128xf32>
    %48 = arith.mulf %27, %29 : vector<4x128xf32>
    %49 = arith.subf %47, %48 : vector<4x128xf32>
    %50 = arith.mulf %37, %28 : vector<4x128xf32>
    %51 = arith.mulf %40, %27 : vector<4x128xf32>
    %52 = arith.subf %50, %51 : vector<4x128xf32>
    %53 = arith.mulf %40, %26 : vector<4x128xf32>
    %54 = arith.mulf %34, %28 : vector<4x128xf32>
    %55 = arith.subf %53, %54 : vector<4x128xf32>
    %56 = arith.mulf %34, %27 : vector<4x128xf32>
    %57 = arith.mulf %37, %26 : vector<4x128xf32>
    %58 = arith.subf %56, %57 : vector<4x128xf32>
    %59 = arith.mulf %34, %43 : vector<4x128xf32>
    %60 = arith.mulf %37, %46 : vector<4x128xf32>
    %61 = arith.addf %59, %60 : vector<4x128xf32>
    %62 = arith.mulf %40, %49 : vector<4x128xf32>
    %63 = arith.addf %61, %62 : vector<4x128xf32>
    %64 = arith.mulf %52, %43 : vector<4x128xf32>
    %65 = arith.mulf %55, %46 : vector<4x128xf32>
    %66 = arith.addf %64, %65 : vector<4x128xf32>
    %67 = arith.mulf %58, %49 : vector<4x128xf32>
    %68 = arith.addf %66, %67 : vector<4x128xf32>
    %69 = arith.mulf %26, %26 : vector<4x128xf32>
    %70 = arith.mulf %27, %27 : vector<4x128xf32>
    %71 = arith.addf %69, %70 : vector<4x128xf32>
    %72 = arith.mulf %28, %28 : vector<4x128xf32>
    %73 = arith.addf %71, %72 : vector<4x128xf32>
    %cst_18 = arith.constant 9.99999993E-9 : f32
    %74 = vector.broadcast %cst_18 : f32 to vector<4x128xf32>
    %75 = arith.addf %73, %74 : vector<4x128xf32>
    %76 = math.rsqrt %75 : vector<4x128xf32>
    %77 = arith.mulf %68, %76 : vector<4x128xf32>
    %78 = arith.mulf %63, %63 : vector<4x128xf32>
    %79 = arith.mulf %77, %77 : vector<4x128xf32>
    %80 = arith.addf %78, %79 : vector<4x128xf32>
    %cst_19 = arith.constant 9.99999993E-9 : f32
    %81 = vector.broadcast %cst_19 : f32 to vector<4x128xf32>
    %82 = arith.addf %80, %81 : vector<4x128xf32>
    %83 = math.rsqrt %82 : vector<4x128xf32>
    %c0_20 = arith.constant 0 : index
    %c0_21 = arith.constant 0 : index
    %84 = vector.load %arg4[%c0_20, %c0_21] : memref<208x128xf32, #tpu.memory_space<vmem>>, vector<4x128xf32>
    %85 = vector.broadcast %10 : vector<1x128xf32> to vector<4x128xf32>
    %86 = arith.mulf %84, %85 : vector<4x128xf32>
    %87 = arith.mulf %77, %83 : vector<4x128xf32>
    %88 = arith.mulf %87, %86 : vector<4x128xf32>
    %89 = arith.mulf %63, %83 : vector<4x128xf32>
    %90 = arith.mulf %89, %86 : vector<4x128xf32>
    %cst_22 = arith.constant 1.000000e+00 : f32
    %91 = vector.broadcast %cst_22 : f32 to vector<4x128xf32>
    %92 = arith.subf %91, %86 : vector<4x128xf32>
    %93 = arith.addf %90, %92 : vector<4x128xf32>
    %c48 = arith.constant 48 : index
    %c0_23 = arith.constant 0 : index
    %94 = vector.load %arg2[%c48, %c0_23] : memref<64x128xf32, #tpu.memory_space<vmem>>, vector<4x128xf32>
    %c52 = arith.constant 52 : index
    %c0_24 = arith.constant 0 : index
    %95 = vector.load %arg2[%c52, %c0_24] : memref<64x128xf32, #tpu.memory_space<vmem>>, vector<4x128xf32>
    %c56 = arith.constant 56 : index
    %c0_25 = arith.constant 0 : index
    %96 = vector.load %arg2[%c56, %c0_25] : memref<64x128xf32, #tpu.memory_space<vmem>>, vector<4x128xf32>
    %97 = vector.extract_strided_slice %94 {offsets = [0, 0], sizes = [1, 128], strides = [1, 1]} : vector<4x128xf32> to vector<1x128xf32>
    %98 = vector.extract_strided_slice %95 {offsets = [0, 0], sizes = [1, 128], strides = [1, 1]} : vector<4x128xf32> to vector<1x128xf32>
    %99 = vector.extract_strided_slice %96 {offsets = [0, 0], sizes = [1, 128], strides = [1, 1]} : vector<4x128xf32> to vector<1x128xf32>
    %100 = vector.extract_strided_slice %94 {offsets = [1, 0], sizes = [1, 128], strides = [1, 1]} : vector<4x128xf32> to vector<1x128xf32>
    %101 = vector.extract_strided_slice %95 {offsets = [1, 0], sizes = [1, 128], strides = [1, 1]} : vector<4x128xf32> to vector<1x128xf32>
    %102 = vector.extract_strided_slice %96 {offsets = [1, 0], sizes = [1, 128], strides = [1, 1]} : vector<4x128xf32> to vector<1x128xf32>
    %103 = vector.extract_strided_slice %94 {offsets = [2, 0], sizes = [1, 128], strides = [1, 1]} : vector<4x128xf32> to vector<1x128xf32>
    %104 = vector.extract_strided_slice %95 {offsets = [2, 0], sizes = [1, 128], strides = [1, 1]} : vector<4x128xf32> to vector<1x128xf32>
    %105 = vector.extract_strided_slice %96 {offsets = [2, 0], sizes = [1, 128], strides = [1, 1]} : vector<4x128xf32> to vector<1x128xf32>
    %106 = arith.subf %103, %100 : vector<1x128xf32>
    %107 = arith.subf %104, %101 : vector<1x128xf32>
    %108 = arith.subf %105, %102 : vector<1x128xf32>
    %109 = arith.subf %97, %100 : vector<1x128xf32>
    %110 = arith.subf %98, %101 : vector<1x128xf32>
    %111 = arith.subf %99, %102 : vector<1x128xf32>
    %112 = arith.mulf %106, %106 : vector<1x128xf32>
    %113 = arith.mulf %107, %107 : vector<1x128xf32>
    %114 = arith.addf %112, %113 : vector<1x128xf32>
    %115 = arith.mulf %108, %108 : vector<1x128xf32>
    %116 = arith.addf %114, %115 : vector<1x128xf32>
    %cst_26 = arith.constant 9.99999993E-9 : f32
    %117 = vector.broadcast %cst_26 : f32 to vector<1x128xf32>
    %118 = arith.addf %116, %117 : vector<1x128xf32>
    %119 = math.rsqrt %118 : vector<1x128xf32>
    %120 = arith.mulf %106, %119 : vector<1x128xf32>
    %121 = arith.mulf %107, %119 : vector<1x128xf32>
    %122 = arith.mulf %108, %119 : vector<1x128xf32>
    %123 = arith.mulf %120, %109 : vector<1x128xf32>
    %124 = arith.mulf %121, %110 : vector<1x128xf32>
    %125 = arith.addf %123, %124 : vector<1x128xf32>
    %126 = arith.mulf %122, %111 : vector<1x128xf32>
    %127 = arith.addf %125, %126 : vector<1x128xf32>
    %128 = arith.mulf %120, %127 : vector<1x128xf32>
    %129 = arith.mulf %121, %127 : vector<1x128xf32>
    %130 = arith.mulf %122, %127 : vector<1x128xf32>
    %131 = arith.subf %109, %128 : vector<1x128xf32>
    %132 = arith.subf %110, %129 : vector<1x128xf32>
    %133 = arith.subf %111, %130 : vector<1x128xf32>
    %134 = arith.mulf %131, %131 : vector<1x128xf32>
    %135 = arith.mulf %132, %132 : vector<1x128xf32>
    %136 = arith.addf %134, %135 : vector<1x128xf32>
    %137 = arith.mulf %133, %133 : vector<1x128xf32>
    %138 = arith.addf %136, %137 : vector<1x128xf32>
    %cst_27 = arith.constant 9.99999993E-9 : f32
    %139 = vector.broadcast %cst_27 : f32 to vector<1x128xf32>
    %140 = arith.addf %138, %139 : vector<1x128xf32>
    %141 = math.rsqrt %140 : vector<1x128xf32>
    %142 = arith.mulf %131, %141 : vector<1x128xf32>
    %143 = arith.mulf %132, %141 : vector<1x128xf32>
    %144 = arith.mulf %133, %141 : vector<1x128xf32>
    %145 = arith.mulf %121, %144 : vector<1x128xf32>
    %146 = arith.mulf %122, %143 : vector<1x128xf32>
    %147 = arith.subf %145, %146 : vector<1x128xf32>
    %148 = arith.mulf %122, %142 : vector<1x128xf32>
    %149 = arith.mulf %120, %144 : vector<1x128xf32>
    %150 = arith.subf %148, %149 : vector<1x128xf32>
    %151 = arith.mulf %120, %143 : vector<1x128xf32>
    %152 = arith.mulf %121, %142 : vector<1x128xf32>
    %153 = arith.subf %151, %152 : vector<1x128xf32>
    %c160 = arith.constant 160 : index
    %c0_28 = arith.constant 0 : index
    %154 = vector.load %arg4[%c160, %c0_28] : memref<208x128xf32, #tpu.memory_space<vmem>>, vector<14x128xf32>
    %c176 = arith.constant 176 : index
    %c0_29 = arith.constant 0 : index
    %155 = vector.load %arg4[%c176, %c0_29] : memref<208x128xf32, #tpu.memory_space<vmem>>, vector<14x128xf32>
    %c192 = arith.constant 192 : index
    %c0_30 = arith.constant 0 : index
    %156 = vector.load %arg4[%c192, %c0_30] : memref<208x128xf32, #tpu.memory_space<vmem>>, vector<14x128xf32>
    %c8_31 = arith.constant 8 : index
    %c0_32 = arith.constant 0 : index
    %157 = vector.load %arg4[%c8_31, %c0_32] : memref<208x128xf32, #tpu.memory_space<vmem>>, vector<14x128xf32>
    %158 = vector.broadcast %10 : vector<1x128xf32> to vector<14x128xf32>
    %159 = arith.mulf %157, %158 : vector<14x128xf32>
    %c24_33 = arith.constant 24 : index
    %c0_34 = arith.constant 0 : index
    %160 = vector.load %arg4[%c24_33, %c0_34] : memref<208x128xf32, #tpu.memory_space<vmem>>, vector<14x128xf32>
    %161 = vector.broadcast %120 : vector<1x128xf32> to vector<14x128xf32>
    %162 = arith.mulf %161, %154 : vector<14x128xf32>
    %163 = vector.broadcast %142 : vector<1x128xf32> to vector<14x128xf32>
    %164 = arith.mulf %163, %155 : vector<14x128xf32>
    %165 = arith.addf %162, %164 : vector<14x128xf32>
    %166 = vector.broadcast %147 : vector<1x128xf32> to vector<14x128xf32>
    %167 = arith.mulf %166, %156 : vector<14x128xf32>
    %168 = arith.addf %165, %167 : vector<14x128xf32>
    %169 = vector.broadcast %100 : vector<1x128xf32> to vector<14x128xf32>
    %170 = arith.addf %168, %169 : vector<14x128xf32>
    %171 = arith.mulf %160, %170 : vector<14x128xf32>
    %172 = vector.broadcast %121 : vector<1x128xf32> to vector<14x128xf32>
    %173 = arith.mulf %172, %154 : vector<14x128xf32>
    %174 = vector.broadcast %143 : vector<1x128xf32> to vector<14x128xf32>
    %175 = arith.mulf %174, %155 : vector<14x128xf32>
    %176 = arith.addf %173, %175 : vector<14x128xf32>
    %177 = vector.broadcast %150 : vector<1x128xf32> to vector<14x128xf32>
    %178 = arith.mulf %177, %156 : vector<14x128xf32>
    %179 = arith.addf %176, %178 : vector<14x128xf32>
    %180 = vector.broadcast %101 : vector<1x128xf32> to vector<14x128xf32>
    %181 = arith.addf %179, %180 : vector<14x128xf32>
    %182 = arith.mulf %160, %181 : vector<14x128xf32>
    %183 = vector.broadcast %122 : vector<1x128xf32> to vector<14x128xf32>
    %184 = arith.mulf %183, %154 : vector<14x128xf32>
    %185 = vector.broadcast %144 : vector<1x128xf32> to vector<14x128xf32>
    %186 = arith.mulf %185, %155 : vector<14x128xf32>
    %187 = arith.addf %184, %186 : vector<14x128xf32>
    %188 = vector.broadcast %153 : vector<1x128xf32> to vector<14x128xf32>
    %189 = arith.mulf %188, %156 : vector<14x128xf32>
    %190 = arith.addf %187, %189 : vector<14x128xf32>
    %191 = vector.broadcast %102 : vector<1x128xf32> to vector<14x128xf32>
    %192 = arith.addf %190, %191 : vector<14x128xf32>
    %193 = arith.mulf %160, %192 : vector<14x128xf32>
    %194 = vector.extract_strided_slice %93 {offsets = [0, 0], sizes = [1, 128], strides = [1, 1]} : vector<4x128xf32> to vector<1x128xf32>
    %195 = vector.extract_strided_slice %88 {offsets = [0, 0], sizes = [1, 128], strides = [1, 1]} : vector<4x128xf32> to vector<1x128xf32>
    %c104 = arith.constant 104 : index
    %c0_35 = arith.constant 0 : index
    %196 = vector.load %arg4[%c104, %c0_35] : memref<208x128xf32, #tpu.memory_space<vmem>>, vector<1x128xf32>
    %c105 = arith.constant 105 : index
    %c0_36 = arith.constant 0 : index
    %197 = vector.load %arg4[%c105, %c0_36] : memref<208x128xf32, #tpu.memory_space<vmem>>, vector<1x128xf32>
    %c106 = arith.constant 106 : index
    %c0_37 = arith.constant 0 : index
    %198 = vector.load %arg4[%c106, %c0_37] : memref<208x128xf32, #tpu.memory_space<vmem>>, vector<1x128xf32>
    %c107 = arith.constant 107 : index
    %c0_38 = arith.constant 0 : index
    %199 = vector.load %arg4[%c107, %c0_38] : memref<208x128xf32, #tpu.memory_space<vmem>>, vector<1x128xf32>
    %c108 = arith.constant 108 : index
    %c0_39 = arith.constant 0 : index
    %200 = vector.load %arg4[%c108, %c0_39] : memref<208x128xf32, #tpu.memory_space<vmem>>, vector<1x128xf32>
    %c109 = arith.constant 109 : index
    %c0_40 = arith.constant 0 : index
    %201 = vector.load %arg4[%c109, %c0_40] : memref<208x128xf32, #tpu.memory_space<vmem>>, vector<1x128xf32>
    %c110 = arith.constant 110 : index
    %c0_41 = arith.constant 0 : index
    %202 = vector.load %arg4[%c110, %c0_41] : memref<208x128xf32, #tpu.memory_space<vmem>>, vector<1x128xf32>
    %c111 = arith.constant 111 : index
    %c0_42 = arith.constant 0 : index
    %203 = vector.load %arg4[%c111, %c0_42] : memref<208x128xf32, #tpu.memory_space<vmem>>, vector<1x128xf32>
    %c112 = arith.constant 112 : index
    %c0_43 = arith.constant 0 : index
    %204 = vector.load %arg4[%c112, %c0_43] : memref<208x128xf32, #tpu.memory_space<vmem>>, vector<1x128xf32>
    %c144 = arith.constant 144 : index
    %c0_44 = arith.constant 0 : index
    %205 = vector.load %arg4[%c144, %c0_44] : memref<208x128xf32, #tpu.memory_space<vmem>>, vector<1x128xf32>
    %c145 = arith.constant 145 : index
    %c0_45 = arith.constant 0 : index
    %206 = vector.load %arg4[%c145, %c0_45] : memref<208x128xf32, #tpu.memory_space<vmem>>, vector<1x128xf32>
    %c146 = arith.constant 146 : index
    %c0_46 = arith.constant 0 : index
    %207 = vector.load %arg4[%c146, %c0_46] : memref<208x128xf32, #tpu.memory_space<vmem>>, vector<1x128xf32>
    %208 = arith.mulf %197, %194 : vector<1x128xf32>
    %209 = arith.mulf %198, %195 : vector<1x128xf32>
    %210 = arith.addf %208, %209 : vector<1x128xf32>
    %cst_47 = arith.constant 0.000000e+00 : f32
    %211 = vector.broadcast %cst_47 : f32 to vector<1x128xf32>
    %212 = arith.subf %211, %197 : vector<1x128xf32>
    %213 = arith.mulf %212, %195 : vector<1x128xf32>
    %214 = arith.mulf %198, %194 : vector<1x128xf32>
    %215 = arith.addf %213, %214 : vector<1x128xf32>
    %216 = arith.mulf %200, %194 : vector<1x128xf32>
    %217 = arith.mulf %201, %195 : vector<1x128xf32>
    %218 = arith.addf %216, %217 : vector<1x128xf32>
    %cst_48 = arith.constant 0.000000e+00 : f32
    %219 = vector.broadcast %cst_48 : f32 to vector<1x128xf32>
    %220 = arith.subf %219, %200 : vector<1x128xf32>
    %221 = arith.mulf %220, %195 : vector<1x128xf32>
    %222 = arith.mulf %201, %194 : vector<1x128xf32>
    %223 = arith.addf %221, %222 : vector<1x128xf32>
    %224 = arith.mulf %203, %194 : vector<1x128xf32>
    %225 = arith.mulf %204, %195 : vector<1x128xf32>
    %226 = arith.addf %224, %225 : vector<1x128xf32>
    %cst_49 = arith.constant 0.000000e+00 : f32
    %227 = vector.broadcast %cst_49 : f32 to vector<1x128xf32>
    %228 = arith.subf %227, %203 : vector<1x128xf32>
    %229 = arith.mulf %228, %195 : vector<1x128xf32>
    %230 = arith.mulf %204, %194 : vector<1x128xf32>
    %231 = arith.addf %229, %230 : vector<1x128xf32>
    %232 = arith.mulf %120, %196 : vector<1x128xf32>
    %233 = arith.mulf %142, %199 : vector<1x128xf32>
    %234 = arith.addf %232, %233 : vector<1x128xf32>
    %235 = arith.mulf %147, %202 : vector<1x128xf32>
    %236 = arith.addf %234, %235 : vector<1x128xf32>
    %237 = arith.mulf %120, %210 : vector<1x128xf32>
    %238 = arith.mulf %142, %218 : vector<1x128xf32>
    %239 = arith.addf %237, %238 : vector<1x128xf32>
    %240 = arith.mulf %147, %226 : vector<1x128xf32>
    %241 = arith.addf %239, %240 : vector<1x128xf32>
    %242 = arith.mulf %120, %215 : vector<1x128xf32>
    %243 = arith.mulf %142, %223 : vector<1x128xf32>
    %244 = arith.addf %242, %243 : vector<1x128xf32>
    %245 = arith.mulf %147, %231 : vector<1x128xf32>
    %246 = arith.addf %244, %245 : vector<1x128xf32>
    %247 = arith.mulf %121, %196 : vector<1x128xf32>
    %248 = arith.mulf %143, %199 : vector<1x128xf32>
    %249 = arith.addf %247, %248 : vector<1x128xf32>
    %250 = arith.mulf %150, %202 : vector<1x128xf32>
    %251 = arith.addf %249, %250 : vector<1x128xf32>
    %252 = arith.mulf %121, %210 : vector<1x128xf32>
    %253 = arith.mulf %143, %218 : vector<1x128xf32>
    %254 = arith.addf %252, %253 : vector<1x128xf32>
    %255 = arith.mulf %150, %226 : vector<1x128xf32>
    %256 = arith.addf %254, %255 : vector<1x128xf32>
    %257 = arith.mulf %121, %215 : vector<1x128xf32>
    %258 = arith.mulf %143, %223 : vector<1x128xf32>
    %259 = arith.addf %257, %258 : vector<1x128xf32>
    %260 = arith.mulf %150, %231 : vector<1x128xf32>
    %261 = arith.addf %259, %260 : vector<1x128xf32>
    %262 = arith.mulf %122, %196 : vector<1x128xf32>
    %263 = arith.mulf %144, %199 : vector<1x128xf32>
    %264 = arith.addf %262, %263 : vector<1x128xf32>
    %265 = arith.mulf %153, %202 : vector<1x128xf32>
    %266 = arith.addf %264, %265 : vector<1x128xf32>
    %267 = arith.mulf %122, %210 : vector<1x128xf32>
    %268 = arith.mulf %144, %218 : vector<1x128xf32>
    %269 = arith.addf %267, %268 : vector<1x128xf32>
    %270 = arith.mulf %153, %226 : vector<1x128xf32>
    %271 = arith.addf %269, %270 : vector<1x128xf32>
    %272 = arith.mulf %122, %215 : vector<1x128xf32>
    %273 = arith.mulf %144, %223 : vector<1x128xf32>
    %274 = arith.addf %272, %273 : vector<1x128xf32>
    %275 = arith.mulf %153, %231 : vector<1x128xf32>
    %276 = arith.addf %274, %275 : vector<1x128xf32>
    %277 = arith.mulf %120, %205 : vector<1x128xf32>
    %278 = arith.mulf %142, %206 : vector<1x128xf32>
    %279 = arith.addf %277, %278 : vector<1x128xf32>
    %280 = arith.mulf %147, %207 : vector<1x128xf32>
    %281 = arith.addf %279, %280 : vector<1x128xf32>
    %282 = arith.addf %281, %100 : vector<1x128xf32>
    %283 = arith.mulf %121, %205 : vector<1x128xf32>
    %284 = arith.mulf %143, %206 : vector<1x128xf32>
    %285 = arith.addf %283, %284 : vector<1x128xf32>
    %286 = arith.mulf %150, %207 : vector<1x128xf32>
    %287 = arith.addf %285, %286 : vector<1x128xf32>
    %288 = arith.addf %287, %101 : vector<1x128xf32>
    %289 = arith.mulf %122, %205 : vector<1x128xf32>
    %290 = arith.mulf %144, %206 : vector<1x128xf32>
    %291 = arith.addf %289, %290 : vector<1x128xf32>
    %292 = arith.mulf %153, %207 : vector<1x128xf32>
    %293 = arith.addf %291, %292 : vector<1x128xf32>
    %294 = arith.addf %293, %102 : vector<1x128xf32>
    %c40_50 = arith.constant 40 : index
    %c0_51 = arith.constant 0 : index
    %295 = vector.load %arg4[%c40_50, %c0_51] : memref<208x128xf32, #tpu.memory_space<vmem>>, vector<14x128xf32>
    %296 = vector.broadcast %236 : vector<1x128xf32> to vector<14x128xf32>
    %297 = arith.mulf %296, %154 : vector<14x128xf32>
    %298 = vector.broadcast %241 : vector<1x128xf32> to vector<14x128xf32>
    %299 = arith.mulf %298, %155 : vector<14x128xf32>
    %300 = arith.addf %297, %299 : vector<14x128xf32>
    %301 = vector.broadcast %246 : vector<1x128xf32> to vector<14x128xf32>
    %302 = arith.mulf %301, %156 : vector<14x128xf32>
    %303 = arith.addf %300, %302 : vector<14x128xf32>
    %304 = vector.broadcast %282 : vector<1x128xf32> to vector<14x128xf32>
    %305 = arith.addf %303, %304 : vector<14x128xf32>
    %306 = arith.mulf %295, %305 : vector<14x128xf32>
    %307 = arith.addf %171, %306 : vector<14x128xf32>
    %308 = vector.broadcast %251 : vector<1x128xf32> to vector<14x128xf32>
    %309 = arith.mulf %308, %154 : vector<14x128xf32>
    %310 = vector.broadcast %256 : vector<1x128xf32> to vector<14x128xf32>
    %311 = arith.mulf %310, %155 : vector<14x128xf32>
    %312 = arith.addf %309, %311 : vector<14x128xf32>
    %313 = vector.broadcast %261 : vector<1x128xf32> to vector<14x128xf32>
    %314 = arith.mulf %313, %156 : vector<14x128xf32>
    %315 = arith.addf %312, %314 : vector<14x128xf32>
    %316 = vector.broadcast %288 : vector<1x128xf32> to vector<14x128xf32>
    %317 = arith.addf %315, %316 : vector<14x128xf32>
    %318 = arith.mulf %295, %317 : vector<14x128xf32>
    %319 = arith.addf %182, %318 : vector<14x128xf32>
    %320 = vector.broadcast %266 : vector<1x128xf32> to vector<14x128xf32>
    %321 = arith.mulf %320, %154 : vector<14x128xf32>
    %322 = vector.broadcast %271 : vector<1x128xf32> to vector<14x128xf32>
    %323 = arith.mulf %322, %155 : vector<14x128xf32>
    %324 = arith.addf %321, %323 : vector<14x128xf32>
    %325 = vector.broadcast %276 : vector<1x128xf32> to vector<14x128xf32>
    %326 = arith.mulf %325, %156 : vector<14x128xf32>
    %327 = arith.addf %324, %326 : vector<14x128xf32>
    %328 = vector.broadcast %294 : vector<1x128xf32> to vector<14x128xf32>
    %329 = arith.addf %327, %328 : vector<14x128xf32>
    %330 = arith.mulf %295, %329 : vector<14x128xf32>
    %331 = arith.addf %193, %330 : vector<14x128xf32>
    %332 = vector.extract_strided_slice %93 {offsets = [1, 0], sizes = [1, 128], strides = [1, 1]} : vector<4x128xf32> to vector<1x128xf32>
    %333 = vector.extract_strided_slice %88 {offsets = [1, 0], sizes = [1, 128], strides = [1, 1]} : vector<4x128xf32> to vector<1x128xf32>
    %c113 = arith.constant 113 : index
    %c0_52 = arith.constant 0 : index
    %334 = vector.load %arg4[%c113, %c0_52] : memref<208x128xf32, #tpu.memory_space<vmem>>, vector<1x128xf32>
    %c114 = arith.constant 114 : index
    %c0_53 = arith.constant 0 : index
    %335 = vector.load %arg4[%c114, %c0_53] : memref<208x128xf32, #tpu.memory_space<vmem>>, vector<1x128xf32>
    %c115 = arith.constant 115 : index
    %c0_54 = arith.constant 0 : index
    %336 = vector.load %arg4[%c115, %c0_54] : memref<208x128xf32, #tpu.memory_space<vmem>>, vector<1x128xf32>
    %c116 = arith.constant 116 : index
    %c0_55 = arith.constant 0 : index
    %337 = vector.load %arg4[%c116, %c0_55] : memref<208x128xf32, #tpu.memory_space<vmem>>, vector<1x128xf32>
    %c117 = arith.constant 117 : index
    %c0_56 = arith.constant 0 : index
    %338 = vector.load %arg4[%c117, %c0_56] : memref<208x128xf32, #tpu.memory_space<vmem>>, vector<1x128xf32>
    %c118 = arith.constant 118 : index
    %c0_57 = arith.constant 0 : index
    %339 = vector.load %arg4[%c118, %c0_57] : memref<208x128xf32, #tpu.memory_space<vmem>>, vector<1x128xf32>
    %c119 = arith.constant 119 : index
    %c0_58 = arith.constant 0 : index
    %340 = vector.load %arg4[%c119, %c0_58] : memref<208x128xf32, #tpu.memory_space<vmem>>, vector<1x128xf32>
    %c120 = arith.constant 120 : index
    %c0_59 = arith.constant 0 : index
    %341 = vector.load %arg4[%c120, %c0_59] : memref<208x128xf32, #tpu.memory_space<vmem>>, vector<1x128xf32>
    %c121 = arith.constant 121 : index
    %c0_60 = arith.constant 0 : index
    %342 = vector.load %arg4[%c121, %c0_60] : memref<208x128xf32, #tpu.memory_space<vmem>>, vector<1x128xf32>
    %c147 = arith.constant 147 : index
    %c0_61 = arith.constant 0 : index
    %343 = vector.load %arg4[%c147, %c0_61] : memref<208x128xf32, #tpu.memory_space<vmem>>, vector<1x128xf32>
    %c148 = arith.constant 148 : index
    %c0_62 = arith.constant 0 : index
    %344 = vector.load %arg4[%c148, %c0_62] : memref<208x128xf32, #tpu.memory_space<vmem>>, vector<1x128xf32>
    %c149 = arith.constant 149 : index
    %c0_63 = arith.constant 0 : index
    %345 = vector.load %arg4[%c149, %c0_63] : memref<208x128xf32, #tpu.memory_space<vmem>>, vector<1x128xf32>
    %346 = arith.mulf %335, %332 : vector<1x128xf32>
    %347 = arith.mulf %336, %333 : vector<1x128xf32>
    %348 = arith.addf %346, %347 : vector<1x128xf32>
    %cst_64 = arith.constant 0.000000e+00 : f32
    %349 = vector.broadcast %cst_64 : f32 to vector<1x128xf32>
    %350 = arith.subf %349, %335 : vector<1x128xf32>
    %351 = arith.mulf %350, %333 : vector<1x128xf32>
    %352 = arith.mulf %336, %332 : vector<1x128xf32>
    %353 = arith.addf %351, %352 : vector<1x128xf32>
    %354 = arith.mulf %338, %332 : vector<1x128xf32>
    %355 = arith.mulf %339, %333 : vector<1x128xf32>
    %356 = arith.addf %354, %355 : vector<1x128xf32>
    %cst_65 = arith.constant 0.000000e+00 : f32
    %357 = vector.broadcast %cst_65 : f32 to vector<1x128xf32>
    %358 = arith.subf %357, %338 : vector<1x128xf32>
    %359 = arith.mulf %358, %333 : vector<1x128xf32>
    %360 = arith.mulf %339, %332 : vector<1x128xf32>
    %361 = arith.addf %359, %360 : vector<1x128xf32>
    %362 = arith.mulf %341, %332 : vector<1x128xf32>
    %363 = arith.mulf %342, %333 : vector<1x128xf32>
    %364 = arith.addf %362, %363 : vector<1x128xf32>
    %cst_66 = arith.constant 0.000000e+00 : f32
    %365 = vector.broadcast %cst_66 : f32 to vector<1x128xf32>
    %366 = arith.subf %365, %341 : vector<1x128xf32>
    %367 = arith.mulf %366, %333 : vector<1x128xf32>
    %368 = arith.mulf %342, %332 : vector<1x128xf32>
    %369 = arith.addf %367, %368 : vector<1x128xf32>
    %370 = arith.mulf %236, %334 : vector<1x128xf32>
    %371 = arith.mulf %241, %337 : vector<1x128xf32>
    %372 = arith.addf %370, %371 : vector<1x128xf32>
    %373 = arith.mulf %246, %340 : vector<1x128xf32>
    %374 = arith.addf %372, %373 : vector<1x128xf32>
    %375 = arith.mulf %236, %348 : vector<1x128xf32>
    %376 = arith.mulf %241, %356 : vector<1x128xf32>
    %377 = arith.addf %375, %376 : vector<1x128xf32>
    %378 = arith.mulf %246, %364 : vector<1x128xf32>
    %379 = arith.addf %377, %378 : vector<1x128xf32>
    %380 = arith.mulf %236, %353 : vector<1x128xf32>
    %381 = arith.mulf %241, %361 : vector<1x128xf32>
    %382 = arith.addf %380, %381 : vector<1x128xf32>
    %383 = arith.mulf %246, %369 : vector<1x128xf32>
    %384 = arith.addf %382, %383 : vector<1x128xf32>
    %385 = arith.mulf %251, %334 : vector<1x128xf32>
    %386 = arith.mulf %256, %337 : vector<1x128xf32>
    %387 = arith.addf %385, %386 : vector<1x128xf32>
    %388 = arith.mulf %261, %340 : vector<1x128xf32>
    %389 = arith.addf %387, %388 : vector<1x128xf32>
    %390 = arith.mulf %251, %348 : vector<1x128xf32>
    %391 = arith.mulf %256, %356 : vector<1x128xf32>
    %392 = arith.addf %390, %391 : vector<1x128xf32>
    %393 = arith.mulf %261, %364 : vector<1x128xf32>
    %394 = arith.addf %392, %393 : vector<1x128xf32>
    %395 = arith.mulf %251, %353 : vector<1x128xf32>
    %396 = arith.mulf %256, %361 : vector<1x128xf32>
    %397 = arith.addf %395, %396 : vector<1x128xf32>
    %398 = arith.mulf %261, %369 : vector<1x128xf32>
    %399 = arith.addf %397, %398 : vector<1x128xf32>
    %400 = arith.mulf %266, %334 : vector<1x128xf32>
    %401 = arith.mulf %271, %337 : vector<1x128xf32>
    %402 = arith.addf %400, %401 : vector<1x128xf32>
    %403 = arith.mulf %276, %340 : vector<1x128xf32>
    %404 = arith.addf %402, %403 : vector<1x128xf32>
    %405 = arith.mulf %266, %348 : vector<1x128xf32>
    %406 = arith.mulf %271, %356 : vector<1x128xf32>
    %407 = arith.addf %405, %406 : vector<1x128xf32>
    %408 = arith.mulf %276, %364 : vector<1x128xf32>
    %409 = arith.addf %407, %408 : vector<1x128xf32>
    %410 = arith.mulf %266, %353 : vector<1x128xf32>
    %411 = arith.mulf %271, %361 : vector<1x128xf32>
    %412 = arith.addf %410, %411 : vector<1x128xf32>
    %413 = arith.mulf %276, %369 : vector<1x128xf32>
    %414 = arith.addf %412, %413 : vector<1x128xf32>
    %415 = arith.mulf %236, %343 : vector<1x128xf32>
    %416 = arith.mulf %241, %344 : vector<1x128xf32>
    %417 = arith.addf %415, %416 : vector<1x128xf32>
    %418 = arith.mulf %246, %345 : vector<1x128xf32>
    %419 = arith.addf %417, %418 : vector<1x128xf32>
    %420 = arith.addf %419, %282 : vector<1x128xf32>
    %421 = arith.mulf %251, %343 : vector<1x128xf32>
    %422 = arith.mulf %256, %344 : vector<1x128xf32>
    %423 = arith.addf %421, %422 : vector<1x128xf32>
    %424 = arith.mulf %261, %345 : vector<1x128xf32>
    %425 = arith.addf %423, %424 : vector<1x128xf32>
    %426 = arith.addf %425, %288 : vector<1x128xf32>
    %427 = arith.mulf %266, %343 : vector<1x128xf32>
    %428 = arith.mulf %271, %344 : vector<1x128xf32>
    %429 = arith.addf %427, %428 : vector<1x128xf32>
    %430 = arith.mulf %276, %345 : vector<1x128xf32>
    %431 = arith.addf %429, %430 : vector<1x128xf32>
    %432 = arith.addf %431, %294 : vector<1x128xf32>
    %c56_67 = arith.constant 56 : index
    %c0_68 = arith.constant 0 : index
    %433 = vector.load %arg4[%c56_67, %c0_68] : memref<208x128xf32, #tpu.memory_space<vmem>>, vector<14x128xf32>
    %434 = vector.broadcast %374 : vector<1x128xf32> to vector<14x128xf32>
    %435 = arith.mulf %434, %154 : vector<14x128xf32>
    %436 = vector.broadcast %379 : vector<1x128xf32> to vector<14x128xf32>
    %437 = arith.mulf %436, %155 : vector<14x128xf32>
    %438 = arith.addf %435, %437 : vector<14x128xf32>
    %439 = vector.broadcast %384 : vector<1x128xf32> to vector<14x128xf32>
    %440 = arith.mulf %439, %156 : vector<14x128xf32>
    %441 = arith.addf %438, %440 : vector<14x128xf32>
    %442 = vector.broadcast %420 : vector<1x128xf32> to vector<14x128xf32>
    %443 = arith.addf %441, %442 : vector<14x128xf32>
    %444 = arith.mulf %433, %443 : vector<14x128xf32>
    %445 = arith.addf %307, %444 : vector<14x128xf32>
    %446 = vector.broadcast %389 : vector<1x128xf32> to vector<14x128xf32>
    %447 = arith.mulf %446, %154 : vector<14x128xf32>
    %448 = vector.broadcast %394 : vector<1x128xf32> to vector<14x128xf32>
    %449 = arith.mulf %448, %155 : vector<14x128xf32>
    %450 = arith.addf %447, %449 : vector<14x128xf32>
    %451 = vector.broadcast %399 : vector<1x128xf32> to vector<14x128xf32>
    %452 = arith.mulf %451, %156 : vector<14x128xf32>
    %453 = arith.addf %450, %452 : vector<14x128xf32>
    %454 = vector.broadcast %426 : vector<1x128xf32> to vector<14x128xf32>
    %455 = arith.addf %453, %454 : vector<14x128xf32>
    %456 = arith.mulf %433, %455 : vector<14x128xf32>
    %457 = arith.addf %319, %456 : vector<14x128xf32>
    %458 = vector.broadcast %404 : vector<1x128xf32> to vector<14x128xf32>
    %459 = arith.mulf %458, %154 : vector<14x128xf32>
    %460 = vector.broadcast %409 : vector<1x128xf32> to vector<14x128xf32>
    %461 = arith.mulf %460, %155 : vector<14x128xf32>
    %462 = arith.addf %459, %461 : vector<14x128xf32>
    %463 = vector.broadcast %414 : vector<1x128xf32> to vector<14x128xf32>
    %464 = arith.mulf %463, %156 : vector<14x128xf32>
    %465 = arith.addf %462, %464 : vector<14x128xf32>
    %466 = vector.broadcast %432 : vector<1x128xf32> to vector<14x128xf32>
    %467 = arith.addf %465, %466 : vector<14x128xf32>
    %468 = arith.mulf %433, %467 : vector<14x128xf32>
    %469 = arith.addf %331, %468 : vector<14x128xf32>
    %470 = vector.extract_strided_slice %93 {offsets = [2, 0], sizes = [1, 128], strides = [1, 1]} : vector<4x128xf32> to vector<1x128xf32>
    %471 = vector.extract_strided_slice %88 {offsets = [2, 0], sizes = [1, 128], strides = [1, 1]} : vector<4x128xf32> to vector<1x128xf32>
    %c122 = arith.constant 122 : index
    %c0_69 = arith.constant 0 : index
    %472 = vector.load %arg4[%c122, %c0_69] : memref<208x128xf32, #tpu.memory_space<vmem>>, vector<1x128xf32>
    %c123 = arith.constant 123 : index
    %c0_70 = arith.constant 0 : index
    %473 = vector.load %arg4[%c123, %c0_70] : memref<208x128xf32, #tpu.memory_space<vmem>>, vector<1x128xf32>
    %c124 = arith.constant 124 : index
    %c0_71 = arith.constant 0 : index
    %474 = vector.load %arg4[%c124, %c0_71] : memref<208x128xf32, #tpu.memory_space<vmem>>, vector<1x128xf32>
    %c125 = arith.constant 125 : index
    %c0_72 = arith.constant 0 : index
    %475 = vector.load %arg4[%c125, %c0_72] : memref<208x128xf32, #tpu.memory_space<vmem>>, vector<1x128xf32>
    %c126 = arith.constant 126 : index
    %c0_73 = arith.constant 0 : index
    %476 = vector.load %arg4[%c126, %c0_73] : memref<208x128xf32, #tpu.memory_space<vmem>>, vector<1x128xf32>
    %c127 = arith.constant 127 : index
    %c0_74 = arith.constant 0 : index
    %477 = vector.load %arg4[%c127, %c0_74] : memref<208x128xf32, #tpu.memory_space<vmem>>, vector<1x128xf32>
    %c128 = arith.constant 128 : index
    %c0_75 = arith.constant 0 : index
    %478 = vector.load %arg4[%c128, %c0_75] : memref<208x128xf32, #tpu.memory_space<vmem>>, vector<1x128xf32>
    %c129 = arith.constant 129 : index
    %c0_76 = arith.constant 0 : index
    %479 = vector.load %arg4[%c129, %c0_76] : memref<208x128xf32, #tpu.memory_space<vmem>>, vector<1x128xf32>
    %c130 = arith.constant 130 : index
    %c0_77 = arith.constant 0 : index
    %480 = vector.load %arg4[%c130, %c0_77] : memref<208x128xf32, #tpu.memory_space<vmem>>, vector<1x128xf32>
    %c150 = arith.constant 150 : index
    %c0_78 = arith.constant 0 : index
    %481 = vector.load %arg4[%c150, %c0_78] : memref<208x128xf32, #tpu.memory_space<vmem>>, vector<1x128xf32>
    %c151 = arith.constant 151 : index
    %c0_79 = arith.constant 0 : index
    %482 = vector.load %arg4[%c151, %c0_79] : memref<208x128xf32, #tpu.memory_space<vmem>>, vector<1x128xf32>
    %c152 = arith.constant 152 : index
    %c0_80 = arith.constant 0 : index
    %483 = vector.load %arg4[%c152, %c0_80] : memref<208x128xf32, #tpu.memory_space<vmem>>, vector<1x128xf32>
    %484 = arith.mulf %473, %470 : vector<1x128xf32>
    %485 = arith.mulf %474, %471 : vector<1x128xf32>
    %486 = arith.addf %484, %485 : vector<1x128xf32>
    %cst_81 = arith.constant 0.000000e+00 : f32
    %487 = vector.broadcast %cst_81 : f32 to vector<1x128xf32>
    %488 = arith.subf %487, %473 : vector<1x128xf32>
    %489 = arith.mulf %488, %471 : vector<1x128xf32>
    %490 = arith.mulf %474, %470 : vector<1x128xf32>
    %491 = arith.addf %489, %490 : vector<1x128xf32>
    %492 = arith.mulf %476, %470 : vector<1x128xf32>
    %493 = arith.mulf %477, %471 : vector<1x128xf32>
    %494 = arith.addf %492, %493 : vector<1x128xf32>
    %cst_82 = arith.constant 0.000000e+00 : f32
    %495 = vector.broadcast %cst_82 : f32 to vector<1x128xf32>
    %496 = arith.subf %495, %476 : vector<1x128xf32>
    %497 = arith.mulf %496, %471 : vector<1x128xf32>
    %498 = arith.mulf %477, %470 : vector<1x128xf32>
    %499 = arith.addf %497, %498 : vector<1x128xf32>
    %500 = arith.mulf %479, %470 : vector<1x128xf32>
    %501 = arith.mulf %480, %471 : vector<1x128xf32>
    %502 = arith.addf %500, %501 : vector<1x128xf32>
    %cst_83 = arith.constant 0.000000e+00 : f32
    %503 = vector.broadcast %cst_83 : f32 to vector<1x128xf32>
    %504 = arith.subf %503, %479 : vector<1x128xf32>
    %505 = arith.mulf %504, %471 : vector<1x128xf32>
    %506 = arith.mulf %480, %470 : vector<1x128xf32>
    %507 = arith.addf %505, %506 : vector<1x128xf32>
    %508 = arith.mulf %374, %472 : vector<1x128xf32>
    %509 = arith.mulf %379, %475 : vector<1x128xf32>
    %510 = arith.addf %508, %509 : vector<1x128xf32>
    %511 = arith.mulf %384, %478 : vector<1x128xf32>
    %512 = arith.addf %510, %511 : vector<1x128xf32>
    %513 = arith.mulf %374, %486 : vector<1x128xf32>
    %514 = arith.mulf %379, %494 : vector<1x128xf32>
    %515 = arith.addf %513, %514 : vector<1x128xf32>
    %516 = arith.mulf %384, %502 : vector<1x128xf32>
    %517 = arith.addf %515, %516 : vector<1x128xf32>
    %518 = arith.mulf %374, %491 : vector<1x128xf32>
    %519 = arith.mulf %379, %499 : vector<1x128xf32>
    %520 = arith.addf %518, %519 : vector<1x128xf32>
    %521 = arith.mulf %384, %507 : vector<1x128xf32>
    %522 = arith.addf %520, %521 : vector<1x128xf32>
    %523 = arith.mulf %389, %472 : vector<1x128xf32>
    %524 = arith.mulf %394, %475 : vector<1x128xf32>
    %525 = arith.addf %523, %524 : vector<1x128xf32>
    %526 = arith.mulf %399, %478 : vector<1x128xf32>
    %527 = arith.addf %525, %526 : vector<1x128xf32>
    %528 = arith.mulf %389, %486 : vector<1x128xf32>
    %529 = arith.mulf %394, %494 : vector<1x128xf32>
    %530 = arith.addf %528, %529 : vector<1x128xf32>
    %531 = arith.mulf %399, %502 : vector<1x128xf32>
    %532 = arith.addf %530, %531 : vector<1x128xf32>
    %533 = arith.mulf %389, %491 : vector<1x128xf32>
    %534 = arith.mulf %394, %499 : vector<1x128xf32>
    %535 = arith.addf %533, %534 : vector<1x128xf32>
    %536 = arith.mulf %399, %507 : vector<1x128xf32>
    %537 = arith.addf %535, %536 : vector<1x128xf32>
    %538 = arith.mulf %404, %472 : vector<1x128xf32>
    %539 = arith.mulf %409, %475 : vector<1x128xf32>
    %540 = arith.addf %538, %539 : vector<1x128xf32>
    %541 = arith.mulf %414, %478 : vector<1x128xf32>
    %542 = arith.addf %540, %541 : vector<1x128xf32>
    %543 = arith.mulf %404, %486 : vector<1x128xf32>
    %544 = arith.mulf %409, %494 : vector<1x128xf32>
    %545 = arith.addf %543, %544 : vector<1x128xf32>
    %546 = arith.mulf %414, %502 : vector<1x128xf32>
    %547 = arith.addf %545, %546 : vector<1x128xf32>
    %548 = arith.mulf %404, %491 : vector<1x128xf32>
    %549 = arith.mulf %409, %499 : vector<1x128xf32>
    %550 = arith.addf %548, %549 : vector<1x128xf32>
    %551 = arith.mulf %414, %507 : vector<1x128xf32>
    %552 = arith.addf %550, %551 : vector<1x128xf32>
    %553 = arith.mulf %374, %481 : vector<1x128xf32>
    %554 = arith.mulf %379, %482 : vector<1x128xf32>
    %555 = arith.addf %553, %554 : vector<1x128xf32>
    %556 = arith.mulf %384, %483 : vector<1x128xf32>
    %557 = arith.addf %555, %556 : vector<1x128xf32>
    %558 = arith.addf %557, %420 : vector<1x128xf32>
    %559 = arith.mulf %389, %481 : vector<1x128xf32>
    %560 = arith.mulf %394, %482 : vector<1x128xf32>
    %561 = arith.addf %559, %560 : vector<1x128xf32>
    %562 = arith.mulf %399, %483 : vector<1x128xf32>
    %563 = arith.addf %561, %562 : vector<1x128xf32>
    %564 = arith.addf %563, %426 : vector<1x128xf32>
    %565 = arith.mulf %404, %481 : vector<1x128xf32>
    %566 = arith.mulf %409, %482 : vector<1x128xf32>
    %567 = arith.addf %565, %566 : vector<1x128xf32>
    %568 = arith.mulf %414, %483 : vector<1x128xf32>
    %569 = arith.addf %567, %568 : vector<1x128xf32>
    %570 = arith.addf %569, %432 : vector<1x128xf32>
    %c72 = arith.constant 72 : index
    %c0_84 = arith.constant 0 : index
    %571 = vector.load %arg4[%c72, %c0_84] : memref<208x128xf32, #tpu.memory_space<vmem>>, vector<14x128xf32>
    %572 = vector.broadcast %512 : vector<1x128xf32> to vector<14x128xf32>
    %573 = arith.mulf %572, %154 : vector<14x128xf32>
    %574 = vector.broadcast %517 : vector<1x128xf32> to vector<14x128xf32>
    %575 = arith.mulf %574, %155 : vector<14x128xf32>
    %576 = arith.addf %573, %575 : vector<14x128xf32>
    %577 = vector.broadcast %522 : vector<1x128xf32> to vector<14x128xf32>
    %578 = arith.mulf %577, %156 : vector<14x128xf32>
    %579 = arith.addf %576, %578 : vector<14x128xf32>
    %580 = vector.broadcast %558 : vector<1x128xf32> to vector<14x128xf32>
    %581 = arith.addf %579, %580 : vector<14x128xf32>
    %582 = arith.mulf %571, %581 : vector<14x128xf32>
    %583 = arith.addf %445, %582 : vector<14x128xf32>
    %584 = vector.broadcast %527 : vector<1x128xf32> to vector<14x128xf32>
    %585 = arith.mulf %584, %154 : vector<14x128xf32>
    %586 = vector.broadcast %532 : vector<1x128xf32> to vector<14x128xf32>
    %587 = arith.mulf %586, %155 : vector<14x128xf32>
    %588 = arith.addf %585, %587 : vector<14x128xf32>
    %589 = vector.broadcast %537 : vector<1x128xf32> to vector<14x128xf32>
    %590 = arith.mulf %589, %156 : vector<14x128xf32>
    %591 = arith.addf %588, %590 : vector<14x128xf32>
    %592 = vector.broadcast %564 : vector<1x128xf32> to vector<14x128xf32>
    %593 = arith.addf %591, %592 : vector<14x128xf32>
    %594 = arith.mulf %571, %593 : vector<14x128xf32>
    %595 = arith.addf %457, %594 : vector<14x128xf32>
    %596 = vector.broadcast %542 : vector<1x128xf32> to vector<14x128xf32>
    %597 = arith.mulf %596, %154 : vector<14x128xf32>
    %598 = vector.broadcast %547 : vector<1x128xf32> to vector<14x128xf32>
    %599 = arith.mulf %598, %155 : vector<14x128xf32>
    %600 = arith.addf %597, %599 : vector<14x128xf32>
    %601 = vector.broadcast %552 : vector<1x128xf32> to vector<14x128xf32>
    %602 = arith.mulf %601, %156 : vector<14x128xf32>
    %603 = arith.addf %600, %602 : vector<14x128xf32>
    %604 = vector.broadcast %570 : vector<1x128xf32> to vector<14x128xf32>
    %605 = arith.addf %603, %604 : vector<14x128xf32>
    %606 = arith.mulf %571, %605 : vector<14x128xf32>
    %607 = arith.addf %469, %606 : vector<14x128xf32>
    %608 = vector.extract_strided_slice %93 {offsets = [3, 0], sizes = [1, 128], strides = [1, 1]} : vector<4x128xf32> to vector<1x128xf32>
    %609 = vector.extract_strided_slice %88 {offsets = [3, 0], sizes = [1, 128], strides = [1, 1]} : vector<4x128xf32> to vector<1x128xf32>
    %c131 = arith.constant 131 : index
    %c0_85 = arith.constant 0 : index
    %610 = vector.load %arg4[%c131, %c0_85] : memref<208x128xf32, #tpu.memory_space<vmem>>, vector<1x128xf32>
    %c132 = arith.constant 132 : index
    %c0_86 = arith.constant 0 : index
    %611 = vector.load %arg4[%c132, %c0_86] : memref<208x128xf32, #tpu.memory_space<vmem>>, vector<1x128xf32>
    %c133 = arith.constant 133 : index
    %c0_87 = arith.constant 0 : index
    %612 = vector.load %arg4[%c133, %c0_87] : memref<208x128xf32, #tpu.memory_space<vmem>>, vector<1x128xf32>
    %c134 = arith.constant 134 : index
    %c0_88 = arith.constant 0 : index
    %613 = vector.load %arg4[%c134, %c0_88] : memref<208x128xf32, #tpu.memory_space<vmem>>, vector<1x128xf32>
    %c135 = arith.constant 135 : index
    %c0_89 = arith.constant 0 : index
    %614 = vector.load %arg4[%c135, %c0_89] : memref<208x128xf32, #tpu.memory_space<vmem>>, vector<1x128xf32>
    %c136 = arith.constant 136 : index
    %c0_90 = arith.constant 0 : index
    %615 = vector.load %arg4[%c136, %c0_90] : memref<208x128xf32, #tpu.memory_space<vmem>>, vector<1x128xf32>
    %c137 = arith.constant 137 : index
    %c0_91 = arith.constant 0 : index
    %616 = vector.load %arg4[%c137, %c0_91] : memref<208x128xf32, #tpu.memory_space<vmem>>, vector<1x128xf32>
    %c138 = arith.constant 138 : index
    %c0_92 = arith.constant 0 : index
    %617 = vector.load %arg4[%c138, %c0_92] : memref<208x128xf32, #tpu.memory_space<vmem>>, vector<1x128xf32>
    %c139 = arith.constant 139 : index
    %c0_93 = arith.constant 0 : index
    %618 = vector.load %arg4[%c139, %c0_93] : memref<208x128xf32, #tpu.memory_space<vmem>>, vector<1x128xf32>
    %c153 = arith.constant 153 : index
    %c0_94 = arith.constant 0 : index
    %619 = vector.load %arg4[%c153, %c0_94] : memref<208x128xf32, #tpu.memory_space<vmem>>, vector<1x128xf32>
    %c154 = arith.constant 154 : index
    %c0_95 = arith.constant 0 : index
    %620 = vector.load %arg4[%c154, %c0_95] : memref<208x128xf32, #tpu.memory_space<vmem>>, vector<1x128xf32>
    %c155 = arith.constant 155 : index
    %c0_96 = arith.constant 0 : index
    %621 = vector.load %arg4[%c155, %c0_96] : memref<208x128xf32, #tpu.memory_space<vmem>>, vector<1x128xf32>
    %622 = arith.mulf %611, %608 : vector<1x128xf32>
    %623 = arith.mulf %612, %609 : vector<1x128xf32>
    %624 = arith.addf %622, %623 : vector<1x128xf32>
    %cst_97 = arith.constant 0.000000e+00 : f32
    %625 = vector.broadcast %cst_97 : f32 to vector<1x128xf32>
    %626 = arith.subf %625, %611 : vector<1x128xf32>
    %627 = arith.mulf %626, %609 : vector<1x128xf32>
    %628 = arith.mulf %612, %608 : vector<1x128xf32>
    %629 = arith.addf %627, %628 : vector<1x128xf32>
    %630 = arith.mulf %614, %608 : vector<1x128xf32>
    %631 = arith.mulf %615, %609 : vector<1x128xf32>
    %632 = arith.addf %630, %631 : vector<1x128xf32>
    %cst_98 = arith.constant 0.000000e+00 : f32
    %633 = vector.broadcast %cst_98 : f32 to vector<1x128xf32>
    %634 = arith.subf %633, %614 : vector<1x128xf32>
    %635 = arith.mulf %634, %609 : vector<1x128xf32>
    %636 = arith.mulf %615, %608 : vector<1x128xf32>
    %637 = arith.addf %635, %636 : vector<1x128xf32>
    %638 = arith.mulf %617, %608 : vector<1x128xf32>
    %639 = arith.mulf %618, %609 : vector<1x128xf32>
    %640 = arith.addf %638, %639 : vector<1x128xf32>
    %cst_99 = arith.constant 0.000000e+00 : f32
    %641 = vector.broadcast %cst_99 : f32 to vector<1x128xf32>
    %642 = arith.subf %641, %617 : vector<1x128xf32>
    %643 = arith.mulf %642, %609 : vector<1x128xf32>
    %644 = arith.mulf %618, %608 : vector<1x128xf32>
    %645 = arith.addf %643, %644 : vector<1x128xf32>
    %646 = arith.mulf %512, %610 : vector<1x128xf32>
    %647 = arith.mulf %517, %613 : vector<1x128xf32>
    %648 = arith.addf %646, %647 : vector<1x128xf32>
    %649 = arith.mulf %522, %616 : vector<1x128xf32>
    %650 = arith.addf %648, %649 : vector<1x128xf32>
    %651 = arith.mulf %512, %624 : vector<1x128xf32>
    %652 = arith.mulf %517, %632 : vector<1x128xf32>
    %653 = arith.addf %651, %652 : vector<1x128xf32>
    %654 = arith.mulf %522, %640 : vector<1x128xf32>
    %655 = arith.addf %653, %654 : vector<1x128xf32>
    %656 = arith.mulf %512, %629 : vector<1x128xf32>
    %657 = arith.mulf %517, %637 : vector<1x128xf32>
    %658 = arith.addf %656, %657 : vector<1x128xf32>
    %659 = arith.mulf %522, %645 : vector<1x128xf32>
    %660 = arith.addf %658, %659 : vector<1x128xf32>
    %661 = arith.mulf %527, %610 : vector<1x128xf32>
    %662 = arith.mulf %532, %613 : vector<1x128xf32>
    %663 = arith.addf %661, %662 : vector<1x128xf32>
    %664 = arith.mulf %537, %616 : vector<1x128xf32>
    %665 = arith.addf %663, %664 : vector<1x128xf32>
    %666 = arith.mulf %527, %624 : vector<1x128xf32>
    %667 = arith.mulf %532, %632 : vector<1x128xf32>
    %668 = arith.addf %666, %667 : vector<1x128xf32>
    %669 = arith.mulf %537, %640 : vector<1x128xf32>
    %670 = arith.addf %668, %669 : vector<1x128xf32>
    %671 = arith.mulf %527, %629 : vector<1x128xf32>
    %672 = arith.mulf %532, %637 : vector<1x128xf32>
    %673 = arith.addf %671, %672 : vector<1x128xf32>
    %674 = arith.mulf %537, %645 : vector<1x128xf32>
    %675 = arith.addf %673, %674 : vector<1x128xf32>
    %676 = arith.mulf %542, %610 : vector<1x128xf32>
    %677 = arith.mulf %547, %613 : vector<1x128xf32>
    %678 = arith.addf %676, %677 : vector<1x128xf32>
    %679 = arith.mulf %552, %616 : vector<1x128xf32>
    %680 = arith.addf %678, %679 : vector<1x128xf32>
    %681 = arith.mulf %542, %624 : vector<1x128xf32>
    %682 = arith.mulf %547, %632 : vector<1x128xf32>
    %683 = arith.addf %681, %682 : vector<1x128xf32>
    %684 = arith.mulf %552, %640 : vector<1x128xf32>
    %685 = arith.addf %683, %684 : vector<1x128xf32>
    %686 = arith.mulf %542, %629 : vector<1x128xf32>
    %687 = arith.mulf %547, %637 : vector<1x128xf32>
    %688 = arith.addf %686, %687 : vector<1x128xf32>
    %689 = arith.mulf %552, %645 : vector<1x128xf32>
    %690 = arith.addf %688, %689 : vector<1x128xf32>
    %691 = arith.mulf %512, %619 : vector<1x128xf32>
    %692 = arith.mulf %517, %620 : vector<1x128xf32>
    %693 = arith.addf %691, %692 : vector<1x128xf32>
    %694 = arith.mulf %522, %621 : vector<1x128xf32>
    %695 = arith.addf %693, %694 : vector<1x128xf32>
    %696 = arith.addf %695, %558 : vector<1x128xf32>
    %697 = arith.mulf %527, %619 : vector<1x128xf32>
    %698 = arith.mulf %532, %620 : vector<1x128xf32>
    %699 = arith.addf %697, %698 : vector<1x128xf32>
    %700 = arith.mulf %537, %621 : vector<1x128xf32>
    %701 = arith.addf %699, %700 : vector<1x128xf32>
    %702 = arith.addf %701, %564 : vector<1x128xf32>
    %703 = arith.mulf %542, %619 : vector<1x128xf32>
    %704 = arith.mulf %547, %620 : vector<1x128xf32>
    %705 = arith.addf %703, %704 : vector<1x128xf32>
    %706 = arith.mulf %552, %621 : vector<1x128xf32>
    %707 = arith.addf %705, %706 : vector<1x128xf32>
    %708 = arith.addf %707, %570 : vector<1x128xf32>
    %c88 = arith.constant 88 : index
    %c0_100 = arith.constant 0 : index
    %709 = vector.load %arg4[%c88, %c0_100] : memref<208x128xf32, #tpu.memory_space<vmem>>, vector<14x128xf32>
    %710 = vector.broadcast %650 : vector<1x128xf32> to vector<14x128xf32>
    %711 = arith.mulf %710, %154 : vector<14x128xf32>
    %712 = vector.broadcast %655 : vector<1x128xf32> to vector<14x128xf32>
    %713 = arith.mulf %712, %155 : vector<14x128xf32>
    %714 = arith.addf %711, %713 : vector<14x128xf32>
    %715 = vector.broadcast %660 : vector<1x128xf32> to vector<14x128xf32>
    %716 = arith.mulf %715, %156 : vector<14x128xf32>
    %717 = arith.addf %714, %716 : vector<14x128xf32>
    %718 = vector.broadcast %696 : vector<1x128xf32> to vector<14x128xf32>
    %719 = arith.addf %717, %718 : vector<14x128xf32>
    %720 = arith.mulf %709, %719 : vector<14x128xf32>
    %721 = arith.addf %583, %720 : vector<14x128xf32>
    %722 = vector.broadcast %665 : vector<1x128xf32> to vector<14x128xf32>
    %723 = arith.mulf %722, %154 : vector<14x128xf32>
    %724 = vector.broadcast %670 : vector<1x128xf32> to vector<14x128xf32>
    %725 = arith.mulf %724, %155 : vector<14x128xf32>
    %726 = arith.addf %723, %725 : vector<14x128xf32>
    %727 = vector.broadcast %675 : vector<1x128xf32> to vector<14x128xf32>
    %728 = arith.mulf %727, %156 : vector<14x128xf32>
    %729 = arith.addf %726, %728 : vector<14x128xf32>
    %730 = vector.broadcast %702 : vector<1x128xf32> to vector<14x128xf32>
    %731 = arith.addf %729, %730 : vector<14x128xf32>
    %732 = arith.mulf %709, %731 : vector<14x128xf32>
    %733 = arith.addf %595, %732 : vector<14x128xf32>
    %734 = vector.broadcast %680 : vector<1x128xf32> to vector<14x128xf32>
    %735 = arith.mulf %734, %154 : vector<14x128xf32>
    %736 = vector.broadcast %685 : vector<1x128xf32> to vector<14x128xf32>
    %737 = arith.mulf %736, %155 : vector<14x128xf32>
    %738 = arith.addf %735, %737 : vector<14x128xf32>
    %739 = vector.broadcast %690 : vector<1x128xf32> to vector<14x128xf32>
    %740 = arith.mulf %739, %156 : vector<14x128xf32>
    %741 = arith.addf %738, %740 : vector<14x128xf32>
    %742 = vector.broadcast %708 : vector<1x128xf32> to vector<14x128xf32>
    %743 = arith.addf %741, %742 : vector<14x128xf32>
    %744 = arith.mulf %709, %743 : vector<14x128xf32>
    %745 = arith.addf %607, %744 : vector<14x128xf32>
    %746 = arith.mulf %721, %159 : vector<14x128xf32>
    %747 = vector.extract_strided_slice %746 {offsets = [4, 0], sizes = [10, 128], strides = [1, 1]} : vector<14x128xf32> to vector<10x128xf32>
    %748 = tpu.concatenate %94, %747 in 0 : vector<4x128xf32>, vector<10x128xf32> -> vector<14x128xf32>
    %c0_101 = arith.constant 0 : index
    %c0_102 = arith.constant 0 : index
    %c0_103 = arith.constant 0 : index
    %749 = vector.load %arg3[%c0_101, %c0_102, %c0_103] : memref<3x14x128xf32, #tpu.memory_space<vmem>>, vector<1x14x128xf32>
    %750 = vector.shape_cast %749 : vector<1x14x128xf32> to vector<14x128xf32>
    %751 = vector.shape_cast %748 : vector<14x128xf32> to vector<1x14x128xf32>
    tpu.vector_store %arg3[%c0_101, %c0_102, %c0_103], %751 {strides = array<i32>} : memref<3x14x128xf32, #tpu.memory_space<vmem>>, vector<1x14x128xf32>,
    %752 = arith.mulf %733, %159 : vector<14x128xf32>
    %753 = vector.extract_strided_slice %752 {offsets = [4, 0], sizes = [10, 128], strides = [1, 1]} : vector<14x128xf32> to vector<10x128xf32>
    %754 = tpu.concatenate %95, %753 in 0 : vector<4x128xf32>, vector<10x128xf32> -> vector<14x128xf32>
    %c1 = arith.constant 1 : index
    %c0_104 = arith.constant 0 : index
    %c0_105 = arith.constant 0 : index
    %755 = vector.load %arg3[%c1, %c0_104, %c0_105] : memref<3x14x128xf32, #tpu.memory_space<vmem>>, vector<1x14x128xf32>
    %756 = vector.shape_cast %755 : vector<1x14x128xf32> to vector<14x128xf32>
    %757 = vector.shape_cast %754 : vector<14x128xf32> to vector<1x14x128xf32>
    tpu.vector_store %arg3[%c1, %c0_104, %c0_105], %757 {strides = array<i32>} : memref<3x14x128xf32, #tpu.memory_space<vmem>>, vector<1x14x128xf32>,
    %758 = arith.mulf %745, %159 : vector<14x128xf32>
    %759 = vector.extract_strided_slice %758 {offsets = [4, 0], sizes = [10, 128], strides = [1, 1]} : vector<14x128xf32> to vector<10x128xf32>
    %760 = tpu.concatenate %96, %759 in 0 : vector<4x128xf32>, vector<10x128xf32> -> vector<14x128xf32>
    %c2 = arith.constant 2 : index
    %c0_106 = arith.constant 0 : index
    %c0_107 = arith.constant 0 : index
    %761 = vector.load %arg3[%c2, %c0_106, %c0_107] : memref<3x14x128xf32, #tpu.memory_space<vmem>>, vector<1x14x128xf32>
    %762 = vector.shape_cast %761 : vector<1x14x128xf32> to vector<14x128xf32>
    %763 = vector.shape_cast %760 : vector<14x128xf32> to vector<1x14x128xf32>
    tpu.vector_store %arg3[%c2, %c0_106, %c0_107], %763 {strides = array<i32>} : memref<3x14x128xf32, #tpu.memory_space<vmem>>, vector<1x14x128xf32>,
    return
  }
  func.func @transform_0(%arg0: i32) -> (i32, i32) {
    %c0_i32 = arith.constant 0 : i32
    %c0_i32_0 = arith.constant 0 : i32
    %c0_i32_1 = arith.constant 0 : i32
    return %c0_i32, %c0_i32_0 : i32, i32
  }
  func.func @transform_1(%arg0: i32) -> (i32, i32) {
    %c0_i32 = arith.constant 0 : i32
    %c0_i32_0 = arith.constant 0 : i32
    return %c0_i32, %arg0 : i32, i32
  }
  func.func @transform_2(%arg0: i32) -> (i32, i32, i32) {
    %c0_i32 = arith.constant 0 : i32
    %c0_i32_0 = arith.constant 0 : i32
    %c0_i32_1 = arith.constant 0 : i32
    return %c0_i32, %c0_i32_0, %arg0 : i32, i32, i32
  }
}

</mosaic_0001>

<bundles_post_ra>
// kernel: forward.1
= control target key start
LH: loop header
LB: loop body
LE: loop exit
PB: predicated region body
PF: predicated region fallthrough
CT: control target
= control target key end

     0   :  { %v12_v0 = vlaneseq  ;;  %vm63_vm0 = vcmask 261120   ;;  %v3665_v16 = vmov 0.0   ;;  %v5241_v26 = vmov 1.0|1.0   ;;  %s5238_s1 = inlined_call_operand.vmem [shape: f32[64,128], index: 1, kind: input, shape index: {}]   ;;  %s5239_s0 = inlined_call_operand.vmem [shape: f32[208,32], index: 0, kind: input, shape index: {}]   ;;  %s5240_s2 = inlined_call_operand.vmem [shape: f32[3,14,128], index: 2, kind: output, shape index: {}]  }
   0x1   :  { %v37_v2 = vld [vmem:[%s5239_s0] sm:$0xff]  ;;  %v38_v3 = vld [vmem:[%s5239_s0 + $0x8] sm:$0xff]  ;;  %v2985_v4 = vld [vmem:[%s5238_s1 + $0x3d] ss:$0 sm:$0xff]  ;;  %vm2965_vm7 = vcmask 1043456  }
   0x2   :  { %v3682_v1 = vshrl.u32 %v12_v0, 7  ;;  %v65_v5 = vsel %vm63_vm0, %v37_v2, 0  ;;  %v68_v6 = vsel %vm63_vm0, %v38_v3, 0  ;;  %v39_v7 = vld [vmem:[%s5239_s0 + $0x10] sm:$0xff]  ;;  %v40_v29 = vld [vmem:[%s5239_s0 + $0x18] sm:$0xff]  ;;  %v41_v39 = vld [vmem:[%s5239_s0 + $0x20] sm:$0xff] }
   0x3   :  { %v3702_v12 = vand.u32 4294901760, %v65_v5  ;;  %v3704_v14 = vand.u32 4294901760, %v68_v6  ;;  %v71_v15 = vsel %vm63_vm0, %v39_v7, 0  ;;  %v74_v43 = vsel %vm63_vm0, %v40_v29, 0  ;;  %v42_v44 = vld [vmem:[%s5239_s0 + $0x28] sm:$0xff]  ;;  %v43_v49 = vld [vmem:[%s5239_s0 + $0x30] sm:$0xff] }
   0x4   :  { %5331 = vst [vmem:[#allocation3_spill] sm:$0xff] %v3682_v1  ;;  %v14_v8 = vadd.s32 8, %v3682_v1  ;;  %v17_v9 = vcvt.s32.f32 %v3682_v1  ;;  %v15_v10 = vadd.s32 16, %v3682_v1  ;;  %v16_v11 = vadd.s32 24, %v3682_v1  ;;  %v44_v50 = vld [vmem:[%s5239_s0 + $0x38] sm:$0xff]  ;;  %v45_v59 = vld [vmem:[%s5239_s0 + $0x40] sm:$0xff] }
   0x5   :  { %v3714_v23 = vsub.f32 %v65_v5, %v3702_v12  ;;  %v3717_v24 = vsub.f32 %v68_v6, %v3704_v14  ;;  %v3719_v25 = vand.u32 4294901760, %v71_v15  ;;  %v3770_v48 = vand.u32 4294901760, %v74_v43  ;;  %v46_v5 = vld [vmem:[%s5239_s0 + $0x48] sm:$0xff]  ;;  %v47_v6 = vld [vmem:[%s5239_s0 + $0x50] sm:$0xff] }
   0x6   :  { %v18_v13 = vcvt.s32.f32 %v14_v8  ;;  %vm25_vm1 = vcmp.eq.f32.partialorder %v17_v9, %v2985_v4  ;;  %v19_v19 = vcvt.s32.f32 %v15_v10  ;;  %v20_v20 = vcvt.s32.f32 %v16_v11 }
   0x7   :  { %v2986_v17 = vsel %vm25_vm1, 1.0, %v3665_v16  ;;  %v213_v33 = vand.u32 4294901760, %v3714_v23  ;;  %v223_v34 = vand.u32 4294901760, %v3717_v24  ;;  %v3763_v42 = vsub.f32 %v71_v15, %v3719_v25 }
   0x8   :  { %vm26_vm2 = vcmp.eq.f32.partialorder %v18_v13, %v2985_v4  ;;  %v3707_v18 = vsub.f32 %v2986_v17, %v2986_v17  ;;  %vm27_vm4 = vcmp.eq.f32.partialorder %v19_v19, %v2985_v4  ;;  %vm28_vm5 = vcmp.eq.f32.partialorder %v20_v20, %v2985_v4 }
   0x9   :  { %v2987_v21 = vsel %vm26_vm2, 1.0, %v3665_v16  ;;  %vm3709_vm3 = vmpackc.low %vm26_vm2, %vm25_vm1  ;;  %v2988_v30 = vsel %vm27_vm4, 1.0, %v3665_v16  ;;  %v2989_v31 = vsel %vm28_vm5, 1.0, %v3665_v16  ;;  %v214_v40 = vsub.f32 %v3714_v23, %v213_v33  ;;  %3336 = vmatprep.mubr.f32.mxu0 %v213_v33 }
   0xa   :  { %3470 = vmatprep.subr.msk.bf16.mxu1 %vm3709_vm3, %v5241_v26  ;;  %v3724_v27 = vsub.f32 %v2987_v21, %v2987_v21  ;;  %3494 = vmatprep.subr.msk.bf16.mxu0 %vm3709_vm3, %v5241_v26  ;;  %v474_v28 = vand.u32 4294901760, %v3707_v18  ;;  %vm3739_vm6 = vmpackc.low %vm28_vm5, %vm27_vm4  ;;  %v3748_v35 = vsub.f32 %v2988_v30, %v2988_v30  ;;  %v3750_v36 = vsub.f32 %v2989_v31, %v2989_v31 }
   0xb   :  { %3472 = vmatpush3.bf16.msk.msra.mxu1 %vm3709_vm3, %v5241_v26  ;;  %3496 = vmatpush3.bf16.msk.msra.mxu0 %vm3709_vm3, %v5241_v26  ;;  %v224_v41 = vsub.f32 %v3717_v24, %v223_v34  ;;  %v215_v51 = vand.u32 4294901760, %v214_v40  ;;  %v233_v53 = vand.u32 4294901760, %v3763_v42  ;;  %v77_v54 = vsel %vm63_vm0, %v41_v39, 0  ;;  %v49_v40 = vld [vmem:[%s5239_s0 + $0x60] sm:$0xff] }
   0xc   :  { %3474 = vmatprep.subr.msk.bf16.mxu1 %vm3739_vm6, %v5241_v26  ;;  %3498 = vmatprep.subr.msk.bf16.mxu0 %vm3739_vm6, %v5241_v26  ;;  %v475_v37 = vsub.f32 %v3707_v18, %v474_v28  ;;  %v481_v38 = vand.u32 4294901760, %v3724_v27  ;;  %v3787_v56 = vsub.f32 %v74_v43, %v3770_v48  ;;  %v3789_v57 = vand.u32 4294901760, %v77_v54 }
   0xd   :  { %v225_v52 = vand.u32 4294901760, %v224_v41  ;;  %v80_v58 = vsel %vm63_vm0, %v42_v44, 0  ;;  %3195 = vmatprep.mubr.f32.mxu1 %v215_v51  ;;  %v234_v60 = vsub.f32 %v3763_v42, %v233_v53  ;;  %v83_v62 = vsel %vm63_vm0, %v43_v49, 0  ;;  %v50_v51 = vld [vmem:[%s5239_s0 + $0x68] sm:$0xff] }
   0xe   :  { %v476_v45 = vand.u32 4294901760, %v475_v37  ;;  %v482_v46 = vsub.f32 %v3724_v27, %v481_v38  ;;  %v3501_v47 = vpack.c.bf16 %v481_v38, %v474_v28  ;;  %v3796_v61 = vand.u32 4294901760, %v80_v58  ;;  %v48_v28 = vld [vmem:[%s5239_s0 + $0x58] sm:$0xff] }
   0xf   :  { %3476 = vmatpush3.bf16.msk.msra.mxu1 %vm3739_vm6, %v5241_v26  ;;  %3500 = vmatpush3.bf16.msk.msra.mxu0 %vm3739_vm6, %v5241_v26  ;;  %v86_v63 = vsel %vm63_vm0, %v44_v50, 0  ;;  %v243_v2 = vand.u32 4294901760, %v3787_v56  ;;  %v3802_v3 = vsub.f32 %v77_v54, %v3789_v57  ;;  %v3804_v4 = vand.u32 4294901760, %v83_v62 }
  0x10   :  { %v483_v55 = vand.u32 4294901760, %v482_v46  ;;  %3502 = vmatprep.subr.bf16.mxu0 %v3501_v47  ;;  %v235_v7 = vand.u32 4294901760, %v234_v60  ;;  %v3813_v8 = vsub.f32 %v80_v58, %v3796_v61  ;;  %v3815_v9 = vand.u32 4294901760, %v86_v63 }
  0x11   :  { %v89_v10 = vsel %vm63_vm0, %v45_v59, 0  ;;  %v244_v11 = vsub.f32 %v3787_v56, %v243_v2  ;;  %v253_v13 = vand.u32 4294901760, %v3802_v3  ;;  %v3821_v15 = vsub.f32 %v83_v62, %v3804_v4 }
  0x12   :  { %3196 = vmatmul.mubr.f32.vlgmr.msra.gmra.mrb[0].mxu1 %v225_v52  ;;  %3337 = vmatmul.mubr.f32.vlgmr.msra.gmra.mrb[0].mxu0 %v223_v34  ;;  %v3477_v0 = vpack.c.bf16 %v483_v55, %v476_v45  ;;  %v3823_v16 = vand.u32 4294901760, %v89_v10  ;;  %v263_v17 = vand.u32 4294901760, %v3813_v8  ;;  %v3827_v19 = vsub.f32 %v86_v63, %v3815_v9  ;;  %v51_v52 = vld [vmem:[%s5239_s0 + $0x70] sm:$0xff] }
  0x13   :  { %3339 = vmatprep.mubr.f32.mxu0 %v233_v53  ;;  %3504 = vmatpush3.bf16.msra.mxu0 %v3501_v47  ;;  %v92_v20 = vsel %vm63_vm0, %v46_v5, 0  ;;  %v95_v21 = vsel %vm63_vm0, %v47_v6, 0  ;;  %v245_v29 = vand.u32 4294901760, %v244_v11  ;;  %v254_v30 = vsub.f32 %v3802_v3, %v253_v13 }
  0x14   :  { %3478 = vmatprep.subr.bf16.mxu1 %v3477_v0  ;;  %3198 = vmatprep.mubr.f32.mxu1 %v235_v7  ;;  %v273_v31 = vand.u32 4294901760, %v3821_v15  ;;  %v3837_v33 = vsub.f32 %v89_v10, %v3823_v16  ;;  %v264_v34 = vsub.f32 %v3813_v8, %v263_v17  ;;  %v283_v37 = vand.u32 4294901760, %v3827_v19 }
  0x15   :  { %3480 = vmatpush3.bf16.msra.mxu1 %v3477_v0  ;;  %v3841_v38 = vand.u32 4294901760, %v92_v20  ;;  %v3843_v39 = vand.u32 4294901760, %v95_v21  ;;  %v255_v41 = vand.u32 4294901760, %v254_v30  ;;  %v98_v45 = vsel %vm63_vm0, %v48_v28, 0  ;;  %v52_v0 = vld [vmem:[%s5239_s0 + $0x78] sm:$0xff]  ;;  %v53_v30 = vld [vmem:[%s5239_s0 + $0x80] sm:$0xff] }
  0x16   :  { %3340 = vmatmul.mubr.f32.gmra.mrb[2].mxu0 %v243_v2  ;;  %5336 = vst [vmem:[#allocation4_spill] sm:$0xff] %v3837_v33  ;;  %3199 = vmatmul.mubr.f32.gmra.mrb[2].mxu1 %v245_v29  ;;  %v274_v43 = vsub.f32 %v3821_v15, %v273_v31  ;;  %v293_v44 = vand.u32 4294901760, %v3837_v33  ;;  %v265_v46 = vand.u32 4294901760, %v264_v34  ;;  %v284_v47 = vsub.f32 %v3827_v19, %v283_v37 }
  0x17   :  { %3342 = vmatprep.mubr.f32.mxu0 %v253_v13  ;;  %v3853_v49 = vsub.f32 %v92_v20, %v3841_v38  ;;  %v3856_v50 = vsub.f32 %v95_v21, %v3843_v39  ;;  %3201 = vmatprep.mubr.f32.mxu1 %v255_v41  ;;  %v3865_v55 = vand.u32 4294901760, %v98_v45  ;;  %v101_v58 = vsel %vm63_vm0, %v49_v40, 0 }
  0x18   :  { %v275_v53 = vand.u32 4294901760, %v274_v43  ;;  %v294_v54 = vsub.f32 %v3837_v33, %v293_v44  ;;  %v285_v59 = vand.u32 4294901760, %v284_v47  ;;  %v3870_v63 = vand.u32 4294901760, %v101_v58 }
  0x19   :  { %5337 = vst [vmem:[#allocation5_spill] sm:$0xff] %v3853_v49  ;;  %5338 = vst [vmem:[#allocation6_spill] sm:$0xff] %v3856_v50  ;;  %v303_v60 = vand.u32 4294901760, %v3853_v49  ;;  %v313_v62 = vand.u32 4294901760, %v3856_v50  ;;  %v3876_v5 = vsub.f32 %v98_v45, %v3865_v55  ;;  %v104_v6 = vsel %vm63_vm0, %v50_v51, 0 }
  0x1a   :  { %3343 = vmatmul.mubr.f32.gmra.mrb[4].mxu0 %v263_v17  ;;  %3202 = vmatmul.mubr.f32.gmra.mrb[4].mxu1 %v265_v46  ;;  %v295_v2 = vand.u32 4294901760, %v294_v54  ;;  %v107_v7 = vsel %vm63_vm0, %v51_v52, 0  ;;  %v3883_v13 = vsub.f32 %v101_v58, %v3870_v63  ;;  %v3885_v17 = vand.u32 4294901760, %v104_v6 }
  0x1b   :  { %3345 = vmatprep.mubr.f32.mxu0 %v273_v31  ;;  %5339 = vst [vmem:[#allocation7_spill] sm:$0xff] %v3876_v5  ;;  %3204 = vmatprep.mubr.f32.mxu1 %v275_v53  ;;  %v304_v10 = vsub.f32 %v3853_v49, %v303_v60  ;;  %v314_v11 = vsub.f32 %v3856_v50, %v313_v62  ;;  %v323_v20 = vand.u32 4294901760, %v3876_v5  ;;  %v3888_v21 = vand.u32 4294901760, %v107_v7  ;;  %v54_v53 = vld [vmem:[%s5239_s0 + $0x88] sm:$0xff] }
  0x1c   :  { %5340 = vst [vmem:[#allocation8_spill] sm:$0xff] %v3883_v13  ;;  %v110_v28 = vsel %vm63_vm0, %v52_v0, 0  ;;  %v488_v29 = vand.u32 4294901760, %v3748_v35  ;;  %v333_v40 = vand.u32 4294901760, %v3883_v13  ;;  %v3897_v41 = vsub.f32 %v104_v6, %v3885_v17  ;;  %v55_v0 = vld [vmem:[%s5239_s0 + $0x90] sm:$0xff] }
  0x1d   :  { %v305_v31 = vand.u32 4294901760, %v304_v10  ;;  %v315_v34 = vand.u32 4294901760, %v314_v11  ;;  %v3901_v43 = vsub.f32 %v107_v7, %v3888_v21  ;;  %v3903_v45 = vand.u32 4294901760, %v110_v28 }
  0x1e   :  { %3346 = vmatmul.mubr.f32.gmra.mrb[6].mxu0 %v283_v37  ;;  %5341 = vst [vmem:[#allocation9_spill] sm:$0xff] %v3897_v41  ;;  %3205 = vmatmul.mubr.f32.gmra.mrb[6].mxu1 %v285_v59  ;;  %v324_v37 = vsub.f32 %v3876_v5, %v323_v20  ;;  %v489_v46 = vsub.f32 %v3748_v35, %v488_v29  ;;  %v343_v47 = vand.u32 4294901760, %v3897_v41  ;;  %v495_v51 = vand.u32 4294901760, %v3750_v36 }
  0x1f   :  { %3348 = vmatprep.mubr.f32.mxu0 %v293_v44  ;;  %5342 = vst [vmem:[#allocation10_spill] sm:$0xff] %v3901_v43  ;;  %3207 = vmatprep.mubr.f32.mxu1 %v295_v2  ;;  %v334_v44 = vsub.f32 %v3883_v13, %v333_v40  ;;  %v113_v52 = vsel %vm63_vm0, %v53_v30, 0  ;;  %v353_v58 = vand.u32 4294901760, %v3901_v43  ;;  %v3915_v59 = vsub.f32 %v110_v28, %v3903_v45 }
  0x20   :  { %v325_v54 = vand.u32 4294901760, %v324_v37  ;;  %v344_v2 = vsub.f32 %v3897_v41, %v343_v47  ;;  %v490_v6 = vand.u32 4294901760, %v489_v46  ;;  %v496_v7 = vsub.f32 %v3750_v36, %v495_v51  ;;  %v56_v37 = vld [vmem:[%s5239_s0 + $0x98] sm:$0xff]  ;;  %v58_v41 = vld [vmem:[%s5239_s0 + $0xa8] sm:$0xff] }
  0x21   :  { %5343 = vst [vmem:[#allocation11_spill] sm:$0xff] %v3915_v59  ;;  %v3505_v10 = vpack.c.bf16 %v495_v51, %v488_v29  ;;  %v363_v11 = vand.u32 4294901760, %v3915_v59  ;;  %v3924_v30 = vand.u32 4294901760, %v113_v52  ;;  %v116_v28 = vsel %vm63_vm0, %v54_v53, 0  ;;  %v5351_v22 = vld [vmem:[#allocation6_spill] sm:$0xff] }
  0x22   :  { %3349 = vmatmul.mubr.f32.gmra.mrb[8].mxu0 %v303_v60  ;;  %3208 = vmatmul.mubr.f32.gmra.mrb[8].mxu1 %v305_v31  ;;  %v354_v60 = vsub.f32 %v3901_v43, %v353_v58  ;;  %v335_v46 = vand.u32 4294901760, %v334_v44  ;;  %v497_v29 = vand.u32 4294901760, %v496_v7  ;;  %v3933_v31 = vand.u32 4294901760, %v116_v28 }
  0x23   :  { %3351 = vmatprep.mubr.f32.mxu0 %v313_v62  ;;  %v57_v62 = vld [vmem:[%s5239_s0 + $0xa0] sm:$0xff]  ;;  %3210 = vmatprep.mubr.f32.mxu1 %v315_v34  ;;  %v119_v51 = vsel %vm63_vm0, %v55_v0, 0  ;;  %v345_v26 = vand.u32 4294901760, %v344_v2  ;;  %v3937_v53 = vsub.f32 %v113_v52, %v3924_v30  ;;  %v59_v34 = vld [vmem:[%s5239_s0 + $0xb0] sm:$0xff]  ;;  %v122_v0 = vsel %vm63_vm0, %v56_v37, 0 }
  0x24   :  { %3506 = vmatprep.subr.bf16.mxu0 %v3505_v10  ;;  %v355_v1 = vand.u32 4294901760, %v354_v60  ;;  %v3939_v43 = vand.u32 4294901760, %v119_v51  ;;  %v3481_v44 = vpack.c.bf16 %v497_v29, %v490_v6  ;;  %v125_v52 = vsel %vm63_vm0, %v57_v62, 0 }
  0x25   :  { %5344 = vst [vmem:[#allocation12_spill] sm:$0xff] %v3937_v53  ;;  %3508 = vmatpush3.bf16.msra.mxu0 %v3505_v10  ;;  %v364_v2 = vsub.f32 %v3915_v59, %v363_v11  ;;  %v373_v7 = vand.u32 4294901760, %v3937_v53  ;;  %v3957_v13 = vand.u32 4294901760, %v122_v0  ;;  %v5347_v6 = vmov 1.0|1.0  }
  0x26   :  { %3352 = vmatmul.mubr.f32.gmra.mrb[10].mxu0 %v323_v20  ;;  %v3948_v20 = vsub.f32 %v116_v28, %v3933_v31  ;;  %3211 = vmatmul.mubr.f32.gmra.mrb[10].mxu1 %v325_v54  ;;  %v3955_v60 = vsub.f32 %v119_v51, %v3939_v43  ;;  %v3966_v10 = vand.u32 4294901760, %v125_v52  ;;  %v128_v28 = vsel %vm63_vm0, %v58_v41, 0  ;;  %v5355_v32 = vld [vmem:[#allocation10_spill] sm:$0xff] }
  0x27   :  { %3354 = vmatprep.mubr.f32.mxu0 %v333_v40  ;;  %v60_v40 = vld [vmem:[%s5239_s0 + $0xb8] sm:$0xff]  ;;  %3510 = vmatprep.subr.msk.bf16.mxu0 %vm3709_vm3, %v5347_v6  ;;  %v131_v37 = vsel %vm63_vm0, %v59_v34, 0  ;;  %v374_v62 = vsub.f32 %v3937_v53, %v373_v7  ;;  %v3973_v51 = vsub.f32 %v122_v0, %v3957_v13  ;;  %v3975_v59 = vand.u32 4294901760, %v128_v28  ;;  %v61_v34 = vld [vmem:[%s5239_s0 + $0xc0] sm:$0xff] }
  0x28   :  { %5345 = vst [vmem:[#allocation13_spill] sm:$0xff] %v3948_v20  ;;  %5346 = vst [vmem:[#allocation14_spill] sm:$0xff] %v3955_v60  ;;  %3213 = vmatprep.mubr.f32.mxu1 %v335_v46  ;;  %3482 = vmatprep.subr.bf16.mxu1 %v3481_v44  ;;  %v383_v54 = vand.u32 4294901760, %v3948_v20  ;;  %v393_v29 = vand.u32 4294901760, %v3955_v60  ;;  %v3979_v5 = vsub.f32 %v125_v52, %v3966_v10  ;;  %v3981_v41 = vand.u32 4294901760, %v131_v37 }
  0x29   :  { %3484 = vmatpush3.bf16.msra.mxu1 %v3481_v44  ;;  %v365_v44 = vand.u32 4294901760, %v364_v2  ;;  %v375_v0 = vand.u32 4294901760, %v374_v62  ;;  %v403_v53 = vand.u32 4294901760, %v3973_v51  ;;  %v137_v2 = vsel %vm63_vm0, %v61_v34, 0 }
  0x2a   :  { %3355 = vmatmul.mubr.f32.gmra.mrb[12].mxu0 %v343_v47  ;;  %v384_v46 = vsub.f32 %v3948_v20, %v383_v54  ;;  %v134_v47 = vsel %vm63_vm0, %v60_v40, 0  ;;  %3214 = vmatmul.mubr.f32.gmra.mrb[12].mxu1 %v345_v26  ;;  %v394_v52 = vsub.f32 %v3955_v60, %v393_v29  ;;  %v413_v20 = vand.u32 4294901760, %v3979_v5  ;;  %v62_v26 = vld [vmem:[%s5239_s0 + $0xc8] sm:$0xff] }
  0x2b   :  { %3357 = vmatprep.mubr.f32.mxu0 %v353_v58  ;;  %v3989_v58 = vsub.f32 %v128_v28, %v3975_v59  ;;  %3216 = vmatprep.mubr.f32.mxu1 %v355_v1  ;;  %v3994_v50 = vsub.f32 %v131_v37, %v3981_v41  ;;  %v3996_v40 = vand.u32 4294901760, %v134_v47  ;;  %v404_v1 = vsub.f32 %v3973_v51, %v403_v53 }
  0x2c   :  { %v385_v28 = vand.u32 4294901760, %v384_v46  ;;  %v4003_v62 = vand.u32 4294901760, %v137_v2  ;;  %v140_v49 = vsel %vm63_vm0, %v62_v26, 0  ;;  %v3485_v33 = vpack.c.bf16 %v3724_v27, %v3707_v18 }
  0x2d   :  { %5348 = vst [vmem:[#allocation15_spill] sm:$0xff] %v3989_v58  ;;  %v423_v60 = vand.u32 4294901760, %v3989_v58  ;;  %v4007_v37 = vsub.f32 %v134_v47, %v3996_v40  ;;  %v433_v46 = vand.u32 4294901760, %v3994_v50  ;;  %v405_v47 = vand.u32 4294901760, %v404_v1 }
  0x2e   :  { %3358 = vmatmul.mubr.f32.gmra.mrb[14].mxu0 %v363_v11  ;;  %3217 = vmatmul.mubr.f32.gmra.mrb[14].mxu1 %v365_v44  ;;  %v395_v11 = vand.u32 4294901760, %v394_v52  ;;  %v4015_v34 = vsub.f32 %v137_v2, %v4003_v62  ;;  %v4017_v44 = vand.u32 4294901760, %v140_v49 }
  0x2f   :  { %3360 = vmatprep.mubr.f32.mxu0 %v373_v7  ;;  %3219 = vmatprep.mubr.f32.mxu1 %v375_v0  ;;  %v414_v7 = vsub.f32 %v3979_v5, %v413_v20  ;;  %v424_v26 = vsub.f32 %v3989_v58, %v423_v60  ;;  %v443_v18 = vand.u32 4294901760, %v4007_v37  ;;  %v434_v52 = vsub.f32 %v3994_v50, %v433_v46 }
  0x30   :  { %3486 = vmatprep.subr.bf16.mxu1 %v3485_v33  ;;  %v4022_v27 = vsub.f32 %v140_v49, %v4017_v44  ;;  %v453_v2 = vand.u32 4294901760, %v4015_v34 }
  0x31   :  { %v415_v0 = vand.u32 4294901760, %v414_v7  ;;  %v435_v1 = vand.u32 4294901760, %v434_v52 }
  0x32   :  { %3361 = vmatmul.mubr.f32.gmra.mrb[16].mxu0 %v383_v54  ;;  %3220 = vmatmul.mubr.f32.gmra.mrb[16].mxu1 %v385_v28  ;;  %v425_v54 = vand.u32 4294901760, %v424_v26  ;;  %v463_v28 = vand.u32 4294901760, %v4022_v27  ;;  %v454_v58 = vsub.f32 %v4015_v34, %v453_v2 }
  0x33   :  { %3363 = vmatprep.mubr.f32.mxu0 %v393_v29  ;;  %3222 = vmatprep.mubr.f32.mxu1 %v395_v11  ;;  %v444_v29 = vsub.f32 %v4007_v37, %v443_v18 }
  0x34   :  { %v464_v11 = vsub.f32 %v4022_v27, %v463_v28  ;;  %v455_v7 = vand.u32 4294901760, %v454_v58  ;;  %v1737_v58 = vld [vmem:[%s5238_s1 + $0x20] sm:$0xf] }
  0x35   :  { %v445_v49 = vand.u32 4294901760, %v444_v29 }
  0x36   :  { %3364 = vmatmul.mubr.f32.gmra.mrb[18].mxu0 %v403_v53  ;;  %3223 = vmatmul.mubr.f32.gmra.mrb[18].mxu1 %v405_v47  ;;  %v465_v53 = vand.u32 4294901760, %v464_v11 }
  0x37   :  { %3366 = vmatprep.mubr.f32.mxu0 %v413_v20  ;;  %3225 = vmatprep.mubr.f32.mxu1 %v415_v0  ;;  %v3489_v20 = vpack.c.bf16 %v3750_v36, %v3748_v35  ;;  %v5356_v35 = vld [vmem:[#allocation11_spill] sm:$0xff]  ;;  %v5357_v36 = vld [vmem:[#allocation12_spill] sm:$0xff] }
  0x3a   :  { %3367 = vmatmul.mubr.f32.gmra.mrb[20].mxu0 %v423_v60  ;;  %3226 = vmatmul.mubr.f32.gmra.mrb[20].mxu1 %v425_v54  ;;  %v1738_v54 = vld [vmem:[%s5238_s1 + $0x24] sm:$0xf] }
  0x3b   :  { %3369 = vmatprep.mubr.f32.mxu0 %v433_v46  ;;  %3228 = vmatprep.mubr.f32.mxu1 %v435_v1  ;;  %v1739_v1 = vld [vmem:[%s5238_s1 + $0x28] sm:$0xf] }
  0x3e   :  { %3370 = vmatmul.mubr.f32.gmra.mrb[22].mxu0 %v443_v18  ;;  %3229 = vmatmul.mubr.f32.gmra.mrb[22].mxu1 %v445_v49  ;;  %v1740_v49 = vld [vmem:[%s5238_s1 + $0x2c] sm:$0xf] }
  0x3f   :  { %3372 = vmatprep.mubr.f32.mxu0 %v453_v2  ;;  %3231 = vmatprep.mubr.f32.mxu1 %v455_v7 }
  0x42   :  { %3373 = vmatmul.mubr.f32.gmra.mrb[24].mxu0 %v463_v28  ;;  %3232 = vmatmul.mubr.f32.gmra.mrb[24].mxu1 %v465_v53 }
  0x43   :  { %3383 = vmatprep.mubr.f32.mxu0 %v3702_v12  ;;  %3242 = vmatprep.mubr.f32.mxu1 %v3702_v12 }
  0x46   :  { %3384 = vmatmul.mubr.f32.vlgmr.msra.gmra.mrb[0].mxu0 %v3704_v14  ;;  %3243 = vmatmul.mubr.f32.vlgmr.msra.gmra.mrb[0].mxu1 %v3704_v14 }
  0x47   :  { %3386 = vmatprep.mubr.f32.mxu0 %v3719_v25  ;;  %3512 = vmatpush3.bf16.msk.msra.mxu0 %vm3709_vm3, %v5347_v6 }
  0x48   :  { %3514 = vmatprep.subr.msk.bf16.mxu0 %vm3739_vm6, %v5347_v6  ;;  %3245 = vmatprep.mubr.f32.mxu1 %v3719_v25 }
  0x49   :  { %3488 = vmatpush3.bf16.msra.mxu1 %v3485_v33 }
  0x4a   :  { %3387 = vmatmul.mubr.f32.gmra.mrb[2].mxu0 %v3770_v48  ;;  %3490 = vmatprep.subr.bf16.mxu1 %v3489_v20 }
  0x4b   :  { %3389 = vmatprep.mubr.f32.mxu0 %v3789_v57  ;;  %3516 = vmatpush3.bf16.msk.msra.mxu0 %vm3739_vm6, %v5347_v6 }
  0x4c   :  { %3246 = vmatmul.mubr.f32.gmra.mrb[2].mxu1 %v3770_v48 }
  0x4d   :  { %3248 = vmatprep.mubr.f32.mxu1 %v3789_v57  ;;  %3492 = vmatpush3.bf16.msra.mxu1 %v3489_v20 }
  0x4e   :  { %3390 = vmatmul.mubr.f32.gmra.mrb[4].mxu0 %v3796_v61 }
  0x4f   :  { %3392 = vmatprep.mubr.f32.mxu0 %v3804_v4 }
  0x50   :  { %3249 = vmatmul.mubr.f32.gmra.mrb[4].mxu1 %v3796_v61 }
  0x51   :  { %3251 = vmatprep.mubr.f32.mxu1 %v3804_v4 }
  0x52   :  { %3393 = vmatmul.mubr.f32.gmra.mrb[6].mxu0 %v3815_v9 }
  0x53   :  { %3395 = vmatprep.mubr.f32.mxu0 %v3823_v16 }
  0x54   :  { %3252 = vmatmul.mubr.f32.gmra.mrb[6].mxu1 %v3815_v9 }
  0x55   :  { %3254 = vmatprep.mubr.f32.mxu1 %v3823_v16 }
  0x56   :  { %3396 = vmatmul.mubr.f32.gmra.mrb[8].mxu0 %v3841_v38 }
  0x57   :  { %3398 = vmatprep.mubr.f32.mxu0 %v3843_v39 }
  0x58   :  { %3255 = vmatmul.mubr.f32.gmra.mrb[8].mxu1 %v3841_v38 }
  0x59   :  { %3257 = vmatprep.mubr.f32.mxu1 %v3843_v39 }
  0x5a   :  { %3399 = vmatmul.mubr.f32.gmra.mrb[10].mxu0 %v3865_v55 }
  0x5b   :  { %3401 = vmatprep.mubr.f32.mxu0 %v3870_v63 }
  0x5c   :  { %3258 = vmatmul.mubr.f32.gmra.mrb[10].mxu1 %v3865_v55 }
  0x5d   :  { %3260 = vmatprep.mubr.f32.mxu1 %v3870_v63 }
  0x5e   :  { %3402 = vmatmul.mubr.f32.gmra.mrb[12].mxu0 %v3885_v17 }
  0x5f   :  { %3404 = vmatprep.mubr.f32.mxu0 %v3888_v21 }
  0x60   :  { %3261 = vmatmul.mubr.f32.gmra.mrb[12].mxu1 %v3885_v17 }
  0x61   :  { %3263 = vmatprep.mubr.f32.mxu1 %v3888_v21 }
  0x62   :  { %3405 = vmatmul.mubr.f32.gmra.mrb[14].mxu0 %v3903_v45 }
  0x63   :  { %3407 = vmatprep.mubr.f32.mxu0 %v3924_v30 }
  0x64   :  { %3264 = vmatmul.mubr.f32.gmra.mrb[14].mxu1 %v3903_v45 }
  0x65   :  { %3266 = vmatprep.mubr.f32.mxu1 %v3924_v30 }
  0x66   :  { %3408 = vmatmul.mubr.f32.gmra.mrb[16].mxu0 %v3933_v31 }
  0x67   :  { %3410 = vmatprep.mubr.f32.mxu0 %v3939_v43 }
  0x68   :  { %3267 = vmatmul.mubr.f32.gmra.mrb[16].mxu1 %v3933_v31 }
  0x69   :  { %3269 = vmatprep.mubr.f32.mxu1 %v3939_v43 }
  0x6a   :  { %3411 = vmatmul.mubr.f32.gmra.mrb[18].mxu0 %v3957_v13 }
  0x6b   :  { %3413 = vmatprep.mubr.f32.mxu0 %v3966_v10 }
  0x6c   :  { %3270 = vmatmul.mubr.f32.gmra.mrb[18].mxu1 %v3957_v13 }
  0x6d   :  { %3272 = vmatprep.mubr.f32.mxu1 %v3966_v10 }
  0x6e   :  { %3414 = vmatmul.mubr.f32.gmra.mrb[20].mxu0 %v3975_v59 }
  0x6f   :  { %3416 = vmatprep.mubr.f32.mxu0 %v3981_v41 }
  0x70   :  { %3273 = vmatmul.mubr.f32.gmra.mrb[20].mxu1 %v3975_v59 }
  0x71   :  { %3275 = vmatprep.mubr.f32.mxu1 %v3981_v41 }
  0x72   :  { %3417 = vmatmul.mubr.f32.gmra.mrb[22].mxu0 %v3996_v40 }
  0x73   :  { %3419 = vmatprep.mubr.f32.mxu0 %v4003_v62 }
  0x74   :  { %3276 = vmatmul.mubr.f32.gmra.mrb[22].mxu1 %v3996_v40 }
  0x75   :  { %3278 = vmatprep.mubr.f32.mxu1 %v4003_v62 }
  0x76   :  { %3420 = vmatmul.mubr.f32.gmra.mrb[24].mxu0 %v4017_v44 }
  0x77   :  { %3430 = vmatprep.mubr.f32.mxu0 %v3702_v12  ;;  %v5349_v12 = vld [vmem:[#allocation4_spill] sm:$0xff] }
  0x78   :  { %3279 = vmatmul.mubr.f32.gmra.mrb[24].mxu1 %v4017_v44 }
  0x79   :  { %3289 = vmatprep.mubr.f32.mxu1 %v3714_v23  ;;  %v5352_v23 = vld [vmem:[#allocation7_spill] sm:$0xff] }
  0x7a   :  { %3431 = vmatmul.mubr.f32.vlgmr.msra.gmra.mrb[0].mxu0 %v3704_v14  ;;  %v5350_v14 = vld [vmem:[#allocation5_spill] sm:$0xff] }
  0x7b   :  { %3433 = vmatprep.mubr.f32.mxu0 %v3719_v25  ;;  %v5354_v25 = vld [vmem:[#allocation9_spill] sm:$0xff] }
  0x7c   :  { %3290 = vmatmul.mubr.f32.vlgmr.msra.gmra.mrb[0].mxu1 %v3717_v24  ;;  %v5353_v24 = vld [vmem:[#allocation8_spill] sm:$0xff] }
  0x7d   :  { %3292 = vmatprep.mubr.f32.mxu1 %v3763_v42  ;;  %v5358_v42 = vld [vmem:[#allocation13_spill] sm:$0xff] }
  0x7e   :  { %3434 = vmatmul.mubr.f32.gmra.mrb[2].mxu0 %v3770_v48  ;;  %v5359_v48 = vld [vmem:[#allocation14_spill] sm:$0xff] }
  0x7f   :  { %3436 = vmatprep.mubr.f32.mxu0 %v3789_v57  ;;  %v4148_v57 = vld [vmem:[%s5238_s1 + $0x30] sm:$0xf] }
  0x80   :  { %3293 = vmatmul.mubr.f32.gmra.mrb[2].mxu1 %v3787_v56  ;;  %v5360_v56 = vld [vmem:[#allocation15_spill] sm:$0xff]  ;;  %5361 = vst [vmem:[#allocation4_spill] sm:$0xff] %v4148_v57 }
  0x81   :  { %3295 = vmatprep.mubr.f32.mxu1 %v3802_v3  ;;  %v5259_v3 = vrot.slane %v4148_v57, 7 }
  0x82   :  { %3437 = vmatmul.mubr.f32.gmra.mrb[4].mxu0 %v3796_v61  ;;  %v4153_v61 = vld [vmem:[%s5238_s1 + $0x34] sm:$0xf] }
  0x83   :  { %3439 = vmatprep.mubr.f32.mxu0 %v3804_v4  ;;  %5362 = vst [vmem:[#allocation5_spill] sm:$0xff] %v4153_v61  ;;  %v5258_v4 = vrot.slane %v4153_v61, 7 }
  0x84   :  { %3296 = vmatmul.mubr.f32.gmra.mrb[4].mxu1 %v3813_v8  ;;  %v4160_v8 = vld [vmem:[%s5238_s1 + $0x38] sm:$0xf] }
  0x85   :  { %3298 = vmatprep.mubr.f32.mxu1 %v3821_v15  ;;  %5363 = vst [vmem:[#allocation6_spill] sm:$0xff] %v4160_v8  ;;  %v1822_v15 = vsub.f32 %v4153_v61, %v5258_v4 }
  0x86   :  { %3440 = vmatmul.mubr.f32.gmra.mrb[6].mxu0 %v3815_v9  ;;  %v1818_v9 = vsub.f32 %v4148_v57, %v5259_v3 }
  0x87   :  { %3442 = vmatprep.mubr.f32.mxu0 %v3823_v16  ;;  %v5257_v16 = vrot.slane %v4160_v8, 7 }
  0x88   :  { %3299 = vmatmul.mubr.f32.gmra.mrb[6].mxu1 %v3827_v19  ;;  %v1836_v33 = vmul.f32 %v1818_v9, %v1818_v9 }
  0x89   :  { %3301 = vmatprep.mubr.f32.mxu1 %v5349_v12  ;;  %v1826_v19 = vsub.f32 %v4160_v8, %v5257_v16 }
  0x8a   :  { %3443 = vmatmul.mubr.f32.gmra.mrb[8].mxu0 %v3841_v38  ;;  %v1837_v38 = vmul.f32 %v1822_v15, %v1822_v15 }
  0x8b   :  { %3445 = vmatprep.mubr.f32.mxu0 %v3843_v39 }
  0x8c   :  { %3302 = vmatmul.mubr.f32.gmra.mrb[8].mxu1 %v5350_v14  ;;  %v1838_v39 = vadd.f32 %v1837_v38, %v1836_v33 }
  0x8d   :  { %3304 = vmatprep.mubr.f32.mxu1 %v5351_v22 }
  0x8e   :  { %3446 = vmatmul.mubr.f32.gmra.mrb[10].mxu0 %v3865_v55 }
  0x8f   :  { %3448 = vmatprep.mubr.f32.mxu0 %v3870_v63 }
  0x90   :  { %3305 = vmatmul.mubr.f32.gmra.mrb[10].mxu1 %v5352_v23 }
  0x91   :  { %3307 = vmatprep.mubr.f32.mxu1 %v5353_v24 }
  0x92   :  { %3449 = vmatmul.mubr.f32.gmra.mrb[12].mxu0 %v3885_v17  ;;  %v1732_v17 = vld [vmem:[%s5238_s1 + $0xc] sm:$0xf] }
  0x93   :  { %3451 = vmatprep.mubr.f32.mxu0 %v3888_v21  ;;  %v1733_v21 = vld [vmem:[%s5238_s1 + $0x10] sm:$0xf] }
  0x94   :  { %3308 = vmatmul.mubr.f32.gmra.mrb[12].mxu1 %v5354_v25 }
  0x95   :  { %3310 = vmatprep.mubr.f32.mxu1 %v5355_v32 }
  0x96   :  { %3452 = vmatmul.mubr.f32.gmra.mrb[14].mxu0 %v3903_v45  ;;  %v1736_v45 = vld [vmem:[%s5238_s1 + $0x1c] sm:$0xf] }
  0x97   :  { %3454 = vmatprep.mubr.f32.mxu0 %v3924_v30  ;;  %v1730_v30 = vld [vmem:[%s5238_s1 + $0x4] sm:$0xf] }
  0x98   :  { %3311 = vmatmul.mubr.f32.gmra.mrb[14].mxu1 %v5356_v35  ;;  %v1748_v35 = vsub.f32 %v1739_v1, %v1736_v45 }
  0x99   :  { %3313 = vmatprep.mubr.f32.mxu1 %v5357_v36  ;;  %v1749_v36 = vsub.f32 %v1740_v49, %v1737_v58 }
  0x9a   :  { %3455 = vmatmul.mubr.f32.gmra.mrb[16].mxu0 %v3933_v31  ;;  %v1731_v31 = vld [vmem:[%s5238_s1 + $0x8] sm:$0xf] }
  0x9b   :  { %3457 = vmatprep.mubr.f32.mxu0 %v3939_v43  ;;  %v1735_v43 = vld [vmem:[%s5238_s1 + $0x18] sm:$0xf] }
  0x9c   :  { %3314 = vmatmul.mubr.f32.gmra.mrb[16].mxu1 %v5358_v42  ;;  %v1747_v32 = vsub.f32 %v1738_v54, %v1735_v43 }
  0x9d   :  { %3316 = vmatprep.mubr.f32.mxu1 %v5359_v48 }
  0x9e   :  { %3458 = vmatmul.mubr.f32.gmra.mrb[18].mxu0 %v3957_v13  ;;  %v1830_v13 = vrot.slane %v4153_v61, 1 }
  0x9f   :  { %3460 = vmatprep.mubr.f32.mxu0 %v3966_v10 }
  0xa0   :  { %3317 = vmatmul.mubr.f32.gmra.mrb[18].mxu1 %v3973_v51  ;;  %v4197_v6 = vsub.f32 %v4153_v61, %v1830_v13  ;;  %v1729_v51 = vld [vmem:[%s5238_s1] sm:$0xf] }
  0xa1   :  { %3319 = vmatprep.mubr.f32.mxu1 %v3979_v5  ;;  %v1827_v5 = vrot.slane %v4148_v57, 1 }
  0xa2   :  { %3461 = vmatmul.mubr.f32.gmra.mrb[20].mxu0 %v3975_v59  ;;  %v1833_v59 = vrot.slane %v4160_v8, 1  ;;  %v1851_v18 = vrot.slane %v4197_v6, 6 }
  0xa3   :  { %3463 = vmatprep.mubr.f32.mxu0 %v3981_v41  ;;  %v4194_v60 = vsub.f32 %v4148_v57, %v1827_v5  ;;  %v1734_v41 = vld [vmem:[%s5238_s1 + $0x14] sm:$0xf] }
  0xa4   :  { %3320 = vmatmul.mubr.f32.gmra.mrb[20].mxu1 %v5360_v56  ;;  %v1743_v46 = vsub.f32 %v1734_v41, %v1731_v31  ;;  %v1746_v0 = vsub.f32 %v1737_v58, %v1734_v41 }
  0xa5   :  { %3322 = vmatprep.mubr.f32.mxu1 %v3994_v50  ;;  %v1839_v50 = vmul.f32 %v1826_v19, %v1826_v19  ;;  %v1847_v26 = vrot.slane %v4194_v60, 6 }
  0xa6   :  { %3464 = vmatmul.mubr.f32.gmra.mrb[22].mxu0 %v3996_v40  ;;  %v1744_v40 = vsub.f32 %v1735_v43, %v1732_v17  ;;  %v1790_v25 = vmul.f32 %v1746_v0, %v1746_v0  ;;  %v1760_v38 = vmul.f32 %v1748_v35, %v1746_v0 }
  0xa7   :  { %3466 = vmatprep.mubr.f32.mxu0 %v4003_v62  ;;  %v1840_v55 = vadd.f32 %v1839_v50, %v1838_v39  ;;  %v1745_v62 = vsub.f32 %v1736_v45, %v1733_v21  ;;  %v1762_v39 = vmul.f32 %v1747_v32, %v1746_v0 }
  0xa8   :  { %3323 = vmatmul.mubr.f32.gmra.mrb[22].mxu1 %v4007_v37  ;;  %v1742_v37 = vsub.f32 %v1733_v21, %v1730_v30  ;;  %v1787_v52 = vmul.f32 %v1744_v40, %v1744_v40  ;;  %v1753_v12 = vmul.f32 %v1744_v40, %v1743_v46  ;;  %v1763_v50 = vmul.f32 %v1749_v36, %v1744_v40 }
  0xa9   :  { %3325 = vmatprep.mubr.f32.mxu1 %v4015_v34  ;;  %v1841_v63 = vadd.f32 1e-08, %v1840_v55  ;;  %v4209_v34 = vsub.f32 %v4160_v8, %v1833_v59  ;;  %v1788_v2 = vmul.f32 %v1745_v62, %v1745_v62  ;;  %v1751_v28 = vmul.f32 %v1745_v62, %v1743_v46 }
  0xaa   :  { %3467 = vmatmul.mubr.f32.gmra.mrb[24].mxu0 %v4017_v44  ;;  %v1750_v29 = vmul.f32 %v1746_v0, %v1742_v37  ;;  %v1757_v23 = vmul.f32 %v1744_v40, %v1742_v37  ;;  %v1759_v33 = vmul.f32 %v1749_v36, %v1745_v62  ;;  %v1764_v43 = vsub.f32 %v1762_v39, %v1763_v50 }
  0xab   :  { %3649 = vrsqrt.f32 %v1841_v63  ;;  %v1856_v20 = vrot.slane %v4209_v34, 6  ;;  %v1789_v24 = vadd.f32 %v1788_v2, %v1787_v52  ;;  %v1765_v59 = vmul.f32 %v1748_v35, %v1744_v40 }
  0xac   :  { %3326 = vmatmul.mubr.f32.gmra.mrb[24].mxu1 %v4022_v27  ;;  %v1741_v27 = vsub.f32 %v1732_v17, %v1729_v51  ;;  %v1752_v56 = vsub.f32 %v1750_v29, %v1751_v28  ;;  %v1761_v21 = vsub.f32 %v1759_v33, %v1760_v38  ;;  %v1766_v30 = vmul.f32 %v1747_v32, %v1745_v62 }
  0xae   :  { %v1754_v14 = vmul.f32 %v1746_v0, %v1741_v27  ;;  %v1756_v22 = vmul.f32 %v1745_v62, %v1741_v27  ;;  %v1772_v17 = vmul.f32 %v1752_v56, %v1746_v0  ;;  %v1774_v58 = vmul.f32 %v1752_v56, %v1745_v62 }
  0xaf   :  { %v1767_v27 = vsub.f32 %v1765_v59, %v1766_v30  ;;  %v1777_v1 = vmul.f32 %v1761_v21, %v1752_v56 }
  0xb5   :  { %v3650_v10 = vpop.eup %3649 }
  0xb6   :  { %v4211_v44 = vmul.f32 %v3650_v10, %v1818_v9  ;;  %v4213_v47 = vmul.f32 %v3650_v10, %v1822_v15  ;;  %v4226_v11 = vmul.f32 %v3650_v10, %v1826_v19  ;;  %v1755_v9 = vsub.f32 %v1753_v12, %v1754_v14 }
  0xb7   :  { %v1758_v15 = vsub.f32 %v1756_v22, %v1757_v23  ;;  %v1791_v19 = vadd.f32 %v1790_v25, %v1789_v24 }
  0xb8   :  { %5364 = vst [vmem:[#allocation7_spill] sm:$0xff] %v4211_v44  ;;  %5365 = vst [vmem:[#allocation8_spill] sm:$0xff] %v4213_v47  ;;  %v1849_v7 = vmul.f32 %v1847_v26, %v4211_v44  ;;  %v1853_v53 = vmul.f32 %v1851_v18, %v4213_v47  ;;  %v1858_v48 = vmul.f32 %v1856_v20, %v4226_v11 }
  0xb9   :  { %5366 = vst [vmem:[#allocation9_spill] sm:$0xff] %v4226_v11  ;;  %v1768_v63 = vmul.f32 %v1755_v9, %v1746_v0  ;;  %v1769_v5 = vmul.f32 %v1758_v15, %v1745_v62  ;;  %v1771_v13 = vmul.f32 %v1758_v15, %v1744_v40  ;;  %v1792_v45 = vadd.f32 1e-08, %v1791_v19 }
  0xba   :  { %v1854_v42 = vadd.f32 %v1853_v53, %v1849_v7  ;;  %v1775_v37 = vmul.f32 %v1755_v9, %v1744_v40  ;;  %v1778_v49 = vmul.f32 %v1764_v43, %v1755_v9  ;;  %v1780_v14 = vmul.f32 %v1767_v27, %v1758_v15  ;;  %v4253_v9 = vld [vmem:[%s5238_s1 + $0x3c] ss:$0 sm:$0xff] }
  0xbb   :  { %v1770_v51 = vsub.f32 %v1768_v63, %v1769_v5  ;;  %v1773_v41 = vsub.f32 %v1771_v13, %v1772_v17  ;;  %3651 = vrsqrt.f32 %v1792_v45 }
  0xbc   :  { %v1859_v55 = vadd.f32 %v1858_v48, %v1854_v42  ;;  %v1776_v0 = vsub.f32 %v1774_v58, %v1775_v37  ;;  %v1779_v12 = vadd.f32 %v1778_v49, %v1777_v1 }
  0xbd   :  { %v1782_v52 = vmul.f32 %v1770_v51, %v1761_v21  ;;  %v1783_v2 = vmul.f32 %v1773_v41, %v1764_v43 }
  0xbe   :  { %v1860_v31 = vmul.f32 %v1859_v55, %v4211_v44  ;;  %v1861_v10 = vmul.f32 %v1859_v55, %v4213_v47  ;;  %v1862_v46 = vmul.f32 %v1859_v55, %v4226_v11  ;;  %v1785_v40 = vmul.f32 %v1776_v0, %v1767_v27 }
  0xbf   :  { %v1784_v62 = vadd.f32 %v1783_v2, %v1782_v52  ;;  %v1781_v24 = vadd.f32 %v1780_v14, %v1779_v12 }
  0xc0   :  { %v1864_v26 = vrot.slane %v1860_v31, 2  ;;  %v1868_v18 = vrot.slane %v1861_v10, 2  ;;  %v1872_v28 = vrot.slane %v1862_v46, 2 }
  0xc1   :  { %v1795_v35 = vmul.f32 %v1781_v24, %v1781_v24 }
  0xc2   :  { %v4236_v54 = vsub.f32 %v4194_v60, %v1864_v26  ;;  %v4239_v29 = vsub.f32 %v4197_v6, %v1868_v18  ;;  %v1874_v7 = vsub.f32 %v4209_v34, %v1872_v28  ;;  %v1786_v60 = vadd.f32 %v1785_v40, %v1784_v62 }
  0xc4   :  { %v1875_v53 = vmul.f32 %v4236_v54, %v4236_v54  ;;  %v1876_v20 = vmul.f32 %v4239_v29, %v4239_v29  ;;  %v1878_v6 = vmul.f32 %v1874_v7, %v1874_v7 }
  0xc5   :  { %v3652_v22 = vpop.eup %3651 }
  0xc6   :  { %v1877_v23 = vadd.f32 %v1876_v20, %v1875_v53  ;;  %v4246_v25 = vmul.f32 %v3652_v22, %v1786_v60 }
  0xc8   :  { %v1879_v32 = vadd.f32 %v1878_v6, %v1877_v23  ;;  %v1796_v34 = vmul.f32 %v4246_v25, %v4246_v25 }
  0xca   :  { %v1880_v48 = vadd.f32 1e-08, %v1879_v32  ;;  %v1797_v15 = vadd.f32 %v1796_v34, %v1795_v35 }
  0xcc   :  { %3653 = vrsqrt.f32 %v1880_v48  ;;  %v1798_v63 = vadd.f32 1e-08, %v1797_v15 }
  0xce   :  { %3655 = vrsqrt.f32 %v1798_v63 }
  0xd6   :  { %v3654_v37 = vpop.eup %3653 }
  0xd7   :  { %v4258_v2 = vmul.f32 %v3654_v37, %v1874_v7  ;;  %v4261_v49 = vmul.f32 %v3654_v37, %v4239_v29  ;;  %v4264_v12 = vmul.f32 %v3654_v37, %v4236_v54 }
  0xd8   :  { %v3656_v62 = vpop.eup %3655 }
  0xd9   :  { %5368 = vst [vmem:[#allocation11_spill] sm:$0xff] %v4258_v2  ;;  %5369 = vst [vmem:[#allocation12_spill] sm:$0xff] %v4261_v49  ;;  %v1886_v22 = vrot.slane %v4258_v2, 6  ;;  %v1808_v23 = vmul.f32 %v3656_v62, %v1781_v24  ;;  %v1890_v29 = vrot.slane %v4261_v49, 6 }
  0xda   :  { %5370 = vst [vmem:[#allocation13_spill] sm:$0xff] %v4264_v12 }
 0x14d   :  { %v3432_v36 = vpop.f32.mrb[0].mxu0 }
 0x14e   :  { %v1548_v42 = vpop.f32.mrb[1].mxu0 }
 0x14f   :  { %v3291_v56 = vpop.f32.mrb[0].mxu1 }
 0x150   :  { %v3517_v19 = vadd.f32 %v3432_v36, %v3291_v56  ;;  %v788_v33 = vpop.f32.mrb[1].mxu1  ;;  %v1895_v36 = vrot.slane %v4264_v12, 6  ;;  %v1806_v56 = vmul.f32 %v3656_v62, %v4246_v25  ;;  %v1900_v25 = vmul.f32 %v1890_v29, %v4211_v44 }
 0x151   :  { %v3518_v38 = vadd.f32 %v1548_v42, %v788_v33  ;;  %v3435_v39 = vpop.f32.mrb[2].mxu0  ;;  %v5371_v42 = vld [vmem:[#allocation3_spill] sm:$0xff] }
 0x152   :  { %v4256_v50 = vmul.f32 %v3517_v19, %v4253_v9  ;;  %v1560_v55 = vpop.f32.mrb[3].mxu0  ;;  %v1939_v48 = vsub.s32 1, %v5371_v42  ;;  %v1888_v19 = vmul.f32 %v1886_v22, %v4213_v47  ;;  %v1923_v63 = vsub.s32 0, %v5371_v42 }
 0x153   :  { %1702 = vst [vmem:[#allocation2] sm:$0xff] %v3518_v38  ;;  %v3294_v5 = vpop.f32.mrb[2].mxu1 }
 0x154   :  { %5367 = vst [vmem:[#allocation10_spill] sm:$0xff] %v4256_v50  ;;  %v3519_v13 = vadd.f32 %v3435_v39, %v3294_v5  ;;  %v802_v17 = vpop.f32.mrb[3].mxu1  ;;  %v1892_v39 = vmul.f32 %v1890_v29, %v4226_v11  ;;  %v1897_v5 = vmul.f32 %v1895_v36, %v4226_v11  ;;  %v4309_v62 = vrot.slane %v4261_v49, %v1923_v63 }
 0x155   :  { %v3520_v21 = vadd.f32 %v1560_v55, %v802_v17  ;;  %v3438_v43 = vpop.f32.mrb[4].mxu0 }
 0x156   :  { %1705 = vst [vmem:[#allocation2 + $0x18] sm:$0xff] %v3519_v13  ;;  %v1572_v45 = vpop.f32.mrb[5].mxu0  ;;  %v1898_v13 = vmul.f32 %v1886_v22, %v4211_v44  ;;  %5380 = vst [vmem:[#allocation21_spill] sm:$0xff] %v4309_v62 }
 0x157   :  { %1704 = vst [vmem:[#allocation2 + $0x10] sm:$0xff] %v3520_v21  ;;  %v3297_v59 = vpop.f32.mrb[4].mxu1 }
 0x158   :  { %v3521_v30 = vadd.f32 %v3438_v43, %v3297_v59  ;;  %v816_v31 = vpop.f32.mrb[5].mxu1  ;;  %v1901_v43 = vmul.f32 %v1895_v36, %v4213_v47  ;;  %v4280_v59 = vsub.s32 2, %v5371_v42 }
 0x159   :  { %v3522_v10 = vadd.f32 %v1572_v45, %v816_v31  ;;  %v3441_v51 = vpop.f32.mrb[6].mxu0 }
 0x15a   :  { %1707 = vst [vmem:[#allocation2 + $0x28] sm:$0xff] %v3521_v30  ;;  %v1584_v41 = vpop.f32.mrb[7].mxu0  ;;  %v1800_v40 = vld [vmem:[#allocation2] sm:$0xf]  ;;  %v4283_v30 = vrot.slane %v4148_v57, %v1939_v48 }
 0x15b   :  { %1706 = vst [vmem:[#allocation2 + $0x20] sm:$0xff] %v3522_v10  ;;  %v3300_v58 = vpop.f32.mrb[6].mxu1  ;;  %v1805_v7 = vmul.f32 %v4253_v9, %v1800_v40  ;;  %v4312_v40 = vrot.slane %v4258_v2, %v1923_v63 }
 0x15c   :  { %v3523_v46 = vadd.f32 %v3441_v51, %v3300_v58  ;;  %v830_v26 = vpop.f32.mrb[7].mxu1  ;;  %5372 = vst [vmem:[#allocation14_spill] sm:$0xff] %v4283_v30  ;;  %v4288_v51 = vrot.slane %v4153_v61, %v1939_v48  ;;  %v4292_v58 = vsub.f32 %v1888_v19, %v1892_v39  ;;  %v4346_v19 = vrot.slane %v4213_v47, %v4280_v59 }
 0x15d   :  { %v3524_v18 = vadd.f32 %v1584_v41, %v830_v26  ;;  %v3444_v27 = vpop.f32.mrb[8].mxu0  ;;  %v1809_v33 = vmul.f32 %v1808_v23, %v1805_v7  ;;  %v1810_v24 = vsub.f32 1.0, %v1805_v7  ;;  %v4285_v31 = vmul.f32 %v1806_v56, %v1805_v7  ;;  %5381 = vst [vmem:[#allocation22_spill] sm:$0xff] %v4312_v40 }
 0x15e   :  { %1709 = vst [vmem:[#allocation2 + $0x38] sm:$0xff] %v3523_v46  ;;  %v1596_v0 = vpop.f32.mrb[9].mxu0  ;;  %5373 = vst [vmem:[#allocation15_spill] sm:$0xff] %v4288_v51  ;;  %v4295_v26 = vrot.slane %v4160_v8, %v1939_v48 }
 0x15f   :  { %1708 = vst [vmem:[#allocation2 + $0x30] sm:$0xff] %v3524_v18  ;;  %v3303_v52 = vpop.f32.mrb[8].mxu1  ;;  %v4290_v41 = vadd.f32 %v1810_v24, %v1809_v33  ;;  %5374 = vst [vmem:[#allocation3_spill] sm:$0xff] %v4292_v58  ;;  %v4297_v18 = vsub.f32 %v1897_v5, %v1898_v13  ;;  %v4322_v22 = vrot.slane %v4285_v31, 2  ;;  %v4325_v23 = vrot.slane %v4285_v31, 3 }
 0x160   :  { %v3525_v28 = vadd.f32 %v3444_v27, %v3303_v52  ;;  %v844_v1 = vpop.f32.mrb[9].mxu1  ;;  %5375 = vst [vmem:[#allocation16_spill] sm:$0xff] %v4295_v26  ;;  %v4300_v27 = vrot.slane %v4264_v12, %v1923_v63  ;;  %5385 = vst [vmem:[#allocation26_spill] sm:$0xff] %v4346_v19  ;;  %v4355_v5 = vrot.slane %v4226_v11, %v4280_v59 }
 0x161   :  { %v3526_v53 = vadd.f32 %v1596_v0, %v844_v1  ;;  %v3447_v20 = vpop.f32.mrb[10].mxu0  ;;  %5376 = vst [vmem:[#allocation17_spill] sm:$0xff] %v4297_v18  ;;  %v4306_v1 = vrot.slane %v4292_v58, %v4280_v59 }
 0x162   :  { %1711 = vst [vmem:[#allocation2 + $0x48] sm:$0xff] %v3525_v28  ;;  %v1608_v14 = vpop.f32.mrb[11].mxu0  ;;  %5377 = vst [vmem:[#allocation18_spill] sm:$0xff] %v4300_v27  ;;  %v4302_v28 = vsub.f32 %v1900_v25, %v1901_v43 }
 0x163   :  { %1710 = vst [vmem:[#allocation2 + $0x40] sm:$0xff] %v3526_v53  ;;  %v3306_v60 = vpop.f32.mrb[10].mxu1  ;;  %5379 = vst [vmem:[#allocation20_spill] sm:$0xff] %v4306_v1 }
 0x164   :  { %v3527_v6 = vadd.f32 %v3447_v20, %v3306_v60  ;;  %v858_v32 = vpop.f32.mrb[11].mxu1  ;;  %5378 = vst [vmem:[#allocation19_spill] sm:$0xff] %v4302_v28  ;;  %v1910_v20 = vld [vmem:[#allocation2 + $0x10] sm:$0x3f]  ;;  %v4319_v60 = vrot.slane %v4285_v31, 1  ;;  %v4338_v36 = vrot.slane %v4302_v28, %v4280_v59  ;;  %5387 = vst [vmem:[#allocation28_spill] sm:$0xff] %v4355_v5 }
 0x165   :  { %v3528_v35 = vadd.f32 %v1608_v14, %v858_v32  ;;  %v3450_v34 = vpop.f32.mrb[12].mxu0  ;;  %v4316_v14 = vrot.slane %v4297_v18, %v4280_v59  ;;  %v4331_v32 = vrot.slane %v4290_v41, 2  ;;  %v4349_v33 = vmul.f32 %v4253_v9, %v1910_v20 }
 0x166   :  { %1713 = vst [vmem:[#allocation2 + $0x58] sm:$0xff] %v3527_v6  ;;  %v1620_v54 = vpop.f32.mrb[13].mxu0  ;;  %v4328_v6 = vrot.slane %v4290_v41, 1  ;;  %5383 = vst [vmem:[#allocation24_spill] sm:$0xff] %v4338_v36 }
 0x167   :  { %1712 = vst [vmem:[#allocation2 + $0x50] sm:$0xff] %v3528_v35  ;;  %v3309_v15 = vpop.f32.mrb[12].mxu1  ;;  %5382 = vst [vmem:[#allocation23_spill] sm:$0xff] %v4316_v14  ;;  %v4334_v35 = vrot.slane %v4290_v41, 3 }
 0x168   :  { %v3529_v38 = vadd.f32 %v3450_v34, %v3309_v15  ;;  %v872_v55 = vpop.f32.mrb[13].mxu1  ;;  %v4342_v15 = vrot.slane %v4211_v44, %v4280_v59  ;;  %5386 = vst [vmem:[#allocation27_spill] sm:$0xff] %v4349_v33 }
 0x169   :  { %v3530_v17 = vadd.f32 %v1620_v54, %v872_v55  ;;  %v3453_v21 = vpop.f32.mrb[14].mxu0 }
 0x16a   :  { %1715 = vst [vmem:[#allocation2 + $0x68] sm:$0xff] %v3529_v38  ;;  %v1632_v45 = vpop.f32.mrb[15].mxu0  ;;  %5384 = vst [vmem:[#allocation25_spill] sm:$0xff] %v4342_v15 }
 0x16b   :  { %1714 = vst [vmem:[#allocation2 + $0x60] sm:$0xff] %v3530_v17  ;;  %v3312_v10 = vpop.f32.mrb[14].mxu1 }
 0x16c   :  { %v3531_v37 = vadd.f32 %v3453_v21, %v3312_v10  ;;  %v886_v46 = vpop.f32.mrb[15].mxu1 }
 0x16d   :  { %v3532_v0 = vadd.f32 %v1632_v45, %v886_v46  ;;  %v3456_v52 = vpop.f32.mrb[16].mxu0 }
 0x16e   :  { %1717 = vst [vmem:[#allocation2 + $0x78] sm:$0xff] %v3531_v37  ;;  %v1644_v53 = vpop.f32.mrb[17].mxu0 }
 0x16f   :  { %1716 = vst [vmem:[#allocation2 + $0x70] sm:$0xff] %v3532_v0  ;;  %v3315_v7 = vpop.f32.mrb[16].mxu1 }
 0x170   :  { %v3533_v29 = vadd.f32 %v3456_v52, %v3315_v7  ;;  %v900_v34 = vpop.f32.mrb[17].mxu1 }
 0x171   :  { %v2005_v54 = vld [vmem:[#allocation2 + $0x68] sm:$0x1]  ;;  %v2006_v42 = vld [vmem:[#allocation2 + $0x69] sm:$0x1]  ;;  %v2007_v48 = vld [vmem:[#allocation2 + $0x6a] sm:$0x1]  ;;  %v3534_v56 = vadd.f32 %v1644_v53, %v900_v34 }
 0x172   :  { %v2008_v24 = vld [vmem:[#allocation2 + $0x6b] sm:$0x1]  ;;  %v2009_v38 = vld [vmem:[#allocation2 + $0x6c] sm:$0x1]  ;;  %v2010_v39 = vld [vmem:[#allocation2 + $0x6d] sm:$0x1]  ;;  %v2017_v55 = vmul.f32 %v2006_v42, %v4290_v41  ;;  %v2018_v63 = vmul.f32 %v2007_v48, %v4285_v31  ;;  %v2022_v10 = vmul.f32 %v2007_v48, %v4290_v41 }
 0x173   :  { %1719 = vst [vmem:[#allocation2 + $0x88] sm:$0xff] %v3533_v29  ;;  %v2011_v13 = vld [vmem:[#allocation2 + $0x6e] sm:$0x1]  ;;  %v2012_v17 = vld [vmem:[#allocation2 + $0x6f] sm:$0x1]  ;;  %v2020_v21 = vsub.f32 0.0, %v2006_v42  ;;  %v2024_v25 = vmul.f32 %v2009_v38, %v4290_v41  ;;  %v2025_v9 = vmul.f32 %v2010_v39, %v4285_v31  ;;  %v2029_v37 = vmul.f32 %v2010_v39, %v4290_v41 }
 0x174   :  { %v2027_v43 = vsub.f32 0.0, %v2009_v38  ;;  %1718 = vst [vmem:[#allocation2 + $0x80] sm:$0xff] %v3534_v56  ;;  %v2019_v45 = vadd.f32 %v2018_v63, %v2017_v55  ;;  %v2034_v46 = vsub.f32 0.0, %v2012_v17  ;;  %v4361_v0 = vpop.f32.mrb[18].mxu1  ;;  %v4363_v52 = vpop.f32.mrb[18].mxu0  ;;  %v2039_v29 = vrot.slane %v2005_v54, 6 }
 0x175   :  { %v2021_v53 = vmul.f32 %v2020_v21, %v4285_v31  ;;  %v2026_v20 = vadd.f32 %v2025_v9, %v2024_v25  ;;  %v4367_v34 = vpop.f32.mrb[19].mxu1  ;;  %v4370_v42 = vmul.f32 %v2012_v17, %v4290_v41  ;;  %v2042_v48 = vmul.f32 %v2008_v24, %v4264_v12  ;;  %v4380_v17 = vpop.f32.mrb[19].mxu0  ;;  %v2498_v40 = vld [vmem:[#allocation2 + $0x7d] sm:$0x1] }
 0x176   :  { %v2028_v7 = vmul.f32 %v2027_v43, %v4285_v31  ;;  %v2048_v56 = vrot.slane %v2011_v13, 6  ;;  %v2053_v38 = vrot.slane %v2019_v45, 6  ;;  %v2041_v63 = vmul.f32 %v2039_v29, %v4211_v44  ;;  %v4404_v1 = vpop.f32.mrb[20].mxu0 }
 0x177   :  { %v2023_v39 = vadd.f32 %v2022_v10, %v2021_v53  ;;  %v2056_v16 = vmul.f32 %v2026_v20, %v4264_v12  ;;  %v4376_v21 = vmul.f32 %v2034_v46, %v4285_v31  ;;  %v2044_v25 = vrot.slane %v2042_v48, 6 }
 0x178   :  { %v2030_v55 = vadd.f32 %v2029_v37, %v2028_v7  ;;  %v2055_v54 = vmul.f32 %v2053_v38, %v4211_v44  ;;  %v2080_v9 = vmul.f32 %v2039_v29, %v4213_v47  ;;  %v2081_v45 = vmul.f32 %v2008_v24, %v4261_v49 }
 0x179   :  { %v2058_v43 = vrot.slane %v2056_v16, 6  ;;  %v2067_v4 = vrot.slane %v2023_v39, 6  ;;  %v2046_v10 = vadd.f32 %v2044_v25, %v2041_v63  ;;  %v2050_v37 = vmul.f32 %v2048_v56, %v4292_v58  ;;  %v4393_v63 = vpop.f32.mrb[20].mxu1 }
 0x17a   :  { %v2070_v13 = vmul.f32 %v2030_v55, %v4264_v12  ;;  %v2088_v53 = vmul.f32 %v2053_v38, %v4213_v47  ;;  %v2089_v46 = vmul.f32 %v2026_v20, %v4261_v49  ;;  %v2083_v3 = vrot.slane %v2081_v45, 6 }
 0x17b   :  { %v2069_v7 = vmul.f32 %v2067_v4, %v4211_v44  ;;  %v2086_v50 = vmul.f32 %v2048_v56, %v4297_v18  ;;  %v4389_v33 = vadd.f32 %v2058_v43, %v2055_v54  ;;  %v2096_v39 = vmul.f32 %v2067_v4, %v4213_v47  ;;  %v2500_v47 = vld [vmem:[#allocation2 + $0x7f] sm:$0x1] }
 0x17c   :  { %v2072_v48 = vrot.slane %v2070_v13, 6  ;;  %v2091_v16 = vrot.slane %v2089_v46, 6  ;;  %v2097_v26 = vmul.f32 %v2030_v55, %v4261_v49  ;;  %v4395_v25 = vadd.f32 %v2050_v37, %v2046_v10  ;;  %v2266_v13 = vld [vmem:[#allocation2 + $0x78] sm:$0x1]  ;;  %v2267_v46 = vld [vmem:[#allocation2 + $0x79] sm:$0x1] }
 0x17d   :  { %v2085_v51 = vadd.f32 %v2083_v3, %v2080_v9  ;;  %v2104_v30 = vmul.f32 %v2039_v29, %v4226_v11  ;;  %v2105_v36 = vmul.f32 %v2008_v24, %v4258_v2  ;;  %v2110_v43 = vmul.f32 %v2048_v56, %v4302_v28  ;;  %v2496_v9 = vld [vmem:[#allocation2 + $0x7b] sm:$0x1]  ;;  %v4410_v24 = vpop.f32.mrb[21].mxu1 }
 0x17e   :  { %5388 = vst [vmem:[#allocation29_spill] sm:$0xff] %v4395_v25  ;;  %v4399_v45 = vadd.f32 %v2072_v48, %v2069_v7  ;;  %v4401_v14 = vadd.f32 %v2091_v16, %v2088_v53  ;;  %v2099_v54 = vrot.slane %v2097_v26, 6  ;;  %v2112_v3 = vmul.f32 %v2053_v38, %v4226_v11  ;;  %v2497_v7 = vld [vmem:[#allocation2 + $0x7c] sm:$0x1]  ;;  %v4424_v38 = vpop.f32.mrb[22].mxu1 }
 0x17f   :  { %v4406_v8 = vadd.f32 %v2086_v50, %v2085_v51  ;;  %v2107_v10 = vrot.slane %v2105_v36, 6  ;;  %v2113_v29 = vmul.f32 %v2026_v20, %v4258_v2  ;;  %v2120_v53 = vmul.f32 %v2067_v4, %v4226_v11  ;;  %v4422_v20 = vpop.f32.mrb[21].mxu0  ;;  %v2495_v11 = vld [vmem:[#allocation2 + $0x7a] sm:$0x1] }
 0x180   :  { %v4412_v37 = vadd.f32 %v2099_v54, %v2096_v39  ;;  %v2121_v26 = vmul.f32 %v2030_v55, %v4258_v2  ;;  %v2291_v56 = vmul.f32 %v4328_v6, %v2266_v13  ;;  %v4419_v51 = vrot.slane %v4395_v25, %v4280_v59  ;;  %v2499_v39 = vld [vmem:[#allocation2 + $0x7e] sm:$0x1]  ;;  %v4431_v54 = vpop.f32.mrb[22].mxu0 }
 0x181   :  { %5389 = vst [vmem:[#allocation30_spill] sm:$0xff] %v4406_v8  ;;  %v2109_v48 = vadd.f32 %v2107_v10, %v2104_v30  ;;  %v2115_v50 = vrot.slane %v2113_v29, 6  ;;  %v2292_v36 = vmul.f32 %v4319_v60, %v2267_v46  ;;  %v4428_v4 = vrot.slane %v4406_v8, %v4280_v59  ;;  %v4433_v10 = vpop.f32.mrb[23].mxu1  ;;  %v4439_v44 = vpop.f32.mrb[23].mxu0 }
 0x182   :  { %5390 = vst [vmem:[#allocation31_spill] sm:$0xff] %v4419_v51  ;;  %v2123_v16 = vrot.slane %v2121_v26, 6  ;;  %v2294_v55 = vsub.f32 0.0, %v2266_v13  ;;  %v2509_v30 = vmul.f32 %v4331_v32, %v2496_v9  ;;  %v2296_v57 = vmul.f32 %v4328_v6, %v2267_v46  ;;  %v4441_v2 = vpop.f32.mrb[24].mxu1  ;;  %v2261_v51 = vld [vmem:[#allocation2 + $0x73] sm:$0x1] }
 0x183   :  { %5391 = vst [vmem:[#allocation32_spill] sm:$0xff] %v4428_v4  ;;  %v4435_v29 = vadd.f32 %v2110_v43, %v2109_v48  ;;  %v2293_v61 = vadd.f32 %v2292_v36, %v2291_v56  ;;  %v2512_v26 = vmul.f32 %v4322_v22, %v2497_v7  ;;  %v4443_v13 = vadd.f32 %v2115_v50, %v2112_v3  ;;  %v4448_v48 = vpop.f32.mrb[24].mxu0  ;;  %v4450_v56 = vpop.f32.mrb[25].mxu1  ;;  %v2013_v50 = vld [vmem:[#allocation2 + $0x70] sm:$0x1] }
 0x184   :  { %v4445_v49 = vadd.f32 %v2123_v16, %v2120_v53  ;;  %v2295_v12 = vmul.f32 %v2294_v55, %v4319_v60  ;;  %v2514_v43 = vsub.f32 0.0, %v2496_v9  ;;  %5393 = vst [vmem:[#allocation34_spill] sm:$0xff] %v4448_v48  ;;  %5394 = vst [vmem:[#allocation35_spill] sm:$0xff] %v4450_v56  ;;  %v2516_v62 = vmul.f32 %v4331_v32, %v2497_v7  ;;  %v4458_v53 = vpop.f32.mrb[25].mxu0  ;;  %v2260_v4 = vld [vmem:[#allocation2 + $0x72] sm:$0x1] }
 0x185   :  { %5392 = vst [vmem:[#allocation33_spill] sm:$0xff] %v4435_v29  ;;  %v4454_v46 = vrot.slane %v4435_v29, %v4280_v59  ;;  %v2513_v36 = vadd.f32 %v2512_v26, %v2509_v30  ;;  %v2518_v3 = vmul.f32 %v4331_v32, %v2499_v39  ;;  %5396 = vst [vmem:[#allocation37_spill] sm:$0xff] %v4458_v53  ;;  %v2521_v27 = vsub.f32 0.0, %v2499_v39  ;;  %v2264_v53 = vld [vmem:[#allocation2 + $0x76] sm:$0x1] }
 0x186   :  { %v2297_v16 = vadd.f32 %v2296_v57, %v2295_v12  ;;  %v2515_v55 = vmul.f32 %v2514_v43, %v4322_v22  ;;  %v2519_v9 = vmul.f32 %v4322_v22, %v2500_v47  ;;  %v4462_v5 = vrot.slane %v2293_v61, 6  ;;  %v2263_v43 = vld [vmem:[#allocation2 + $0x75] sm:$0x1] }
 0x187   :  { %5395 = vst [vmem:[#allocation36_spill] sm:$0xff] %v4454_v46  ;;  %v2523_v46 = vmul.f32 %v4331_v32, %v2500_v47  ;;  %v4465_v30 = vrot.slane %v2495_v11, 6  ;;  %v4467_v7 = vrot.slane %v2498_v40, 6  ;;  %v2522_v15 = vmul.f32 %v2521_v27, %v4322_v22 }
 0x188   :  { %v2517_v26 = vadd.f32 %v2516_v62, %v2515_v55  ;;  %v2520_v19 = vadd.f32 %v2519_v9, %v2518_v3  ;;  %v4470_v57 = vrot.slane %v2513_v36, 6  ;;  %v2032_v12 = vmul.f32 %v2013_v50, %v4285_v31  ;;  %v2259_v36 = vld [vmem:[#allocation2 + $0x71] sm:$0x1] }
 0x189   :  { %v2036_v39 = vmul.f32 %v2013_v50, %v4290_v41  ;;  %v2274_v61 = vmul.f32 %v4328_v6, %v2260_v4  ;;  %v2278_v47 = vmul.f32 %v4319_v60, %v2261_v51  ;;  %v4476_v11 = vrot.slane %v2297_v16, 6 }
 0x18a   :  { %v2524_v40 = vadd.f32 %v2523_v46, %v2522_v15  ;;  %v4478_v56 = vrot.slane %v2520_v19, 6  ;;  %v2280_v62 = vsub.f32 0.0, %v2260_v4  ;;  %v4480_v3 = vrot.slane %v2517_v26, 6  ;;  %v2262_v46 = vld [vmem:[#allocation2 + $0x74] sm:$0x1] }
 0x18b   :  { %v2033_v27 = vadd.f32 %v2032_v12, %v4370_v42  ;;  %v2037_v31 = vadd.f32 %v2036_v39, %v4376_v21  ;;  %v2279_v41 = vadd.f32 %v2278_v47, %v2274_v61  ;;  %v2282_v55 = vmul.f32 %v4328_v6, %v2261_v51 }
 0x18c   :  { %v2281_v50 = vmul.f32 %v2280_v62, %v4319_v60  ;;  %v2284_v9 = vmul.f32 %v4328_v6, %v2263_v43  ;;  %v2285_v16 = vmul.f32 %v4319_v60, %v2264_v53  ;;  %v4488_v15 = vrot.slane %v2524_v40, 6 }
 0x18d   :  { %v2062_v19 = vrot.slane %v2033_v27, 6  ;;  %v2076_v4 = vrot.slane %v2037_v31, 6  ;;  %v2287_v26 = vsub.f32 0.0, %v2263_v43  ;;  %v2289_v21 = vmul.f32 %v4328_v6, %v2264_v53  ;;  %v2265_v27 = vld [vmem:[#allocation2 + $0x77] sm:$0x1] }
 0x18e   :  { %v2283_v48 = vadd.f32 %v2282_v55, %v2281_v50  ;;  %v2286_v42 = vadd.f32 %v2285_v16, %v2284_v9  ;;  %v2299_v12 = vrot.slane %v2259_v36, 6  ;;  %v2303_v31 = vrot.slane %v2262_v46, 6 }
 0x18f   :  { %v2064_v39 = vmul.f32 %v2062_v19, %v4292_v58  ;;  %v2078_v61 = vmul.f32 %v2076_v4, %v4292_v58  ;;  %v2094_v51 = vmul.f32 %v2062_v19, %v4297_v18  ;;  %v2102_v47 = vmul.f32 %v2076_v4, %v4297_v18 }
 0x190   :  { %v2118_v40 = vmul.f32 %v2062_v19, %v4302_v28  ;;  %v2126_v62 = vmul.f32 %v2076_v4, %v4302_v28  ;;  %v2288_v43 = vmul.f32 %v2287_v26, %v4319_v60  ;;  %v2301_v16 = vmul.f32 %v2299_v12, %v4395_v25 }
 0x191   :  { %v4499_v50 = vadd.f32 %v2064_v39, %v4389_v33  ;;  %v4502_v6 = vadd.f32 %v2078_v61, %v4399_v45  ;;  %v4505_v53 = vadd.f32 %v2094_v51, %v4401_v14  ;;  %v4508_v36 = vadd.f32 %v2102_v47, %v4412_v37 }
 0x192   :  { %v4511_v55 = vadd.f32 %v2118_v40, %v4443_v13  ;;  %v4514_v9 = vadd.f32 %v2126_v62, %v4445_v49  ;;  %v2290_v60 = vadd.f32 %v2289_v21, %v2288_v43  ;;  %v2308_v37 = vrot.slane %v2265_v27, 6 }
 0x193   :  { %5397 = vst [vmem:[#allocation38_spill] sm:$0xff] %v4499_v50  ;;  %5398 = vst [vmem:[#allocation39_spill] sm:$0xff] %v4502_v6  ;;  %v4519_v33 = vrot.slane %v4499_v50, %v4280_v59  ;;  %v4523_v14 = vrot.slane %v4502_v6, %v4280_v59  ;;  %v4527_v45 = vrot.slane %v4505_v53, %v4280_v59  ;;  %v2313_v26 = vrot.slane %v2279_v41, 6 }
 0x194   :  { %5399 = vst [vmem:[#allocation40_spill] sm:$0xff] %v4505_v53  ;;  %5400 = vst [vmem:[#allocation41_spill] sm:$0xff] %v4508_v36  ;;  %v4531_v49 = vrot.slane %v4508_v36, %v4280_v59  ;;  %v4535_v13 = vrot.slane %v4511_v55, %v4280_v59  ;;  %v4539_v19 = vrot.slane %v4514_v9, %v4280_v59  ;;  %v2317_v21 = vrot.slane %v2286_v42, 6 }
 0x195   :  { %5401 = vst [vmem:[#allocation42_spill] sm:$0xff] %v4511_v55  ;;  %5402 = vst [vmem:[#allocation43_spill] sm:$0xff] %v4514_v9  ;;  %v2305_v4 = vmul.f32 %v2303_v31, %v4499_v50  ;;  %v2310_v46 = vmul.f32 %v2308_v37, %v4502_v6  ;;  %v2327_v39 = vrot.slane %v2283_v48, 6  ;;  %v2324_v51 = vmul.f32 %v4462_v5, %v4502_v6 }
 0x196   :  { %5403 = vst [vmem:[#allocation44_spill] sm:$0xff] %v4523_v14  ;;  %5404 = vst [vmem:[#allocation45_spill] sm:$0xff] %v4531_v49  ;;  %v2331_v47 = vrot.slane %v2290_v60, 6  ;;  %v2338_v40 = vmul.f32 %v4476_v11, %v4502_v6  ;;  %v2315_v62 = vmul.f32 %v2313_v26, %v4395_v25  ;;  %v2319_v27 = vmul.f32 %v2317_v21, %v4499_v50 }
 0x197   :  { %5405 = vst [vmem:[#allocation46_spill] sm:$0xff] %v4539_v19  ;;  %v2306_v61 = vadd.f32 %v2305_v4, %v2301_v16  ;;  %v2340_v43 = vmul.f32 %v2299_v12, %v4406_v8  ;;  %v2341_v19 = vmul.f32 %v2303_v31, %v4505_v53  ;;  %v2329_v48 = vmul.f32 %v2327_v39, %v4395_v25 }
 0x198   :  { %v2333_v41 = vmul.f32 %v2331_v47, %v4499_v50  ;;  %v2343_v42 = vmul.f32 %v2308_v37, %v4508_v36  ;;  %v2320_v60 = vadd.f32 %v2319_v27, %v2315_v62  ;;  %v2345_v4 = vmul.f32 %v2313_v26, %v4406_v8 }
 0x199   :  { %v4551_v49 = vadd.f32 %v2310_v46, %v2306_v61  ;;  %v2342_v16 = vadd.f32 %v2341_v19, %v2340_v43  ;;  %v2346_v14 = vmul.f32 %v2317_v21, %v4505_v53  ;;  %v2348_v28 = vmul.f32 %v4462_v5, %v4508_v36 }
 0x19a   :  { %v2334_v6 = vadd.f32 %v2333_v41, %v2329_v48  ;;  %v2350_v18 = vmul.f32 %v2327_v39, %v4406_v8  ;;  %v2351_v46 = vmul.f32 %v2331_v47, %v4505_v53  ;;  %v4562_v61 = vadd.f32 %v2324_v51, %v2320_v60 }
 0x19b   :  { %5406 = vst [vmem:[#allocation47_spill] sm:$0xff] %v4551_v49  ;;  %v4564_v25 = vadd.f32 %v2343_v42, %v2342_v16  ;;  %v2347_v50 = vadd.f32 %v2346_v14, %v2345_v4  ;;  %v2353_v19 = vmul.f32 %v4476_v11, %v4508_v36  ;;  %v2355_v43 = vmul.f32 %v2299_v12, %v4435_v29 }
 0x19c   :  { %5407 = vst [vmem:[#allocation48_spill] sm:$0xff] %v4562_v61  ;;  %v4568_v62 = vadd.f32 %v2338_v40, %v2334_v6  ;;  %v2352_v27 = vadd.f32 %v2351_v46, %v2350_v18  ;;  %v2356_v48 = vmul.f32 %v2303_v31, %v4511_v55  ;;  %v2358_v8 = vmul.f32 %v2308_v37, %v4514_v9  ;;  %v2736_v37 = vld [vmem:[#allocation2 + $0x8a] sm:$0x1]  ;;  %v2502_v46 = vld [vmem:[#allocation2 + $0x81] sm:$0x1] }
 0x19d   :  { %5408 = vst [vmem:[#allocation49_spill] sm:$0xff] %v4564_v25  ;;  %v4572_v41 = vadd.f32 %v2348_v28, %v2347_v50  ;;  %v2360_v51 = vmul.f32 %v2313_v26, %v4435_v29  ;;  %v2361_v42 = vmul.f32 %v2317_v21, %v4511_v55  ;;  %v2365_v16 = vmul.f32 %v2327_v39, %v4435_v29  ;;  %v2734_v50 = vld [vmem:[#allocation2 + $0x88] sm:$0x1] }
 0x19e   :  { %5409 = vst [vmem:[#allocation50_spill] sm:$0xff] %v4568_v62  ;;  %v4577_v60 = vadd.f32 %v2353_v19, %v2352_v27  ;;  %v2357_v14 = vadd.f32 %v2356_v48, %v2355_v43  ;;  %v2366_v6 = vmul.f32 %v2331_v47, %v4511_v55  ;;  %v2363_v12 = vmul.f32 %v4462_v5, %v4514_v9  ;;  %v2737_v5 = vld [vmem:[#allocation2 + $0x8b] sm:$0x1]  ;;  %v2503_v19 = vld [vmem:[#allocation2 + $0x82] sm:$0x1] }
 0x19f   :  { %5410 = vst [vmem:[#allocation51_spill] sm:$0xff] %v4572_v41  ;;  %v2362_v18 = vadd.f32 %v2361_v42, %v2360_v51  ;;  %v2368_v28 = vmul.f32 %v4476_v11, %v4514_v9  ;;  %v4587_v31 = vrot.slane %v4551_v49, %v4280_v59  ;;  %v4593_v39 = vrot.slane %v4562_v61, %v4280_v59  ;;  %v2735_v48 = vld [vmem:[#allocation2 + $0x89] sm:$0x1] }
 0x1a0   :  { %v4589_v26 = vadd.f32 %v2358_v8, %v2357_v14  ;;  %v2367_v21 = vadd.f32 %v2366_v6, %v2365_v16  ;;  %v4597_v47 = vrot.slane %v4568_v62, %v4280_v59  ;;  %v4603_v11 = vrot.slane %v4564_v25, %v4280_v59 }
 0x1a1   :  { %v4599_v40 = vadd.f32 %v2363_v12, %v2362_v18  ;;  %v4607_v8 = vrot.slane %v4572_v41, %v4280_v59  ;;  %v4611_v4 = vrot.slane %v4577_v60, %v4280_v59  ;;  %v4620_v51 = vmul.f32 %v4325_v23, %v2734_v50  ;;  %v2501_v12 = vld [vmem:[#allocation2 + $0x80] sm:$0x1] }
 0x1a2   :  { %5411 = vst [vmem:[#allocation52_spill] sm:$0xff] %v4589_v26  ;;  %5412 = vst [vmem:[#allocation53_spill] sm:$0xff] %v4597_v47  ;;  %v4613_v27 = vadd.f32 %v2368_v28, %v2367_v21  ;;  %v4617_v43 = vrot.slane %v4589_v26, %v4280_v59  ;;  %v2759_v42 = vmul.f32 %v4334_v35, %v2736_v37  ;;  %v2762_v18 = vsub.f32 0.0, %v2736_v37 }
 0x1a3   :  { %5413 = vst [vmem:[#allocation54_spill] sm:$0xff] %v4599_v40  ;;  %5414 = vst [vmem:[#allocation55_spill] sm:$0xff] %v4611_v4  ;;  %v4625_v14 = vrot.slane %v4599_v40, %v4280_v59  ;;  %v4628_v16 = vmul.f32 %v4334_v35, %v2734_v50  ;;  %v2760_v6 = vmul.f32 %v4325_v23, %v2737_v5  ;;  %v4639_v55 = vrot.slane %v2735_v48, 6 }
 0x1a4   :  { %5415 = vst [vmem:[#allocation56_spill] sm:$0xff] %v4613_v27  ;;  %v4633_v28 = vrot.slane %v4613_v27, %v4280_v59  ;;  %v2764_v21 = vmul.f32 %v4334_v35, %v2737_v5  ;;  %v2525_v4 = vmul.f32 %v4331_v32, %v2502_v46  ;;  %v2526_v47 = vmul.f32 %v4322_v22, %v2503_v19 }
 0x1a5   :  { %5416 = vst [vmem:[#allocation57_spill] sm:$0xff] %v4625_v14  ;;  %v2761_v9 = vadd.f32 %v2760_v6, %v2759_v42  ;;  %v2763_v14 = vmul.f32 %v2762_v18, %v4325_v23  ;;  %v2528_v50 = vsub.f32 0.0, %v2502_v46  ;;  %v2535_v37 = vmul.f32 %v4465_v30, %v4551_v49 }
 0x1a6   :  { %5417 = vst [vmem:[#allocation58_spill] sm:$0xff] %v4633_v28  ;;  %v2527_v29 = vadd.f32 %v2526_v47, %v2525_v4  ;;  %v2539_v36 = vmul.f32 %v4467_v7, %v4562_v61  ;;  %v2542_v28 = vrot.slane %v2501_v12, 6  ;;  %v2530_v58 = vmul.f32 %v4331_v32, %v2503_v19 }
 0x1a7   :  { %v2765_v53 = vadd.f32 %v2764_v21, %v2763_v14  ;;  %v2529_v5 = vmul.f32 %v2528_v50, %v4322_v22  ;;  %v2549_v42 = vmul.f32 %v4470_v57, %v4551_v49  ;;  %v2553_v47 = vmul.f32 %v4478_v56, %v4562_v61 }
 0x1a8   :  { %v2540_v6 = vadd.f32 %v2539_v36, %v2535_v37  ;;  %v2544_v48 = vmul.f32 %v2542_v28, %v4568_v62  ;;  %v2556_v4 = vrot.slane %v2527_v29, 6  ;;  %v4652_v46 = vrot.slane %v2761_v9, 6 }
 0x1a9   :  { %v2531_v18 = vadd.f32 %v2530_v58, %v2529_v5  ;;  %v2563_v14 = vmul.f32 %v4480_v3, %v4551_v49  ;;  %v2567_v22 = vmul.f32 %v4488_v15, %v4562_v61  ;;  %v2554_v19 = vadd.f32 %v2553_v47, %v2549_v42 }
 0x1aa   :  { %v4658_v32 = vadd.f32 %v2544_v48, %v2540_v6  ;;  %v2558_v36 = vmul.f32 %v2556_v4, %v4568_v62  ;;  %v2574_v12 = vmul.f32 %v4465_v30, %v4564_v25  ;;  %v2575_v29 = vmul.f32 %v4467_v7, %v4572_v41 }
 0x1ab   :  { %v2568_v21 = vadd.f32 %v2567_v22, %v2563_v14  ;;  %v2570_v50 = vrot.slane %v2531_v18, 6  ;;  %v2577_v58 = vmul.f32 %v2542_v28, %v4577_v60  ;;  %v2579_v37 = vmul.f32 %v4470_v57, %v4564_v25 }
 0x1ac   :  { %5418 = vst [vmem:[#allocation59_spill] sm:$0xff] %v4658_v32  ;;  %v4666_v9 = vadd.f32 %v2558_v36, %v2554_v19  ;;  %v2580_v5 = vmul.f32 %v4478_v56, %v4572_v41  ;;  %v2582_v42 = vmul.f32 %v2556_v4, %v4577_v60  ;;  %v2576_v48 = vadd.f32 %v2575_v29, %v2574_v12 }
 0x1ad   :  { %v2572_v6 = vmul.f32 %v2570_v50, %v4568_v62  ;;  %v2584_v47 = vmul.f32 %v4480_v3, %v4564_v25  ;;  %v2585_v18 = vmul.f32 %v4488_v15, %v4572_v41  ;;  %v2587_v22 = vmul.f32 %v2570_v50, %v4577_v60 }
 0x1ae   :  { %v2581_v14 = vadd.f32 %v2580_v5, %v2579_v37  ;;  %v2589_v19 = vmul.f32 %v4465_v30, %v4589_v26  ;;  %v2590_v36 = vmul.f32 %v4467_v7, %v4599_v40  ;;  %v4685_v49 = vadd.f32 %v2577_v58, %v2576_v48  ;;  %v2731_v48 = vld [vmem:[#allocation2 + $0x85] sm:$0x1] }
 0x1af   :  { %v4683_v61 = vadd.f32 %v2572_v6, %v2568_v21  ;;  %v2586_v12 = vadd.f32 %v2585_v18, %v2584_v47  ;;  %v2592_v29 = vmul.f32 %v2542_v28, %v4613_v27  ;;  %v2594_v37 = vmul.f32 %v4470_v57, %v4589_v26  ;;  %v2730_v6 = vld [vmem:[#allocation2 + $0x84] sm:$0x1] }
 0x1b0   :  { %5420 = vst [vmem:[#allocation61_spill] sm:$0xff] %v4685_v49  ;;  %v4688_v25 = vadd.f32 %v2582_v42, %v2581_v14  ;;  %v2591_v62 = vadd.f32 %v2590_v36, %v2589_v19  ;;  %v2595_v5 = vmul.f32 %v4478_v56, %v4599_v40  ;;  %v4694_v30 = vrot.slane %v2765_v53, 6  ;;  %v2729_v14 = vld [vmem:[#allocation2 + $0x83] sm:$0x1]  ;;  %v2732_v19 = vld [vmem:[#allocation2 + $0x86] sm:$0x1] }
 0x1b1   :  { %5419 = vst [vmem:[#allocation60_spill] sm:$0xff] %v4683_v61  ;;  %v4696_v41 = vadd.f32 %v2587_v22, %v2586_v12  ;;  %v2599_v7 = vmul.f32 %v4480_v3, %v4589_v26  ;;  %v2600_v21 = vmul.f32 %v4488_v15, %v4599_v40  ;;  %v2597_v42 = vmul.f32 %v2556_v4, %v4613_v27 }
 0x1b2   :  { %5421 = vst [vmem:[#allocation62_spill] sm:$0xff] %v4688_v25  ;;  %v4702_v28 = vadd.f32 %v2592_v29, %v2591_v62  ;;  %v2596_v58 = vadd.f32 %v2595_v5, %v2594_v37  ;;  %v2602_v57 = vmul.f32 %v2570_v50, %v4613_v27  ;;  %v4708_v53 = vrot.slane %v4658_v32, %v4280_v59  ;;  %v2733_v62 = vld [vmem:[#allocation2 + $0x87] sm:$0x1] }
 0x1b3   :  { %v2601_v56 = vadd.f32 %v2600_v21, %v2599_v7  ;;  %v4712_v3 = vrot.slane %v4666_v9, %v4280_v59  ;;  %v4716_v15 = vrot.slane %v4683_v61, %v4280_v59  ;;  %v4722_v4 = vrot.slane %v4685_v49, %v4280_v59 }
 0x1b4   :  { %v4718_v47 = vadd.f32 %v2597_v42, %v2596_v58  ;;  %v4726_v50 = vrot.slane %v4688_v25, %v4280_v59  ;;  %v4730_v18 = vrot.slane %v4696_v41, %v4280_v59  ;;  %v2743_v36 = vmul.f32 %v4334_v35, %v2730_v6 }
 0x1b5   :  { %5422 = vst [vmem:[#allocation63_spill] sm:$0xff] %v4712_v3  ;;  %5423 = vst [vmem:[#allocation64_spill] sm:$0xff] %v4716_v15  ;;  %v4732_v22 = vadd.f32 %v2602_v57, %v2601_v56  ;;  %v2746_v12 = vmul.f32 %v4325_v23, %v2731_v48  ;;  %v2748_v29 = vsub.f32 0.0, %v2730_v6  ;;  %v4738_v37 = vrot.slane %v4702_v28, %v4280_v59 }
 0x1b6   :  { %5424 = vst [vmem:[#allocation65_spill] sm:$0xff] %v4726_v50  ;;  %5425 = vst [vmem:[#allocation66_spill] sm:$0xff] %v4730_v18  ;;  %v4742_v5 = vrot.slane %v4718_v47, %v4280_v59  ;;  %v2752_v7 = vmul.f32 %v4334_v35, %v2733_v62  ;;  %v2755_v21 = vsub.f32 0.0, %v2733_v62  ;;  %v2750_v57 = vmul.f32 %v4334_v35, %v2731_v48 }
 0x1b7   :  { %v2747_v58 = vadd.f32 %v2746_v12, %v2743_v36  ;;  %v2749_v42 = vmul.f32 %v2748_v29, %v4325_v23  ;;  %v2767_v56 = vrot.slane %v2729_v14, 6  ;;  %v4749_v6 = vrot.slane %v4732_v22, %v4280_v59 }
 0x1b8   :  { %5426 = vst [vmem:[#allocation67_spill] sm:$0xff] %v4742_v5  ;;  %v2754_v18 = vadd.f32 %v4620_v51, %v2752_v7  ;;  %v2756_v15 = vmul.f32 %v2755_v21, %v4325_v23  ;;  %v2771_v50 = vrot.slane %v2732_v19, 6  ;;  %v2778_v62 = vmul.f32 %v4639_v55, %v4683_v61 }
 0x1b9   :  { %5427 = vst [vmem:[#allocation68_spill] sm:$0xff] %v4749_v6  ;;  %v2751_v3 = vadd.f32 %v2750_v57, %v2749_v42  ;;  %v2769_v5 = vmul.f32 %v2767_v56, %v4658_v32  ;;  %v2781_v36 = vrot.slane %v2747_v58, 6  ;;  %v2792_v14 = vmul.f32 %v4652_v46, %v4683_v61 }
 0x1ba   :  { %v2758_v12 = vadd.f32 %v4628_v16, %v2756_v15  ;;  %v2773_v35 = vmul.f32 %v2771_v50, %v4666_v9  ;;  %v2785_v48 = vrot.slane %v2754_v18, 6  ;;  %v2808_v23 = vmul.f32 %v2767_v56, %v4685_v49 }
 0x1bb   :  { %v2783_v51 = vmul.f32 %v2781_v36, %v4658_v32  ;;  %v2795_v29 = vrot.slane %v2751_v3, 6  ;;  %v2809_v19 = vmul.f32 %v2771_v50, %v4688_v25  ;;  %v2806_v16 = vmul.f32 %v4694_v30, %v4683_v61 }
 0x1bc   :  { %v2774_v7 = vadd.f32 %v2773_v35, %v2769_v5  ;;  %v2787_v21 = vmul.f32 %v2785_v48, %v4666_v9  ;;  %v2799_v42 = vrot.slane %v2758_v12, 6  ;;  %v2813_v58 = vmul.f32 %v2781_v36, %v4685_v49 }
 0x1bd   :  { %v2797_v15 = vmul.f32 %v2795_v29, %v4658_v32  ;;  %v2810_v18 = vadd.f32 %v2809_v19, %v2808_v23  ;;  %v2814_v57 = vmul.f32 %v2785_v48, %v4688_v25  ;;  %v2811_v5 = vmul.f32 %v4639_v55, %v4696_v41 }
 0x1be   :  { %v2779_v6 = vadd.f32 %v2778_v62, %v2774_v7  ;;  %v2788_v3 = vadd.f32 %v2787_v21, %v2783_v51  ;;  %v2801_v40 = vmul.f32 %v2799_v42, %v4666_v9  ;;  %v2816_v12 = vmul.f32 %v4652_v46, %v4696_v41 }
 0x1bf   :  { %v2815_v35 = vadd.f32 %v2814_v57, %v2813_v58  ;;  %v2818_v26 = vmul.f32 %v2795_v29, %v4685_v49  ;;  %v2819_v61 = vmul.f32 %v2799_v42, %v4688_v25  ;;  %v2812_v32 = vadd.f32 %v2811_v5, %v2810_v18 }
 0x1c0   :  { %v2793_v23 = vadd.f32 %v2792_v14, %v2788_v3  ;;  %v2802_v19 = vadd.f32 %v2801_v40, %v2797_v15  ;;  %v2823_v27 = vmul.f32 %v2767_v56, %v4702_v28  ;;  %v2821_v7 = vmul.f32 %v4694_v30, %v4696_v41 }
 0x1c1   :  { %v2817_v62 = vadd.f32 %v2816_v12, %v2815_v35  ;;  %v2820_v51 = vadd.f32 %v2819_v61, %v2818_v26  ;;  %v2824_v21 = vmul.f32 %v2771_v50, %v4718_v47  ;;  %v2826_v57 = vmul.f32 %v4639_v55, %v4732_v22  ;;  %v5439_v35 = vld [vmem:[#allocation26_spill] sm:$0xff] }
 0x1c2   :  { %v2807_v58 = vadd.f32 %v2806_v16, %v2802_v19  ;;  %v2828_v49 = vmul.f32 %v2781_v36, %v4702_v28  ;;  %v2829_v25 = vmul.f32 %v2785_v48, %v4718_v47  ;;  %v2833_v15 = vmul.f32 %v2795_v29, %v4702_v28 }
 0x1c3   :  { %v2822_v14 = vadd.f32 %v2821_v7, %v2820_v51  ;;  %v2825_v40 = vadd.f32 %v2824_v21, %v2823_v27  ;;  %v2834_v56 = vmul.f32 %v2799_v42, %v4718_v47  ;;  %v2831_v26 = vmul.f32 %v4652_v46, %v4732_v22  ;;  %v5443_v7 = vld [vmem:[#allocation36_spill] sm:$0xff] }
 0x1c4   :  { %v2830_v61 = vadd.f32 %v2829_v25, %v2828_v49  ;;  %v2836_v50 = vmul.f32 %v4694_v30, %v4732_v22  ;;  %v4791_v16 = vrot.slane %v2779_v6, %v4280_v59  ;;  %v4794_v48 = vrot.slane %v2793_v23, %v4280_v59  ;;  %v5441_v23 = vld [vmem:[#allocation31_spill] sm:$0xff] }
 0x1c5   :  { %v2827_v55 = vadd.f32 %v2826_v57, %v2825_v40  ;;  %v2835_v36 = vadd.f32 %v2834_v56, %v2833_v15  ;;  %v4797_v27 = vrot.slane %v2807_v58, %v4280_v59  ;;  %v4800_v25 = vrot.slane %v2812_v32, %v4280_v59 }
 0x1c6   :  { %v2832_v29 = vadd.f32 %v2831_v26, %v2830_v61  ;;  %v4803_v49 = vrot.slane %v2817_v62, %v4280_v59  ;;  %v3535_v46 = vadd.f32 %v4363_v52, %v4361_v0  ;;  %v4808_v6 = vrot.slane %v2822_v14, %v4280_v59  ;;  %v5442_v62 = vld [vmem:[#allocation32_spill] sm:$0xff] }
 0x1c7   :  { %5428 = vst [vmem:[#allocation69_spill] sm:$0xff] %v4797_v27  ;;  %v2837_v30 = vadd.f32 %v2836_v50, %v2835_v36  ;;  %v3536_v42 = vadd.f32 %v4380_v17, %v4367_v34  ;;  %v3537_v18 = vadd.f32 %v4404_v1, %v4393_v63  ;;  %v4815_v3 = vrot.slane %v2827_v55, %v4280_v59  ;;  %v5434_v1 = vld [vmem:[#allocation34_spill] sm:$0xff]  ;;  %v5435_v63 = vld [vmem:[#allocation35_spill] sm:$0xff]  ;;  %v5455_v36 = vld [vmem:[#allocation21_spill] sm:$0xff] }
 0x1c8   :  { %5429 = vst [vmem:[#allocation70_spill] sm:$0xff] %v4803_v49  ;;  %5430 = vst [vmem:[#allocation71_spill] sm:$0xff] %v4808_v6  ;;  %v3538_v32 = vadd.f32 %v4422_v20, %v4410_v24  ;;  %v3539_v0 = vadd.f32 %v4431_v54, %v4424_v38  ;;  %v4823_v52 = vadd.f32 %v4439_v44, %v4433_v10  ;;  %v5436_v24 = vld [vmem:[#allocation37_spill] sm:$0xff]  ;;  %v5440_v10 = vld [vmem:[#allocation28_spill] sm:$0xff] }
 0x1c9   :  { %1721 = vst [vmem:[#allocation2 + $0x98] sm:$0xff] %v3535_v46  ;;  %v4826_v5 = vrot.slane %v2832_v29, %v4280_v59  ;;  %v4829_v34 = vrot.slane %v2837_v30, %v4280_v59  ;;  %1720 = vst [vmem:[#allocation2 + $0x90] sm:$0xff] %v3536_v42  ;;  %v3541_v17 = vadd.f32 %v5434_v1, %v4441_v2  ;;  %v5438_v38 = vld [vmem:[#allocation25_spill] sm:$0xff]  ;;  %v5454_v50 = vld [vmem:[#allocation18_spill] sm:$0xff] }
 0x1ca   :  { %5431 = vst [vmem:[#allocation72_spill] sm:$0xff] %v4823_v52  ;;  %1723 = vst [vmem:[#allocation2 + $0xa8] sm:$0xff] %v3537_v18  ;;  %v4835_v20 = vadd.f32 %v5436_v24, %v5435_v63  ;;  %v1919_v54 = vmul.f32 %v3538_v32, %v5438_v38  ;;  %v1949_v44 = vmul.f32 %v3538_v32, %v5439_v35  ;;  %v5456_v46 = vld [vmem:[#allocation22_spill] sm:$0xff] }
 0x1cb   :  { %5432 = vst [vmem:[#allocation73_spill] sm:$0xff] %v4826_v5  ;;  %5433 = vst [vmem:[#allocation74_spill] sm:$0xff] %v4829_v34  ;;  %v1979_v12 = vmul.f32 %v3538_v32, %v5440_v10  ;;  %v2167_v19 = vmul.f32 %v3538_v32, %v5441_v23  ;;  %v2199_v51 = vmul.f32 %v3538_v32, %v5442_v62 }
 0x1cc   :  { %5437 = vst [vmem:[#allocation34_spill] sm:$0xff] %v4835_v20  ;;  %1725 = vst [vmem:[#allocation2 + $0xb8] sm:$0xff] %v3539_v0  ;;  %v4843_v21 = vmul.f32 %v3538_v32, %v5443_v7  ;;  %v4846_v2 = vmul.f32 %v3538_v32, %v4587_v31  ;;  %v4849_v58 = vmul.f32 %v3538_v32, %v4603_v11 }
 0x1cd   :  { %1727 = vst [vmem:[#allocation2 + $0xc8] sm:$0xff] %v3541_v17  ;;  %v4852_v57 = vmul.f32 %v3538_v32, %v4617_v43  ;;  %v4855_v14 = vmul.f32 %v3538_v32, %v4708_v53  ;;  %v4858_v40 = vmul.f32 %v3538_v32, %v4722_v4  ;;  %v4861_v15 = vmul.f32 %v3538_v32, %v4738_v37 }
 0x1ce   :  { %5444 = vst [vmem:[#allocation35_spill] sm:$0xff] %v4843_v21  ;;  %5445 = vst [vmem:[#allocation37_spill] sm:$0xff] %v4846_v2  ;;  %v4864_v56 = vmul.f32 %v3538_v32, %v4791_v16  ;;  %v4867_v61 = vmul.f32 %v3538_v32, %v4800_v25  ;;  %v4870_v26 = vmul.f32 %v3538_v32, %v4815_v3  ;;  %v5481_v21 = vld [vmem:[#allocation38_spill] sm:$0xff] }
 0x1cf   :  { %5446 = vst [vmem:[#allocation25_spill] sm:$0xff] %v4849_v58  ;;  %5447 = vst [vmem:[#allocation26_spill] sm:$0xff] %v4852_v57  ;;  %v1925_v55 = vmul.f32 %v4823_v52, %v5454_v50  ;;  %v1955_v29 = vmul.f32 %v4823_v52, %v5455_v36  ;;  %v1985_v30 = vmul.f32 %v4823_v52, %v5456_v46  ;;  %v5466_v57 = vld [vmem:[#allocation56_spill] sm:$0xff]  ;;  %v5473_v58 = vld [vmem:[#allocation11_spill] sm:$0xff] }
 0x1d0   :  { %5448 = vst [vmem:[#allocation28_spill] sm:$0xff] %v4855_v14  ;;  %5449 = vst [vmem:[#allocation31_spill] sm:$0xff] %v4858_v40  ;;  %v2173_v42 = vmul.f32 %v4823_v52, %v4519_v33  ;;  %v2205_v18 = vmul.f32 %v4823_v52, %v4527_v45  ;;  %v2506_v0 = vld [vmem:[#allocation2 + $0x98] sm:$0x1]  ;;  %v2738_v1 = vld [vmem:[#allocation2 + $0x99] sm:$0x1]  ;;  %v4886_v63 = vmul.f32 %v4823_v52, %v4535_v13 }
 0x1d1   :  { %5450 = vst [vmem:[#allocation32_spill] sm:$0xff] %v4861_v15  ;;  %5451 = vst [vmem:[#allocation36_spill] sm:$0xff] %v4864_v56  ;;  %v2739_v17 = vld [vmem:[#allocation2 + $0x9a] sm:$0x1]  ;;  %v4882_v32 = vadd.f32 %v1925_v55, %v1919_v54  ;;  %v4890_v24 = vmul.f32 %v4823_v52, %v4593_v39  ;;  %v4894_v20 = vmul.f32 %v4823_v52, %v4607_v8  ;;  %v2614_v34 = vrot.slane %v2506_v0, 6  ;;  %v5465_v15 = vld [vmem:[#allocation50_spill] sm:$0xff] }
 0x1d2   :  { %5452 = vst [vmem:[#allocation75_spill] sm:$0xff] %v4867_v61  ;;  %5453 = vst [vmem:[#allocation76_spill] sm:$0xff] %v4870_v26  ;;  %v2740_v6 = vld [vmem:[#allocation2 + $0x9b] sm:$0x1]  ;;  %v2839_v27 = vrot.slane %v2738_v1, 6  ;;  %v2843_v26 = vrot.slane %v2739_v17, 6  ;;  %v4896_v61 = vadd.f32 %v1955_v29, %v1949_v44  ;;  %v4898_v55 = vadd.f32 %v1985_v30, %v1979_v12 }
 0x1d3   :  { %5457 = vst [vmem:[#allocation18_spill] sm:$0xff] %v4882_v32  ;;  %5458 = vst [vmem:[#allocation21_spill] sm:$0xff] %v4886_v63  ;;  %v2848_v54 = vrot.slane %v2740_v6, 6  ;;  %v4900_v32 = vadd.f32 %v2173_v42, %v2167_v19  ;;  %v4902_v56 = vadd.f32 %v2205_v18, %v2199_v51  ;;  %v4905_v40 = vmul.f32 %v2614_v34, %v5465_v15  ;;  %v5467_v1 = vld [vmem:[#allocation59_spill] sm:$0xff]  ;;  %v5468_v12 = vld [vmem:[#allocation60_spill] sm:$0xff] }
 0x1d4   :  { %5459 = vst [vmem:[#allocation22_spill] sm:$0xff] %v4890_v24  ;;  %5460 = vst [vmem:[#allocation77_spill] sm:$0xff] %v4894_v20  ;;  %v4908_v14 = vmul.f32 %v2614_v34, %v4577_v60  ;;  %v4911_v0 = vmul.f32 %v2614_v34, %v5466_v57  ;;  %v2841_v17 = vmul.f32 %v2839_v27, %v5467_v1  ;;  %v2014_v44 = vld [vmem:[#allocation2 + $0x90] sm:$0x1]  ;;  %v2015_v29 = vld [vmem:[#allocation2 + $0x91] sm:$0x1] }
 0x1d5   :  { %5461 = vst [vmem:[#allocation78_spill] sm:$0xff] %v4896_v61  ;;  %5462 = vst [vmem:[#allocation79_spill] sm:$0xff] %v4898_v55  ;;  %v2845_v6 = vmul.f32 %v2843_v26, %v4666_v9  ;;  %v2850_v19 = vmul.f32 %v2848_v54, %v5468_v12  ;;  %v5469_v30 = vld [vmem:[#allocation61_spill] sm:$0xff]  ;;  %v5470_v42 = vld [vmem:[#allocation62_spill] sm:$0xff]  ;;  %v2859_v60 = vmul.f32 %v2839_v27, %v4702_v28  ;;  %v2129_v55 = vrot.slane %v2014_v44, 6 }
 0x1d6   :  { %5463 = vst [vmem:[#allocation80_spill] sm:$0xff] %v4900_v32  ;;  %5464 = vst [vmem:[#allocation81_spill] sm:$0xff] %v4902_v56  ;;  %v2853_v51 = vmul.f32 %v2839_v27, %v5469_v30  ;;  %v2854_v18 = vmul.f32 %v2843_v26, %v5470_v42  ;;  %v2016_v15 = vld [vmem:[#allocation2 + $0x92] sm:$0x1]  ;;  %v2856_v56 = vmul.f32 %v2848_v54, %v4696_v41  ;;  %v5471_v61 = vld [vmem:[#allocation13_spill] sm:$0xff] }
 0x1d7   :  { %v2860_v34 = vmul.f32 %v2843_v26, %v4718_v47  ;;  %v2862_v57 = vmul.f32 %v2848_v54, %v4732_v22  ;;  %v2846_v1 = vadd.f32 %v2845_v6, %v2841_v17  ;;  %v2132_v9 = vmul.f32 %v2015_v29, %v5471_v61  ;;  %v5472_v20 = vld [vmem:[#allocation12_spill] sm:$0xff]  ;;  %v5474_v28 = vld [vmem:[#allocation7_spill] sm:$0xff] }
 0x1d8   :  { %v2855_v32 = vadd.f32 %v2854_v18, %v2853_v51  ;;  %v2138_v12 = vrot.slane %v2016_v15, 6  ;;  %v2144_v30 = vmul.f32 %v2015_v29, %v5472_v20  ;;  %v2153_v42 = vmul.f32 %v2015_v29, %v5473_v58  ;;  %v2268_v26 = vld [vmem:[#allocation2 + $0x93] sm:$0x1]  ;;  %v2269_v22 = vld [vmem:[#allocation2 + $0x94] sm:$0x1]  ;;  %v5476_v61 = vld [vmem:[#allocation8_spill] sm:$0xff] }
 0x1d9   :  { %v2861_v52 = vadd.f32 %v2860_v34, %v2859_v60  ;;  %v4925_v24 = vadd.f32 %v2850_v19, %v2846_v1  ;;  %v2131_v27 = vmul.f32 %v2129_v55, %v5474_v28  ;;  %v2134_v47 = vrot.slane %v2132_v9, 6  ;;  %v5475_v17 = vld [vmem:[#allocation3_spill] sm:$0xff]  ;;  %v5477_v58 = vld [vmem:[#allocation17_spill] sm:$0xff] }
 0x1da   :  { %v4927_v41 = vadd.f32 %v2856_v56, %v2855_v32  ;;  %v2140_v44 = vmul.f32 %v2138_v12, %v5475_v17  ;;  %v2143_v6 = vmul.f32 %v2129_v55, %v5476_v61  ;;  %v2146_v51 = vrot.slane %v2144_v30, 6  ;;  %v2270_v18 = vld [vmem:[#allocation2 + $0x95] sm:$0x1]  ;;  %v2504_v20 = vld [vmem:[#allocation2 + $0x96] sm:$0x1]  ;;  %v5478_v19 = vld [vmem:[#allocation9_spill] sm:$0xff] }
 0x1db   :  { %v4930_v54 = vadd.f32 %v2862_v57, %v2861_v52  ;;  %v2136_v15 = vadd.f32 %v2134_v47, %v2131_v27  ;;  %v2149_v29 = vmul.f32 %v2138_v12, %v5477_v58  ;;  %v2152_v56 = vmul.f32 %v2129_v55, %v5478_v19  ;;  %v5479_v34 = vld [vmem:[#allocation19_spill] sm:$0xff]  ;;  %v5480_v61 = vld [vmem:[#allocation29_spill] sm:$0xff]  ;;  %v5482_v27 = vld [vmem:[#allocation30_spill] sm:$0xff] }
 0x1dc   :  { %v2155_v32 = vrot.slane %v2153_v42, 6  ;;  %v2148_v60 = vadd.f32 %v2146_v51, %v2143_v6  ;;  %v2158_v1 = vmul.f32 %v2138_v12, %v5479_v34  ;;  %v2371_v9 = vrot.slane %v2268_v26, 6  ;;  %v5483_v58 = vld [vmem:[#allocation4_spill] sm:$0xff]  ;;  %v5485_v6 = vld [vmem:[#allocation39_spill] sm:$0xff]  ;;  %v5490_v19 = vld [vmem:[#allocation33_spill] sm:$0xff] }
 0x1dd   :  { %v2375_v28 = vrot.slane %v2269_v22, 6  ;;  %v2141_v52 = vadd.f32 %v2140_v44, %v2136_v15  ;;  %v2380_v2 = vrot.slane %v2270_v18, 6  ;;  %v2605_v17 = vrot.slane %v2504_v20, 6  ;;  %v5486_v12 = vld [vmem:[#allocation40_spill] sm:$0xff]  ;;  %v5487_v22 = vld [vmem:[#allocation5_spill] sm:$0xff] }
 0x1de   :  { %v2157_v57 = vadd.f32 %v2155_v32, %v2152_v56  ;;  %v2150_v63 = vadd.f32 %v2149_v29, %v2148_v60  ;;  %v2373_v30 = vmul.f32 %v2371_v9, %v5480_v61  ;;  %v2385_v47 = vmul.f32 %v2371_v9, %v5482_v27  ;;  %v5489_v20 = vld [vmem:[#allocation41_spill] sm:$0xff]  ;;  %v2505_v32 = vld [vmem:[#allocation2 + $0x97] sm:$0x1] }
 0x1df   :  { %v2377_v5 = vmul.f32 %v2375_v28, %v5481_v21  ;;  %v5484_v49 = vrot.slane %v5483_v58, 7  ;;  %v2382_v51 = vmul.f32 %v2380_v2, %v5485_v6  ;;  %v2386_v26 = vmul.f32 %v2375_v28, %v5486_v12  ;;  %v5491_v21 = vld [vmem:[#allocation6_spill] sm:$0xff]  ;;  %v5495_v58 = vld [vmem:[#allocation47_spill] sm:$0xff] }
 0x1e0   :  { %v2159_v42 = vadd.f32 %v2158_v1, %v2157_v57  ;;  %v5488_v44 = vrot.slane %v5487_v22, 7  ;;  %v2388_v29 = vmul.f32 %v2380_v2, %v5489_v20  ;;  %v2391_v56 = vmul.f32 %v2371_v9, %v5490_v19  ;;  %v5493_v1 = vld [vmem:[#allocation42_spill] sm:$0xff]  ;;  %v5496_v20 = vld [vmem:[#allocation49_spill] sm:$0xff] }
 0x1e1   :  { %v2142_v55 = vadd.f32 %v2141_v52, %v5484_v49  ;;  %v2378_v18 = vadd.f32 %v2377_v5, %v2373_v30  ;;  %v5492_v60 = vrot.slane %v5491_v21, 7  ;;  %v2387_v49 = vadd.f32 %v2386_v26, %v2385_v47  ;;  %v1904_v57 = vld [vmem:[#allocation2 + $0xa8] sm:$0x3f]  ;;  %v5494_v5 = vld [vmem:[#allocation43_spill] sm:$0xff]  ;;  %v5497_v26 = vld [vmem:[#allocation52_spill] sm:$0xff] }
 0x1e2   :  { %v2151_v15 = vadd.f32 %v2150_v63, %v5488_v44  ;;  %v2392_v52 = vmul.f32 %v2375_v28, %v5493_v1  ;;  %v2394_v30 = vmul.f32 %v2380_v2, %v5494_v5  ;;  %v2607_v6 = vmul.f32 %v2605_v17, %v5495_v58  ;;  %v5499_v2 = vld [vmem:[#allocation51_spill] sm:$0xff]  ;;  %v5500_v58 = vld [vmem:[#allocation54_spill] sm:$0xff] }
 0x1e3   :  { %v2160_v34 = vadd.f32 %v2159_v42, %v5492_v60  ;;  %v4951_v61 = vrot.slane %v2142_v55, %v4280_v59  ;;  %v2383_v63 = vadd.f32 %v2382_v51, %v2378_v18  ;;  %v2389_v12 = vadd.f32 %v2388_v29, %v2387_v49  ;;  %v5498_v51 = vld [vmem:[#allocation48_spill] sm:$0xff] }
 0x1e4   :  { %v4955_v27 = vrot.slane %v2151_v15, %v4280_v59  ;;  %v2393_v42 = vadd.f32 %v2392_v52, %v2391_v56  ;;  %v2609_v22 = vrot.slane %v2505_v32, 6  ;;  %v2619_v47 = vmul.f32 %v2605_v17, %v5496_v20 }
 0x1e5   :  { %v4960_v9 = vrot.slane %v2160_v34, %v4280_v59  ;;  %v2384_v44 = vadd.f32 %v2383_v63, %v2142_v55  ;;  %v2625_v28 = vmul.f32 %v2605_v17, %v5497_v26  ;;  %v1920_v19 = vmul.f32 %v5438_v38, %v1904_v57  ;;  %v1906_v26 = vld [vmem:[#allocation2 + $0xb8] sm:$0x3f] }
 0x1e6   :  { %v2390_v21 = vadd.f32 %v2389_v12, %v2151_v15  ;;  %v2395_v60 = vadd.f32 %v2394_v30, %v2393_v42  ;;  %v2611_v18 = vmul.f32 %v2609_v22, %v5498_v51  ;;  %v2620_v1 = vmul.f32 %v2609_v22, %v5499_v2 }
 0x1e7   :  { %v4968_v5 = vrot.slane %v2384_v44, %v4280_v59  ;;  %v2626_v29 = vmul.f32 %v2609_v22, %v5500_v58  ;;  %v1950_v56 = vmul.f32 %v5439_v35, %v1904_v57  ;;  %v1980_v55 = vmul.f32 %v5440_v10, %v1904_v57  ;;  %v5501_v58 = vld [vmem:[#allocation57_spill] sm:$0xff] }
 0x1e8   :  { %v2396_v32 = vadd.f32 %v2395_v60, %v2160_v34  ;;  %v4974_v17 = vrot.slane %v2390_v21, %v4280_v59  ;;  %v2612_v38 = vadd.f32 %v2611_v18, %v2607_v6  ;;  %v2621_v15 = vadd.f32 %v2620_v1, %v2619_v47 }
 0x1e9   :  { %v2627_v49 = vadd.f32 %v2626_v29, %v2625_v28  ;;  %v2168_v52 = vmul.f32 %v5441_v23, %v1904_v57  ;;  %v2200_v63 = vmul.f32 %v5442_v62, %v1904_v57  ;;  %v2232_v30 = vmul.f32 %v5443_v7, %v1904_v57  ;;  %v5502_v29 = vld [vmem:[#allocation63_spill] sm:$0xff] }
 0x1ea   :  { %v4980_v12 = vrot.slane %v2396_v32, %v4280_v59  ;;  %v2617_v35 = vadd.f32 %v4905_v40, %v2612_v38  ;;  %v2623_v10 = vadd.f32 %v4908_v14, %v2621_v15  ;;  %v2404_v34 = vmul.f32 %v4587_v31, %v1904_v57  ;;  %v5503_v38 = vld [vmem:[#allocation65_spill] sm:$0xff] }
 0x1eb   :  { %v2629_v42 = vadd.f32 %v4911_v0, %v2627_v49  ;;  %v2436_v6 = vmul.f32 %v4603_v11, %v1904_v57  ;;  %v2468_v22 = vmul.f32 %v4617_v43, %v1904_v57  ;;  %v2638_v23 = vmul.f32 %v4708_v53, %v1904_v57 }
 0x1ec   :  { %v2618_v62 = vadd.f32 %v2617_v35, %v2384_v44  ;;  %v2624_v20 = vadd.f32 %v2623_v10, %v2390_v21  ;;  %v2670_v7 = vmul.f32 %v4722_v4, %v1904_v57  ;;  %v2702_v47 = vmul.f32 %v4738_v37, %v1904_v57  ;;  %v5506_v35 = vld [vmem:[#allocation73_spill] sm:$0xff] }
 0x1ed   :  { %v2630_v40 = vadd.f32 %v2629_v42, %v2396_v32  ;;  %v2872_v14 = vmul.f32 %v4791_v16, %v1904_v57  ;;  %v2904_v31 = vmul.f32 %v4800_v25, %v1904_v57  ;;  %v2936_v0 = vmul.f32 %v4815_v3, %v1904_v57  ;;  %v5508_v42 = vld [vmem:[#allocation21_spill] sm:$0xff] }
 0x1ee   :  { %v4995_v11 = vrot.slane %v2618_v62, %v4280_v59  ;;  %v4998_v43 = vrot.slane %v2624_v20, %v4280_v59  ;;  %v2852_v53 = vadd.f32 %v4925_v24, %v2618_v62  ;;  %v2858_v4 = vadd.f32 %v4927_v41, %v2624_v20  ;;  %v5511_v20 = vld [vmem:[#allocation25_spill] sm:$0xff] }
 0x1ef   :  { %v5003_v37 = vrot.slane %v2630_v40, %v4280_v59  ;;  %v2864_v44 = vadd.f32 %v4930_v54, %v2630_v40  ;;  %v1926_v16 = vmul.f32 %v5454_v50, %v1906_v26  ;;  %v1956_v25 = vmul.f32 %v5455_v36, %v1906_v26  ;;  %v5512_v40 = vld [vmem:[#allocation77_spill] sm:$0xff] }
 0x1f0   :  { %v5009_v3 = vrot.slane %v2852_v53, %v4280_v59  ;;  %v5012_v57 = vrot.slane %v2858_v4, %v4280_v59  ;;  %v1986_v28 = vmul.f32 %v5456_v46, %v1906_v26  ;;  %v2174_v24 = vmul.f32 %v4519_v33, %v1906_v26 }
 0x1f1   :  { %v5017_v41 = vrot.slane %v2864_v44, %v4280_v59  ;;  %v1928_v21 = vadd.f32 %v1926_v16, %v1920_v19  ;;  %v1958_v60 = vadd.f32 %v1956_v25, %v1950_v56  ;;  %v2206_v54 = vmul.f32 %v4527_v45, %v1906_v26  ;;  %v5504_v56 = vld [vmem:[#allocation67_spill] sm:$0xff] }
 0x1f2   :  { %v1988_v50 = vadd.f32 %v1986_v28, %v1980_v55  ;;  %v2176_v51 = vadd.f32 %v2174_v24, %v2168_v52  ;;  %v2238_v36 = vmul.f32 %v4535_v13, %v1906_v26  ;;  %v2410_v18 = vmul.f32 %v4593_v39, %v1906_v26  ;;  %v5505_v52 = vld [vmem:[#allocation70_spill] sm:$0xff] }
 0x1f3   :  { %v2208_v2 = vadd.f32 %v2206_v54, %v2200_v63  ;;  %v2442_v1 = vmul.f32 %v4607_v8, %v1906_v26  ;;  %v2474_v46 = vmul.f32 %v5501_v58, %v1906_v26  ;;  %v2644_v33 = vmul.f32 %v5502_v29, %v1906_v26  ;;  %v5515_v54 = vld [vmem:[#allocation28_spill] sm:$0xff] }
 0x1f4   :  { %v2240_v32 = vadd.f32 %v2238_v36, %v2232_v30  ;;  %v2412_v59 = vadd.f32 %v2410_v18, %v2404_v34  ;;  %v2676_v19 = vmul.f32 %v5503_v38, %v1906_v26  ;;  %v2708_v15 = vmul.f32 %v5504_v56, %v1906_v26  ;;  %v5507_v34 = vld [vmem:[#allocation35_spill] sm:$0xff] }
 0x1f5   :  { %v2444_v45 = vadd.f32 %v2442_v1, %v2436_v6  ;;  %v5027_v55 = vadd.f32 %v2474_v46, %v2468_v22  ;;  %v5029_v49 = vadd.f32 %v2644_v33, %v2638_v23  ;;  %v2878_v13 = vmul.f32 %v4794_v48, %v1906_v26  ;;  %v5509_v6 = vld [vmem:[#allocation37_spill] sm:$0xff]  ;;  %v5510_v22 = vld [vmem:[#allocation22_spill] sm:$0xff]  ;;  %v5516_v1 = vld [vmem:[#allocation20_spill] sm:$0xff] }
 0x1f6   :  { %v5032_v39 = vadd.f32 %v2676_v19, %v2670_v7  ;;  %v5034_v8 = vadd.f32 %v2708_v15, %v2702_v47  ;;  %v2910_v63 = vmul.f32 %v5505_v52, %v1906_v26  ;;  %v2942_v30 = vmul.f32 %v5506_v35, %v1906_v26  ;;  %v5052_v47 = vld [vmem:[#allocation2 + $0xc8] sm:$0x3f]  ;;  %v5513_v26 = vld [vmem:[#allocation72_spill] sm:$0xff]  ;;  %v5517_v46 = vld [vmem:[#allocation31_spill] sm:$0xff] }
 0x1f7   :  { %v5038_v10 = vadd.f32 %v2878_v13, %v2872_v14  ;;  %v5042_v62 = vadd.f32 %v5508_v42, %v5507_v34  ;;  %v5046_v23 = vadd.f32 %v5510_v22, %v5509_v6  ;;  %v5050_v7 = vadd.f32 %v5512_v40, %v5511_v20  ;;  %v5519_v33 = vld [vmem:[#allocation32_spill] sm:$0xff]  ;;  %v5530_v20 = vld [vmem:[#allocation45_spill] sm:$0xff] }
 0x1f8   :  { %v5054_v53 = vadd.f32 %v2910_v63, %v2904_v31  ;;  %v5056_v4 = vadd.f32 %v2942_v30, %v2936_v0  ;;  %v2473_v14 = vmul.f32 %v5513_v26, %v5501_v58  ;;  %v2643_v44 = vmul.f32 %v5513_v26, %v5502_v29  ;;  %v5514_v0 = vld [vmem:[#allocation26_spill] sm:$0xff]  ;;  %v5525_v13 = vld [vmem:[#allocation76_spill] sm:$0xff] }
 0x1f9   :  { %v2675_v16 = vmul.f32 %v5513_v26, %v5503_v38  ;;  %v2707_v25 = vmul.f32 %v5513_v26, %v5504_v56  ;;  %v2877_v28 = vmul.f32 %v5513_v26, %v4794_v48  ;;  %v2909_v31 = vmul.f32 %v5513_v26, %v5505_v52  ;;  %v5521_v38 = vld [vmem:[#allocation36_spill] sm:$0xff]  ;;  %v5523_v56 = vld [vmem:[#allocation75_spill] sm:$0xff] }
 0x1fa   :  { %v5071_v24 = vadd.f32 %v2473_v14, %v5514_v0  ;;  %v5074_v36 = vadd.f32 %v2643_v44, %v5515_v54  ;;  %v2941_v18 = vmul.f32 %v5513_v26, %v5506_v35  ;;  %v1934_v58 = vmul.f32 %v5516_v1, %v5052_v47  ;;  %v5527_v35 = vld [vmem:[#allocation23_spill] sm:$0xff]  ;;  %v5528_v34 = vld [vmem:[#allocation24_spill] sm:$0xff]  ;;  %v5531_v26 = vld [vmem:[#allocation46_spill] sm:$0xff] }
 0x1fb   :  { %v5081_v29 = vadd.f32 %v2675_v16, %v5517_v46  ;;  %v5084_v48 = vadd.f32 %v2707_v25, %v5519_v33  ;;  %v5087_v19 = vadd.f32 %v2877_v28, %v5521_v38  ;;  %v5090_v15 = vadd.f32 %v2909_v31, %v5523_v56  ;;  %v5529_v6 = vld [vmem:[#allocation44_spill] sm:$0xff]  ;;  %v5532_v44 = vld [vmem:[#allocation53_spill] sm:$0xff]  ;;  %v5533_v25 = vld [vmem:[#allocation14_spill] sm:$0xff] }
 0x1fc   :  { %v5093_v52 = vadd.f32 %v2941_v18, %v5525_v13  ;;  %v1936_v63 = vadd.f32 %v1934_v58, %v1928_v21  ;;  %v1964_v30 = vmul.f32 %v5527_v35, %v5052_v47  ;;  %v1994_v42 = vmul.f32 %v5528_v34, %v5052_v47  ;;  %v5534_v0 = vld [vmem:[#allocation55_spill] sm:$0xff]  ;;  %v1914_v18 = vld [vmem:[#allocation2 + $0x20] sm:$0x3f] }
 0x1fd   :  { %5518 = vst [vmem:[#allocation50_spill] sm:$0xff] %v5081_v29  ;;  %5520 = vst [vmem:[#allocation56_spill] sm:$0xff] %v5084_v48  ;;  %v2182_v22 = vmul.f32 %v5529_v6, %v5052_v47  ;;  %v2214_v40 = vmul.f32 %v5530_v20, %v5052_v47  ;;  %v2246_v14 = vmul.f32 %v5531_v26, %v5052_v47  ;;  %v5535_v13 = vld [vmem:[#allocation15_spill] sm:$0xff] }
 0x1fe   :  { %5522 = vst [vmem:[#allocation59_spill] sm:$0xff] %v5087_v19  ;;  %5524 = vst [vmem:[#allocation60_spill] sm:$0xff] %v5090_v15  ;;  %v2418_v16 = vmul.f32 %v5532_v44, %v5052_v47  ;;  %v1942_v21 = vadd.f32 %v5533_v25, %v1936_v63  ;;  %v1966_v28 = vadd.f32 %v1964_v30, %v1958_v60  ;;  %v5536_v15 = vld [vmem:[#allocation16_spill] sm:$0xff]  ;;  %v2162_v30 = vld [vmem:[#allocation2 + $0x30] sm:$0x3f] }
 0x1ff   :  { %5526 = vst [vmem:[#allocation61_spill] sm:$0xff] %v5093_v52  ;;  %v1996_v31 = vadd.f32 %v1994_v42, %v1988_v50  ;;  %v2450_v54 = vmul.f32 %v5534_v0, %v5052_v47  ;;  %v2184_v58 = vadd.f32 %v2182_v22, %v2176_v51  ;;  %v2216_v46 = vadd.f32 %v2214_v40, %v2208_v2  ;;  %v2398_v42 = vld [vmem:[#allocation2 + $0x40] sm:$0x3f] }
 0x200   :  { %v2248_v33 = vadd.f32 %v2246_v14, %v2240_v32  ;;  %v2420_v38 = vadd.f32 %v2418_v16, %v2412_v59  ;;  %v1944_v56 = vmul.f32 %v1942_v21, %v1914_v18  ;;  %v1972_v52 = vadd.f32 %v5535_v13, %v1966_v28  ;;  %v5537_v59 = vld [vmem:[#allocation58_spill] sm:$0xff] }
 0x201   :  { %v2002_v19 = vadd.f32 %v5536_v15, %v1996_v31  ;;  %v2452_v48 = vadd.f32 %v2450_v54, %v2444_v45  ;;  %v2190_v29 = vadd.f32 %v4951_v61, %v2184_v58  ;;  %v2222_v63 = vadd.f32 %v4955_v27, %v2216_v46  ;;  %v5538_v31 = vld [vmem:[#allocation64_spill] sm:$0xff]  ;;  %v5539_v58 = vld [vmem:[#allocation66_spill] sm:$0xff] }
 0x202   :  { %v2254_v60 = vadd.f32 %v4960_v9, %v2248_v33  ;;  %v2426_v50 = vadd.f32 %v4968_v5, %v2420_v38  ;;  %v1974_v51 = vmul.f32 %v1972_v52, %v1914_v18  ;;  %v2482_v22 = vmul.f32 %v5537_v59, %v5052_v47 }
 0x203   :  { %v2004_v2 = vmul.f32 %v2002_v19, %v1914_v18  ;;  %v2458_v32 = vadd.f32 %v4974_v17, %v2452_v48  ;;  %v2192_v40 = vmul.f32 %v2190_v29, %v2162_v30  ;;  %v2224_v14 = vmul.f32 %v2222_v63, %v2162_v30  ;;  %v5540_v48 = vld [vmem:[#allocation68_spill] sm:$0xff] }
 0x204   :  { %v2256_v45 = vmul.f32 %v2254_v60, %v2162_v30  ;;  %v2428_v16 = vmul.f32 %v2426_v50, %v2398_v42  ;;  %v2484_v28 = vadd.f32 %v2482_v22, %v5027_v55  ;;  %v2652_v54 = vmul.f32 %v5538_v31, %v5052_v47  ;;  %v5541_v55 = vld [vmem:[#allocation69_spill] sm:$0xff] }
 0x205   :  { %v2460_v21 = vmul.f32 %v2458_v32, %v2398_v42  ;;  %v2684_v46 = vmul.f32 %v5539_v58, %v5052_v47  ;;  %v2194_v52 = vadd.f32 %v2192_v40, %v1944_v56  ;;  %v2226_v19 = vadd.f32 %v2224_v14, %v1974_v51  ;;  %v5542_v56 = vld [vmem:[#allocation71_spill] sm:$0xff] }
 0x206   :  { %v2258_v18 = vadd.f32 %v2256_v45, %v2004_v2  ;;  %v2716_v33 = vmul.f32 %v5540_v48, %v5052_v47  ;;  %v2490_v29 = vadd.f32 %v4980_v12, %v2484_v28  ;;  %v2654_v38 = vadd.f32 %v2652_v54, %v5029_v49  ;;  %v2632_v49 = vld [vmem:[#allocation2 + $0x50] sm:$0x3f] }
 0x207   :  { %v2686_v63 = vadd.f32 %v2684_v46, %v5032_v39  ;;  %v2886_v60 = vmul.f32 %v5541_v55, %v5052_v47  ;;  %v2430_v50 = vadd.f32 %v2428_v16, %v2194_v52  ;;  %v2462_v30 = vadd.f32 %v2460_v21, %v2226_v19  ;;  %v5543_v16 = vld [vmem:[#allocation74_spill] sm:$0xff]  ;;  %v2866_v19 = vld [vmem:[#allocation2 + $0x60] sm:$0x3f] }
 0x208   :  { %v2718_v32 = vadd.f32 %v2716_v33, %v5034_v8  ;;  %v2918_v51 = vmul.f32 %v5542_v56, %v5052_v47  ;;  %v2492_v2 = vmul.f32 %v2490_v29, %v2398_v42  ;;  %v2660_v22 = vadd.f32 %v4995_v11, %v2654_v38  ;;  %v5544_v8 = vld [vmem:[#allocation34_spill] sm:$0xff] }
 0x209   :  { %v2692_v40 = vadd.f32 %v4998_v43, %v2686_v63  ;;  %v2888_v14 = vadd.f32 %v2886_v60, %v5038_v10  ;;  %v2950_v21 = vmul.f32 %v5543_v16, %v5052_v47  ;;  %v1933_v28 = vmul.f32 %v5544_v8, %v5516_v1  ;;  %v5545_v38 = vld [vmem:[#allocation18_spill] sm:$0xff] }
 0x20a   :  { %v2724_v39 = vadd.f32 %v5003_v37, %v2718_v32  ;;  %v2920_v45 = vadd.f32 %v2918_v51, %v5054_v53  ;;  %v2494_v54 = vadd.f32 %v2492_v2, %v2258_v18  ;;  %v2662_v46 = vmul.f32 %v2660_v22, %v2632_v49 }
 0x20b   :  { %v2694_v42 = vmul.f32 %v2692_v40, %v2632_v49  ;;  %v2894_v52 = vadd.f32 %v5009_v3, %v2888_v14  ;;  %v2952_v29 = vadd.f32 %v2950_v21, %v5056_v4  ;;  %v1935_v63 = vadd.f32 %v1933_v28, %v5545_v38  ;;  %v5546_v40 = vld [vmem:[#allocation78_spill] sm:$0xff]  ;;  %v5547_v21 = vld [vmem:[#allocation27_spill] sm:$0xff] }
 0x20c   :  { %v2726_v33 = vmul.f32 %v2724_v39, %v2632_v49  ;;  %v2926_v10 = vadd.f32 %v5012_v57, %v2920_v45  ;;  %v2664_v53 = vadd.f32 %v2662_v46, %v2430_v50  ;;  %v1963_v47 = vmul.f32 %v5544_v8, %v5527_v35  ;;  %v3657_v39 = vld [vmem:[#allocation2 + $0x18] sm:$0xff] }
 0x20d   :  { %v2696_v60 = vadd.f32 %v2694_v42, %v2462_v30  ;;  %v2896_v32 = vmul.f32 %v2894_v52, %v2866_v19  ;;  %v2958_v51 = vadd.f32 %v5017_v41, %v2952_v29  ;;  %v1941_v2 = vadd.f32 %v5533_v25, %v1935_v63  ;;  %v5549_v42 = vld [vmem:[#allocation80_spill] sm:$0xff] }
 0x20e   :  { %v2728_v1 = vadd.f32 %v2726_v33, %v2494_v54  ;;  %v2928_v18 = vmul.f32 %v2926_v10, %v2866_v19  ;;  %v1965_v14 = vadd.f32 %v1963_v47, %v5546_v40  ;;  %v1993_v4 = vmul.f32 %v5544_v8, %v5528_v34  ;;  %v5548_v54 = vld [vmem:[#allocation79_spill] sm:$0xff]  ;;  %v5550_v10 = vld [vmem:[#allocation81_spill] sm:$0xff] }
 0x20f   :  { %v2898_v22 = vadd.f32 %v2896_v32, %v2664_v53  ;;  %v2181_v50 = vmul.f32 %v5544_v8, %v5529_v6  ;;  %v2960_v49 = vmul.f32 %v2958_v51, %v2866_v19  ;;  %v1943_v45 = vmul.f32 %v3657_v39, %v1941_v2 }
 0x210   :  { %v2930_v30 = vadd.f32 %v2928_v18, %v2696_v60  ;;  %v2213_v35 = vmul.f32 %v5544_v8, %v5530_v20  ;;  %v1971_v25 = vadd.f32 %v5535_v13, %v1965_v14  ;;  %v1995_v46 = vadd.f32 %v1993_v4, %v5548_v54 }
 0x211   :  { %v2964_v28 = vmul.f32 %v2898_v22, %v5547_v21  ;;  %v2183_v52 = vadd.f32 %v2181_v50, %v5549_v42  ;;  %v2962_v33 = vadd.f32 %v2960_v49, %v2728_v1  ;;  %v2245_v19 = vmul.f32 %v5544_v8, %v5531_v26  ;;  %v5551_v50 = vld [vmem:[#allocation50_spill] sm:$0xff] }
 0x212   :  { %v2970_v34 = vmul.f32 %v2930_v30, %v5547_v21  ;;  %v2215_v6 = vadd.f32 %v2213_v35, %v5550_v10  ;;  %v1973_v20 = vmul.f32 %v3657_v39, %v1971_v25  ;;  %v2001_v29 = vadd.f32 %v5536_v15, %v1995_v46  ;;  %v3658_v15 = vld [vmem:[#allocation2 + $0x28] sm:$0xff]  ;;  %v5553_v25 = vld [vmem:[#allocation59_spill] sm:$0xff] }
 0x213   :  { %2968 = vst [vmem:[%s5240_s2 + $0x8] sm:$0x3f] %v2964_v28  ;;  %v2189_v13 = vadd.f32 %v4951_v61, %v2183_v52  ;;  %v2417_v38 = vmul.f32 %v5544_v8, %v5532_v44  ;;  %v2976_v63 = vmul.f32 %v2962_v33, %v5547_v21  ;;  %v2247_v53 = vadd.f32 %v2245_v19, %v5042_v62  ;;  %v5554_v33 = vld [vmem:[#allocation60_spill] sm:$0xff]  ;;  %v5555_v19 = vld [vmem:[#allocation61_spill] sm:$0xff] }
 0x214   :  { %3004 = vst [vmem:[%s5240_s2 + $0x18] sm:$0x3f] %v2970_v34  ;;  %v2221_v26 = vadd.f32 %v4955_v27, %v2215_v6  ;;  %v2449_v60 = vmul.f32 %v5544_v8, %v5534_v0  ;;  %v2003_v32 = vmul.f32 %v3657_v39, %v2001_v29  ;;  %v2481_v44 = vmul.f32 %v5544_v8, %v5537_v59  ;;  %v3661_v29 = vld [vmem:[#allocation2 + $0x58] sm:$0xff] }
 0x215   :  { %v2191_v47 = vmul.f32 %v3658_v15, %v2189_v13  ;;  %v2419_v61 = vadd.f32 %v2417_v38, %v5046_v23  ;;  %3006 = vst [vmem:[%s5240_s2 + $0x28] sm:$0x3f] %v2976_v63  ;;  %v2253_v27 = vadd.f32 %v4960_v9, %v2247_v53  ;;  %v2651_v0 = vmul.f32 %v5544_v8, %v5538_v31  ;;  %v3659_v9 = vld [vmem:[#allocation2 + $0x38] sm:$0xff] }
 0x216   :  { %v2223_v1 = vmul.f32 %v3658_v15, %v2221_v26  ;;  %v2451_v62 = vadd.f32 %v2449_v60, %v5050_v7  ;;  %v2483_v23 = vadd.f32 %v2481_v44, %v5071_v24  ;;  %v2683_v59 = vmul.f32 %v5544_v8, %v5539_v58  ;;  %v3664_v44 = vld [vmem:[%s5238_s1 + $0x38] sm:$0xf] }
 0x217   :  { %v2193_v18 = vadd.f32 %v2191_v47, %v1943_v45  ;;  %v2425_v51 = vadd.f32 %v4968_v5, %v2419_v61  ;;  %v2255_v22 = vmul.f32 %v3658_v15, %v2253_v27  ;;  %v2653_v14 = vadd.f32 %v2651_v0, %v5074_v36  ;;  %v5552_v45 = vld [vmem:[#allocation56_spill] sm:$0xff] }
 0x218   :  { %v2225_v2 = vadd.f32 %v2223_v1, %v1973_v20  ;;  %v2457_v40 = vadd.f32 %v4974_v17, %v2451_v62  ;;  %v2489_v7 = vadd.f32 %v4980_v12, %v2483_v23  ;;  %v2685_v31 = vadd.f32 %v2683_v59, %v5551_v50  ;;  %v3660_v12 = vld [vmem:[#allocation2 + $0x48] sm:$0xff] }
 0x219   :  { %v2427_v4 = vmul.f32 %v3659_v9, %v2425_v51  ;;  %v2715_v5 = vmul.f32 %v5544_v8, %v5540_v48  ;;  %v2257_v30 = vadd.f32 %v2255_v22, %v2003_v32  ;;  %v2659_v49 = vadd.f32 %v4995_v11, %v2653_v14  ;;  %v3662_v32 = vld [vmem:[%s5238_s1 + $0x30] sm:$0xf] }
 0x21a   :  { %v2459_v24 = vmul.f32 %v3659_v9, %v2457_v40  ;;  %v2885_v58 = vmul.f32 %v5544_v8, %v5541_v55  ;;  %v2491_v17 = vmul.f32 %v3659_v9, %v2489_v7  ;;  %v2691_v36 = vadd.f32 %v4998_v43, %v2685_v31 }
 0x21b   :  { %v2429_v39 = vadd.f32 %v2427_v4, %v2193_v18  ;;  %v2717_v35 = vadd.f32 %v2715_v5, %v5552_v45  ;;  %v2661_v28 = vmul.f32 %v3660_v12, %v2659_v49  ;;  %v2917_v48 = vmul.f32 %v5544_v8, %v5542_v56 }
 0x21c   :  { %v2461_v21 = vadd.f32 %v2459_v24, %v2225_v2  ;;  %v2887_v54 = vadd.f32 %v2885_v58, %v5553_v25  ;;  %v2493_v46 = vadd.f32 %v2491_v17, %v2257_v30  ;;  %v2693_v42 = vmul.f32 %v3660_v12, %v2691_v36 }
 0x21d   :  { %v2723_v11 = vadd.f32 %v5003_v37, %v2717_v35  ;;  %v2949_v55 = vmul.f32 %v5544_v8, %v5543_v16  ;;  %v2663_v52 = vadd.f32 %v2661_v28, %v2429_v39  ;;  %v2919_v34 = vadd.f32 %v2917_v48, %v5554_v33  ;;  %v5556_v8 = vld [vmem:[#allocation10_spill] sm:$0xff] }
 0x21e   :  { %v2893_v43 = vadd.f32 %v5009_v3, %v2887_v54  ;;  %v2695_v10 = vadd.f32 %v2693_v42, %v2461_v21 }
 0x21f   :  { %v2725_v6 = vmul.f32 %v3660_v12, %v2723_v11  ;;  %v2951_v20 = vadd.f32 %v2949_v55, %v5555_v19  ;;  %v2925_v56 = vadd.f32 %v5012_v57, %v2919_v34 }
 0x220   :  { %v2895_v13 = vmul.f32 %v3661_v29, %v2893_v43 }
 0x221   :  { %v2727_v38 = vadd.f32 %v2725_v6, %v2493_v46  ;;  %v2957_v63 = vadd.f32 %v5017_v41, %v2951_v20  ;;  %v2927_v26 = vmul.f32 %v3661_v29, %v2925_v56  ;;  %v3663_v41 = vld [vmem:[%s5238_s1 + $0x34] sm:$0xf] }
 0x222   :  { %v2897_v37 = vadd.f32 %v2895_v13, %v2663_v52 }
 0x223   :  { %v2959_v53 = vmul.f32 %v3661_v29, %v2957_v63  ;;  %v2929_v16 = vadd.f32 %v2927_v26, %v2695_v10 }
 0x224   :  { %v2963_v3 = vmul.f32 %v2897_v37, %v5556_v8 }
 0x225   :  { %v2961_v60 = vadd.f32 %v2959_v53, %v2727_v38  ;;  %v2969_v47 = vmul.f32 %v2929_v16, %v5556_v8 }
 0x226   :  { %v2966_v15 = vsel %vm2965_vm7, %v3662_v32, %v2963_v3 }
 0x227   :  { %2967 = vst [vmem:[%s5240_s2] sm:$0xff] %v2966_v15  ;;  %v2975_v57 = vmul.f32 %v2961_v60, %v5556_v8  ;;  %v2971_v61 = vsel %vm2965_vm7, %v3663_v41, %v2969_v47 }
 0x228   :  { %3003 = vst [vmem:[%s5240_s2 + $0x10] sm:$0xff] %v2971_v61 }
 0x229   :  { %v2977_v1 = vsel %vm2965_vm7, %v3664_v44, %v2975_v57 }
 0x22a   :  { %3005 = vst [vmem:[%s5240_s2 + $0x20] sm:$0xff] %v2977_v1 }

</bundles_post_ra>
